<compile_context>
chip_gen: v7x
topology: tpu7x:2x2x1
jax: 0.10.0
libtpu: 0.0.40
codegen_flags: <defaults>
</compile_context>

<pallas_src>
import functools

import jax
import jax.numpy as jnp
from jax.experimental import pallas as pl
from jax.experimental.pallas import tpu as pltpu


RESNET_FEATS = 1000      # torchvision resnet18 output width
HIDDEN = 512             # fc1 width
K_TILE = 512             # backbone contraction tile (multiple of 128)
LANE = 128


def _round_up(x, m):
    return (x + m - 1) // m * m


# ----------------------------------------------------------------------------
# Fused Pallas kernel:  backbone matmul (K-tiled) + bias + fc1 + ReLU + fc2
# ----------------------------------------------------------------------------

def fused_model_kernel(x_ref, wbb_ref, bbb_ref, wx_ref, w1f_ref, w1w_ref,
                       b1_ref, w2_ref, b2_ref, o_ref, acc_ref):
    k = pl.program_id(0)

    @pl.when(k == 0)
    def _init():
        acc_ref[...] = jnp.zeros_like(acc_ref)

    # TODO(synk): full pretrained ResNet-18 conv stack has no clean
    # single-kernel Pallas equivalent; the backbone is a stand-in linear
    # projection to 1000 features, streamed K-tile by K-tile.
    acc_ref[...] += jnp.dot(
        x_ref[...].astype(jnp.bfloat16), wbb_ref[...],
        preferred_element_type=jnp.float32)

    @pl.when(k == pl.num_programs(0) - 1)
    def _finalize():
        # f32 epilogue (bias add) done once, after the last K step.
        feats = acc_ref[...] + bbb_ref[...]
        # fc1 on concat(features, weather) via split weights.
        h = jnp.dot(feats.astype(jnp.bfloat16), w1f_ref[...],
                    preferred_element_type=jnp.float32)
        h = h + jnp.dot(wx_ref[...].astype(jnp.bfloat16), w1w_ref[...],
                        preferred_element_type=jnp.float32)
        h = jnp.maximum(h + b1_ref[...], 0.0)          # F.relu, f32
        out = jnp.dot(h.astype(jnp.bfloat16), w2_ref[...],
                      preferred_element_type=jnp.float32) + b2_ref[...]
        o_ref[...] = out.astype(o_ref.dtype)


def _fused_forward(x_flat, weather, w_bb, b_bb, w1_f, w1_w, b1, w2, b2,
                   *, k_tile):
    B, k_pad = x_flat.shape
    feat_pad = w_bb.shape[1]
    hidden = w1_f.shape[1]
    c_pad = w2.shape[1]
    nw = weather.shape[1]
    n_k = k_pad // k_tile

    grid_spec = pltpu.PrefetchScalarGridSpec(
        num_scalar_prefetch=0,
        grid=(n_k,),
        in_specs=[
            pl.BlockSpec((B, k_tile), lambda k: (0, k)),        # x tile
            pl.BlockSpec((k_tile, feat_pad), lambda k: (k, 0)),  # w_bb tile
            pl.BlockSpec((1, feat_pad), lambda k: (0, 0)),       # b_bb
            pl.BlockSpec((B, nw), lambda k: (0, 0)),             # weather
            pl.BlockSpec((feat_pad, hidden), lambda k: (0, 0)),  # w1_f
            pl.BlockSpec((nw, hidden), lambda k: (0, 0)),        # w1_w
            pl.BlockSpec((1, hidden), lambda k: (0, 0)),         # b1
            pl.BlockSpec((hidden, c_pad), lambda k: (0, 0)),     # w2
            pl.BlockSpec((1, c_pad), lambda k: (0, 0)),          # b2
        ],
        out_specs=pl.BlockSpec((B, c_pad), lambda k: (0, 0)),
        scratch_shapes=[pltpu.VMEM((B, feat_pad), jnp.float32)],
    )

    return pl.pallas_call(
        fused_model_kernel,
        out_shape=jax.ShapeDtypeStruct((B, c_pad), jnp.float32),
        grid_spec=grid_spec,
        compiler_params=pltpu.CompilerParams(
            dimension_semantics=("arbitrary",),       # K is a reduction axis
            vmem_limit_bytes=32 * 1024 * 1024,        # safe on v5e/v6e/v7x
        ),
    )(x_flat, w_bb, b_bb, weather, w1_f, w1_w, b1, w2, b2)


# ----------------------------------------------------------------------------
# Model wrapper
# ----------------------------------------------------------------------------

def model_forward(params, x, weather_data, num_classes, k_tile=K_TILE):
    B = x.shape[0]
    x_flat = x.reshape(B, -1).astype(jnp.float32)
    k_pad = params["w_bb"].shape[0]
    pad = k_pad - x_flat.shape[1]
    if pad:
        x_flat = jnp.pad(x_flat, ((0, 0), (0, pad)))
    out_pad = _fused_forward(
        x_flat, weather_data.astype(jnp.float32),
        params["w_bb"], params["b_bb"],
        params["w1_f"], params["w1_w"], params["b1"],
        params["w2"], params["b2"],
        k_tile=k_tile,
    )
    return out_pad[:, :num_classes]


def init_params(key, in_dim, num_weather_features, num_classes,
                resnet_out=RESNET_FEATS, hidden=HIDDEN, k_tile=K_TILE):
    k_pad = _round_up(in_dim, k_tile)
    feat_pad = _round_up(resnet_out, LANE)
    c_pad = _round_up(num_classes, LANE)
    ks = jax.random.split(key, 5)

    # Stand-in backbone projection (TODO(synk): real ResNet-18 weights).
    w_bb = jax.random.normal(ks[0], (in_dim, resnet_out), jnp.float32)
    w_bb = w_bb * (1.0 / float(in_dim) ** 0.5)
    b_bb = jnp.zeros((resnet_out,), jnp.float32)

    # fc1: Linear(1000 + num_weather_features, 512), PyTorch-style uniform init.
    fan1 = resnet_out + num_weather_features
    lim1 = 1.0 / float(fan1) ** 0.5
    w1 = jax.random.uniform(ks[1], (fan1, hidden), jnp.float32, -lim1, lim1)
    b1 = jax.random.uniform(ks[2], (hidden,), jnp.float32, -lim1, lim1)

    # fc2: Linear(512, num_classes)
    lim2 = 1.0 / float(hidden) ** 0.5
    w2 = jax.random.uniform(ks[3], (hidden, num_classes), jnp.float32, -lim2, lim2)
    b2 = jax.random.uniform(ks[4], (num_classes,), jnp.float32, -lim2, lim2)

    # Pad to lane-aligned shapes; weights -> bf16 (accumulate stays f32).
    w_bb_p = jnp.pad(w_bb, ((0, k_pad - in_dim),
                            (0, feat_pad - resnet_out))).astype(jnp.bfloat16)
    b_bb_p = jnp.pad(b_bb, ((0, feat_pad - resnet_out),)).reshape(1, feat_pad)
    w1_f = jnp.pad(w1[:resnet_out],
                   ((0, feat_pad - resnet_out), (0, 0))).astype(jnp.bfloat16)
    w1_w = w1[resnet_out:].astype(jnp.bfloat16)
    b1_p = b1.reshape(1, hidden)
    w2_p = jnp.pad(w2, ((0, 0), (0, c_pad - num_classes))).astype(jnp.bfloat16)
    b2_p = jnp.pad(b2, ((0, c_pad - num_classes),)).reshape(1, c_pad)

    return {
        "w_bb": w_bb_p, "b_bb": b_bb_p,
        "w1_f": w1_f, "w1_w": w1_w, "b1": b1_p,
        "w2": w2_p, "b2": b2_p,
    }


def reference_forward(params, x, weather_data, num_classes):
    """Plain-JAX reference mimicking the kernel's bf16 matmul / f32 epilogue."""
    B = x.shape[0]
    x_flat = x.reshape(B, -1).astype(jnp.float32)
    k_pad = params["w_bb"].shape[0]
    x_flat = jnp.pad(x_flat, ((0, 0), (0, k_pad - x_flat.shape[1])))
    f = jnp.dot(x_flat.astype(jnp.bfloat16), params["w_bb"],
                preferred_element_type=jnp.float32) + params["b_bb"]
    h = jnp.dot(f.astype(jnp.bfloat16), params["w1_f"],
                preferred_element_type=jnp.float32)
    h = h + jnp.dot(weather_data.astype(jnp.bfloat16), params["w1_w"],
                    preferred_element_type=jnp.float32)
    h = jnp.maximum(h + params["b1"], 0.0)
    out = jnp.dot(h.astype(jnp.bfloat16), params["w2"],
                  preferred_element_type=jnp.float32) + params["b2"]
    return out[:, :num_classes]


if __name__ == "__main__":
    key = jax.random.PRNGKey(0)
    B, C_in, H, W = 2, 3, 16, 16
    num_weather_features = 8
    num_classes = 10

    k_x, k_w, k_p = jax.random.split(key, 3)
    x = jax.random.normal(k_x, (B, C_in, H, W), jnp.float32)              # NCHW
    weather_data = jax.random.normal(k_w, (B, num_weather_features), jnp.float32)

    params = init_params(k_p, C_in * H * W, num_weather_features, num_classes)

    fwd = jax.jit(functools.partial(model_forward, num_classes=num_classes))
    logits = fwd(params, x, weather_data)
    jax.block_until_ready(logits)

    ref = reference_forward(params, x, weather_data, num_classes)

    assert logits.shape == (B, num_classes)
    assert logits.dtype == jnp.float32
    assert bool(jnp.all(jnp.isfinite(logits)))
    assert bool(jnp.allclose(logits, ref, rtol=1e-2, atol=1e-2))
    print("KERNEL_OK")
</pallas_src>

<mosaic_0001>
module attributes {stable_mosaic.version = 11 : i64} {
  func.func @fused_model_kernel(%arg0: i32, %arg1: memref<2x512xf32, #tpu.memory_space<vmem>>, %arg2: memref<512x1024xbf16, #tpu.memory_space<vmem>>, %arg3: memref<1x1024xf32, #tpu.memory_space<vmem>>, %arg4: memref<2x8xf32, #tpu.memory_space<vmem>>, %arg5: memref<1024x512xbf16, #tpu.memory_space<vmem>>, %arg6: memref<8x512xbf16, #tpu.memory_space<vmem>>, %arg7: memref<1x512xf32, #tpu.memory_space<vmem>>, %arg8: memref<512x128xbf16, #tpu.memory_space<vmem>>, %arg9: memref<1x128xf32, #tpu.memory_space<vmem>>, %arg10: memref<2x128xf32, #tpu.memory_space<vmem>>, %arg11: memref<2x1024xf32, #tpu.memory_space<vmem>>) attributes {dimension_semantics = [#tpu.dimension_semantics<arbitrary>], iteration_bounds = array<i64: 2>, scalar_prefetch = 0 : i64, scratch_operands = 1 : i64, tpu.core_type = #tpu.core_type<tc>, window_params = [{transform_indices = @transform_0, window_bounds = array<i64: 2, 512>}, {transform_indices = @transform_1, window_bounds = array<i64: 512, 1024>}, {pipeline_mode = #tpu.pipeline_mode<synchronous>, transform_indices = @transform_2, window_bounds = array<i64: 1, 1024>}, {pipeline_mode = #tpu.pipeline_mode<synchronous>, transform_indices = @transform_3, window_bounds = array<i64: 2, 8>}, {pipeline_mode = #tpu.pipeline_mode<synchronous>, transform_indices = @transform_4, window_bounds = array<i64: 1024, 512>}, {pipeline_mode = #tpu.pipeline_mode<synchronous>, transform_indices = @transform_5, window_bounds = array<i64: 8, 512>}, {pipeline_mode = #tpu.pipeline_mode<synchronous>, transform_indices = @transform_6, window_bounds = array<i64: 1, 512>}, {pipeline_mode = #tpu.pipeline_mode<synchronous>, transform_indices = @transform_7, window_bounds = array<i64: 512, 128>}, {pipeline_mode = #tpu.pipeline_mode<synchronous>, transform_indices = @transform_8, window_bounds = array<i64: 1, 128>}, {pipeline_mode = #tpu.pipeline_mode<synchronous>, transform_indices = @transform_9, window_bounds = array<i64: 2, 128>}]} {
    %c0_i32 = arith.constant 0 : i32
    %0 = arith.cmpi eq, %arg0, %c0_i32 : i32
    %1 = arith.extui %0 : i1 to i32
    %c0_i32_0 = arith.constant 0 : i32
    %2 = arith.cmpi ne, %1, %c0_i32_0 : i32
    scf.if %2 {
      %cst_9 = arith.constant 0.000000e+00 : f32
      %13 = vector.broadcast %cst_9 : f32 to vector<2x1024xf32>
      %c0_10 = arith.constant 0 : index
      %c0_11 = arith.constant 0 : index
      %14 = vector.load %arg11[%c0_10, %c0_11] : memref<2x1024xf32, #tpu.memory_space<vmem>>, vector<2x1024xf32>
      tpu.vector_store %arg11[%c0_10, %c0_11], %13 {strides = array<i32>} : memref<2x1024xf32, #tpu.memory_space<vmem>>, vector<2x1024xf32>,
    } else {
    }
    %c0 = arith.constant 0 : index
    %c0_1 = arith.constant 0 : index
    %3 = vector.load %arg11[%c0, %c0_1] : memref<2x1024xf32, #tpu.memory_space<vmem>>, vector<2x1024xf32>
    %c0_2 = arith.constant 0 : index
    %c0_3 = arith.constant 0 : index
    %4 = vector.load %arg1[%c0_2, %c0_3] : memref<2x512xf32, #tpu.memory_space<vmem>>, vector<2x512xf32>
    %5 = arith.truncf %4 : vector<2x512xf32> to vector<2x512xbf16>
    %c0_4 = arith.constant 0 : index
    %c0_5 = arith.constant 0 : index
    %6 = vector.load %arg2[%c0_4, %c0_5] : memref<512x1024xbf16, #tpu.memory_space<vmem>>, vector<512x1024xbf16>
    %cst = arith.constant dense<0.000000e+00> : vector<2x1024xf32>
    %7 = tpu.matmul %5, %6, %cst {dimension_numbers = #tpu.dot_dimension_numbers<[1], [0], [0], [1], [0, 0, 1, 1], [], []>} : vector<2x512xbf16>, vector<512x1024xbf16>, vector<2x1024xf32> -> vector<2x1024xf32>
    %8 = arith.addf %3, %7 : vector<2x1024xf32>
    %c0_6 = arith.constant 0 : index
    %c0_7 = arith.constant 0 : index
    %9 = vector.load %arg11[%c0_6, %c0_7] : memref<2x1024xf32, #tpu.memory_space<vmem>>, vector<2x1024xf32>
    tpu.vector_store %arg11[%c0_6, %c0_7], %8 {strides = array<i32>} : memref<2x1024xf32, #tpu.memory_space<vmem>>, vector<2x1024xf32>,
    %c1_i32 = arith.constant 1 : i32
    %10 = arith.cmpi eq, %arg0, %c1_i32 : i32
    %11 = arith.extui %10 : i1 to i32
    %c0_i32_8 = arith.constant 0 : i32
    %12 = arith.cmpi ne, %11, %c0_i32_8 : i32
    scf.if %12 {
      %c0_9 = arith.constant 0 : index
      %c0_10 = arith.constant 0 : index
      %13 = vector.load %arg11[%c0_9, %c0_10] : memref<2x1024xf32, #tpu.memory_space<vmem>>, vector<2x1024xf32>
      %c0_11 = arith.constant 0 : index
      %c0_12 = arith.constant 0 : index
      %14 = vector.load %arg3[%c0_11, %c0_12] : memref<1x1024xf32, #tpu.memory_space<vmem>>, vector<1x1024xf32>
      %15 = vector.broadcast %14 : vector<1x1024xf32> to vector<2x1024xf32>
      %16 = arith.addf %13, %15 : vector<2x1024xf32>
      %17 = arith.truncf %16 : vector<2x1024xf32> to vector<2x1024xbf16>
      %c0_13 = arith.constant 0 : index
      %c0_14 = arith.constant 0 : index
      %18 = vector.load %arg5[%c0_13, %c0_14] : memref<1024x512xbf16, #tpu.memory_space<vmem>>, vector<1024x512xbf16>
      %cst_15 = arith.constant dense<0.000000e+00> : vector<2x512xf32>
      %19 = tpu.matmul %17, %18, %cst_15 {dimension_numbers = #tpu.dot_dimension_numbers<[1], [0], [0], [1], [0, 0, 1, 1], [], []>} : vector<2x1024xbf16>, vector<1024x512xbf16>, vector<2x512xf32> -> vector<2x512xf32>
      %c0_16 = arith.constant 0 : index
      %c0_17 = arith.constant 0 : index
      %20 = vector.load %arg4[%c0_16, %c0_17] : memref<2x8xf32, #tpu.memory_space<vmem>>, vector<2x8xf32>
      %21 = arith.truncf %20 : vector<2x8xf32> to vector<2x8xbf16>
      %c0_18 = arith.constant 0 : index
      %c0_19 = arith.constant 0 : index
      %22 = vector.load %arg6[%c0_18, %c0_19] : memref<8x512xbf16, #tpu.memory_space<vmem>>, vector<8x512xbf16>
      %cst_20 = arith.constant dense<0.000000e+00> : vector<2x512xf32>
      %23 = tpu.matmul %21, %22, %cst_20 {dimension_numbers = #tpu.dot_dimension_numbers<[1], [0], [0], [1], [0, 0, 1, 1], [], []>} : vector<2x8xbf16>, vector<8x512xbf16>, vector<2x512xf32> -> vector<2x512xf32>
      %24 = arith.addf %19, %23 : vector<2x512xf32>
      %c0_21 = arith.constant 0 : index
      %c0_22 = arith.constant 0 : index
      %25 = vector.load %arg7[%c0_21, %c0_22] : memref<1x512xf32, #tpu.memory_space<vmem>>, vector<1x512xf32>
      %26 = vector.broadcast %25 : vector<1x512xf32> to vector<2x512xf32>
      %27 = arith.addf %24, %26 : vector<2x512xf32>
      %cst_23 = arith.constant 0.000000e+00 : f32
      %28 = vector.broadcast %cst_23 : f32 to vector<2x512xf32>
      %29 = arith.maximumf %27, %28 : vector<2x512xf32>
      %30 = arith.truncf %29 : vector<2x512xf32> to vector<2x512xbf16>
      %c0_24 = arith.constant 0 : index
      %c0_25 = arith.constant 0 : index
      %31 = vector.load %arg8[%c0_24, %c0_25] : memref<512x128xbf16, #tpu.memory_space<vmem>>, vector<512x128xbf16>
      %cst_26 = arith.constant dense<0.000000e+00> : vector<2x128xf32>
      %32 = tpu.matmul %30, %31, %cst_26 {dimension_numbers = #tpu.dot_dimension_numbers<[1], [0], [0], [1], [0, 0, 1, 1], [], []>} : vector<2x512xbf16>, vector<512x128xbf16>, vector<2x128xf32> -> vector<2x128xf32>
      %c0_27 = arith.constant 0 : index
      %c0_28 = arith.constant 0 : index
      %33 = vector.load %arg9[%c0_27, %c0_28] : memref<1x128xf32, #tpu.memory_space<vmem>>, vector<1x128xf32>
      %34 = vector.broadcast %33 : vector<1x128xf32> to vector<2x128xf32>
      %35 = arith.addf %32, %34 : vector<2x128xf32>
      %c0_29 = arith.constant 0 : index
      %c0_30 = arith.constant 0 : index
      %36 = vector.load %arg10[%c0_29, %c0_30] : memref<2x128xf32, #tpu.memory_space<vmem>>, vector<2x128xf32>
      tpu.vector_store %arg10[%c0_29, %c0_30], %35 {strides = array<i32>} : memref<2x128xf32, #tpu.memory_space<vmem>>, vector<2x128xf32>,
    } else {
    }
    return
  }
  func.func @transform_0(%arg0: i32) -> (i32, i32) {
    %c0_i32 = arith.constant 0 : i32
    %c0_i32_0 = arith.constant 0 : i32
    return %c0_i32, %arg0 : i32, i32
  }
  func.func @transform_1(%arg0: i32) -> (i32, i32) {
    %c0_i32 = arith.constant 0 : i32
    %c0_i32_0 = arith.constant 0 : i32
    return %arg0, %c0_i32 : i32, i32
  }
  func.func @transform_2(%arg0: i32) -> (i32, i32) {
    %c0_i32 = arith.constant 0 : i32
    %c0_i32_0 = arith.constant 0 : i32
    %c0_i32_1 = arith.constant 0 : i32
    return %c0_i32, %c0_i32_0 : i32, i32
  }
  func.func @transform_3(%arg0: i32) -> (i32, i32) {
    %c0_i32 = arith.constant 0 : i32
    %c0_i32_0 = arith.constant 0 : i32
    %c0_i32_1 = arith.constant 0 : i32
    return %c0_i32, %c0_i32_0 : i32, i32
  }
  func.func @transform_4(%arg0: i32) -> (i32, i32) {
    %c0_i32 = arith.constant 0 : i32
    %c0_i32_0 = arith.constant 0 : i32
    %c0_i32_1 = arith.constant 0 : i32
    return %c0_i32, %c0_i32_0 : i32, i32
  }
  func.func @transform_5(%arg0: i32) -> (i32, i32) {
    %c0_i32 = arith.constant 0 : i32
    %c0_i32_0 = arith.constant 0 : i32
    %c0_i32_1 = arith.constant 0 : i32
    return %c0_i32, %c0_i32_0 : i32, i32
  }
  func.func @transform_6(%arg0: i32) -> (i32, i32) {
    %c0_i32 = arith.constant 0 : i32
    %c0_i32_0 = arith.constant 0 : i32
    %c0_i32_1 = arith.constant 0 : i32
    return %c0_i32, %c0_i32_0 : i32, i32
  }
  func.func @transform_7(%arg0: i32) -> (i32, i32) {
    %c0_i32 = arith.constant 0 : i32
    %c0_i32_0 = arith.constant 0 : i32
    %c0_i32_1 = arith.constant 0 : i32
    return %c0_i32, %c0_i32_0 : i32, i32
  }
  func.func @transform_8(%arg0: i32) -> (i32, i32) {
    %c0_i32 = arith.constant 0 : i32
    %c0_i32_0 = arith.constant 0 : i32
    %c0_i32_1 = arith.constant 0 : i32
    return %c0_i32, %c0_i32_0 : i32, i32
  }
  func.func @transform_9(%arg0: i32) -> (i32, i32) {
    %c0_i32 = arith.constant 0 : i32
    %c0_i32_0 = arith.constant 0 : i32
    %c0_i32_1 = arith.constant 0 : i32
    return %c0_i32, %c0_i32_0 : i32, i32
  }
}

</mosaic_0001>

<bundles_post_ra>
// kernel: model_forward.1
= control target key start
LH: loop header
LB: loop body
LE: loop exit
PB: predicated region body
PF: predicated region fallthrough
CT: control target
= control target key end

     0   :  { %s7317_s0 = inlined_call_operand.vmem [shape: f32[2,1024], index: 0, kind: input, shape index: {}]   ;;  %s7318_s1 = inlined_call_operand.hbm [shape: bf16[1024,1024], index: 1, kind: input, shape index: {}]   ;;  %s7319_s2 = inlined_call_operand.hbm [shape: f32[1,1024], index: 2, kind: input, shape index: {}]   ;;  %s7320_s3 = inlined_call_operand.hbm [shape: f32[2,8], index: 3, kind: input, shape index: {}]   ;;  %s7321_s4 = inlined_call_operand.hbm [shape: bf16[1024,512], index: 4, kind: input, shape index: {}]   ;;  %s7322_s5 = inlined_call_operand.hbm [shape: bf16[8,512], index: 5, kind: input, shape index: {}]   ;;  %s7323_s6 = inlined_call_operand.hbm [shape: f32[1,512], index: 6, kind: input, shape index: {}]   ;;  %s7324_s7 = inlined_call_operand.hbm [shape: bf16[512,128], index: 7, kind: input, shape index: {}]   ;;  %s7325_s8 = inlined_call_operand.hbm [shape: f32[1,128], index: 8, kind: input, shape index: {}]   ;;  %s7326_s9 = inlined_call_operand.hbm [shape: f32[2,128], index: 9, kind: output, shape index: {}]  }
   0x1   :  { %7329 = sst [smem:[#allocation24_spill]] %s7319_s2 }
   0x2   :  { %14 = vsyncpa [#allocation4], 0 }
   0x3   :  { %16 = vsyncpa [#allocation4 + $0x1], 0 }
   0x4   :  { %17 = vsyncpa [#allocation7], 0 }
   0x5   :  { %18 = vsyncpa [#allocation10], 0 }
   0x6   :  { %19 = vsyncpa [#allocation13], 0 }
   0x7   :  { %20 = vsyncpa [#allocation16], 0 }
   0x8   :  { %21 = vsyncpa [#allocation5], 0  ;;  %s6593_s30 = smov 0   ;;  %s6595_s10 = smov 0  }
   0x9   :  { %s6597_s11 = smov 0   ;;  %s6599_s12 = smov 0  }
   0xa LB: > { %s6525_s13 = smov [#allocation6]   ;;  %s6614_s15 = sadd.s32 4294967295, %s6523_s12   ;;  %s6523_s12 = sphi %s6599_s12, %s7350_s12   ;;  %s6519_s11 = sphi %s6597_s11, %s7349_s11   ;;  %s6515_s10 = sphi %s6595_s10, %s7348_s10   ;;  %s6511_s30 = sphi %s6593_s30, %s7347_s30  }
   0xb   : > { %s265_s14 = sshll.u32 %s6525_s13, 4  ;;  %p5025_p0 = scmp.ge.s32.totalorder %s6523_s12, 1  ;;  %s266_s14 = int_to_ptr.vmem [resolvable:$true] %s265_s14 }
   0xc   : > { %p7327_p1 = scmp.eq.s32.totalorder %s6614_s15, 0  ;;  %p252_p2 = scmp.lt.s32.totalorder %s6523_s12, 3 }
   0xd   : > { %s6526_s17 = smov [#allocation9]   ;;  %s6527_s20 = smov [#allocation12]  }
   0xe   : > { %p6620_p4 = pnand %p5025_p0, %p252_p2  ;;  %s286_s18 = sshll.u32 %s6526_s17, 4  ;;  %s6626_s18 = int_to_ptr.vmem [resolvable:$true] %s286_s18 }
   0xf   : > { %s311_s21 = sshll.u32 %s6527_s20, 4  ;;  %s7332_s2 = sld [smem:[#allocation24_spill]]  ;;  %s6634_s21 = int_to_ptr.vmem [resolvable:$true] %s311_s21 }
  0x10   : > { %s7330_s16 = scalar_select %p6620_p4, 1, 0 }
  0x11   : > { %p5704_p5 = pneg %p6620_p4 }
  0x13   : > { %p6630_p6 = pnand %p5704_p5, %p7327_p1 }
  0x15   : > { %s6217_s24 = scalar_lea.hbm %s7332_s2, 128  ;;  %p6644_p8 = pneg %p6630_p6 }
  0x16   : > { %p6218_p7 = scmp.ne.s32.totalorder %s7332_s2, %s6217_s24  ;;  %p6224_p11 = scmp.lt.u32.totalorder %s6217_s24, %s7332_s2 }
  0x18   : > { %p6220_p9 = pnand %p6644_p8, %p6218_p7 }
  0x1a   : > { %p6221_p10 = pneg %p6220_p9 }
  0x1c   : > { %p6226_p12 = pnand %p6224_p11, %p6221_p10 }
  0x1e   : > { %6229 = shalt.err (!%p6226_p12)
}
  0x1f   : > { %s6230_s13 = scalar_lea.vmem %s266_s14, 128  ;;  %p6238_p5 = scmp.lt.s32.totalorder %s266_s14, %s266_s14 }
  0x20   : > { %p6231_p13 = scmp.ne.s32.totalorder %s266_s14, %s6230_s13  ;;  %p6239_p3 = scmp.lt.s32.totalorder %s6230_s13, %s6230_s13 }
  0x22   : > { %p6233_p0 = pnand %p6231_p13, %p6644_p8  ;;  %p6240_p1 = por %p6239_p3, %p6238_p5 }
  0x24   : > { %p6234_p2 = pneg %p6233_p0 }
  0x26   : > { %p6241_p4 = pnand %p6240_p1, %p6234_p2 }
  0x28   : > { %6244 = shalt.err (!%p6241_p4)
}
  0x29   : > { %5707 = dma.hbm_to_vmem [thread:$0]  (!%p6630_p6), %s7332_s2, 128, %s266_s14, [#allocation7]  }
  0x2a   : > { %s6245_s24 = scalar_lea.hbm %s7321_s4, 32768 }
  0x2b   : > { %p6246_p7 = scmp.ne.s32.totalorder %s7321_s4, %s6245_s24  ;;  %p6252_p1 = scmp.lt.u32.totalorder %s6245_s24, %s7321_s4 }
  0x2d   : > { %p6248_p9 = pnand %p6246_p7, %p6644_p8 }
  0x2f   : > { %p6249_p3 = pneg %p6248_p9 }
  0x31   : > { %p6254_p4 = pnand %p6252_p1, %p6249_p3 }
  0x33   : > { %6257 = shalt.err (!%p6254_p4)
}
  0x34   : > { %s6258_s14 = scalar_lea.vmem %s6626_s18, 32768  ;;  %p6266_p13 = scmp.lt.s32.totalorder %s6626_s18, %s6626_s18 }
  0x35   : > { %p6259_p10 = scmp.ne.s32.totalorder %s6626_s18, %s6258_s14  ;;  %p6267_p0 = scmp.lt.s32.totalorder %s6258_s14, %s6258_s14 }
  0x37   : > { %p6261_p11 = pnand %p6259_p10, %p6644_p8  ;;  %p6268_p2 = por %p6267_p0, %p6266_p13 }
  0x39   : > { %p6262_p12 = pneg %p6261_p11 }
  0x3b   : > { %p6269_p5 = pnand %p6268_p2, %p6262_p12 }
  0x3d   : > { %6272 = shalt.err (!%p6269_p5)
}
  0x3e   : > { %s6528_s13 = smov 256   ;;  %s6529_s17 = smov 16  }
  0x3f   : > { %5713 = dma.hbm_to_vmem [thread:$0]  (!%p6630_p6), %s7321_s4, 32768, %s6626_s18, [#allocation10], %s6528_s13, %s6528_s13, %s6529_s17  }
  0x40   : > { %s6273_s25 = scalar_lea.hbm %s7323_s6, 64 }
  0x41   : > { %p6274_p7 = scmp.ne.s32.totalorder %s7323_s6, %s6273_s25  ;;  %p6280_p1 = scmp.lt.u32.totalorder %s6273_s25, %s7323_s6 }
  0x43   : > { %p6276_p9 = pnand %p6274_p7, %p6644_p8 }
  0x45   : > { %p6277_p3 = pneg %p6276_p9 }
  0x47   : > { %p6282_p4 = pnand %p6280_p1, %p6277_p3 }
  0x49   : > { %6285 = shalt.err (!%p6282_p4)
}
  0x4a   : > { %s6286_s18 = scalar_lea.vmem %s6634_s21, 64  ;;  %p6294_p13 = scmp.lt.s32.totalorder %s6634_s21, %s6634_s21 }
  0x4b   : > { %p6287_p10 = scmp.ne.s32.totalorder %s6634_s21, %s6286_s18  ;;  %p6295_p0 = scmp.lt.s32.totalorder %s6286_s18, %s6286_s18 }
  0x4d   : > { %p6289_p11 = pnand %p6287_p10, %p6644_p8  ;;  %p6296_p2 = por %p6295_p0, %p6294_p13 }
  0x4f   : > { %p6290_p12 = pneg %p6289_p11 }
  0x51   : > { %p6297_p5 = pnand %p6296_p2, %p6290_p12 }
  0x53   : > { %6300 = shalt.err (!%p6297_p5)
}
  0x54   : > { %5719 = dma.hbm_to_vmem [thread:$0]  (!%p6630_p6), %s7323_s6, 64, %s6634_s21, [#allocation13]  }
  0x55   : > { %s6530_s20 = smov [#allocation8]   ;;  %s6531_s23 = smov [#allocation11]  }
  0x56   : > { %s276_s22 = sshll.u32 %s6530_s20, 4  ;;  %s300_s24 = sshll.u32 %s6531_s23, 4  ;;  %s277_s22 = int_to_ptr.vmem [resolvable:$true] %s276_s22  ;;  %s301_s24 = int_to_ptr.vmem [resolvable:$true] %s300_s24 }
  0x57   : > { %s6301_s28 = scalar_lea.hbm %s7320_s3, 32 }
  0x58   : > { %p6302_p7 = scmp.ne.s32.totalorder %s7320_s3, %s6301_s28  ;;  %p6308_p1 = scmp.lt.u32.totalorder %s6301_s28, %s7320_s3 }
  0x5a   : > { %p6304_p9 = pnand %p6302_p7, %p6644_p8 }
  0x5c   : > { %p6305_p3 = pneg %p6304_p9 }
  0x5e   : > { %p6310_p4 = pnand %p6308_p1, %p6305_p3 }
  0x60   : > { %6313 = shalt.err (!%p6310_p4)
}
  0x61   : > { %s6314_s21 = scalar_lea.vmem %s277_s22, 32  ;;  %p6322_p13 = scmp.lt.s32.totalorder %s277_s22, %s277_s22 }
  0x62   : > { %p6315_p10 = scmp.ne.s32.totalorder %s277_s22, %s6314_s21  ;;  %p6323_p0 = scmp.lt.s32.totalorder %s6314_s21, %s6314_s21 }
  0x64   : > { %p6317_p11 = pnand %p6315_p10, %p6644_p8  ;;  %p6324_p2 = por %p6323_p0, %p6322_p13 }
  0x66   : > { %p6318_p12 = pneg %p6317_p11 }
  0x68   : > { %p6325_p5 = pnand %p6324_p2, %p6318_p12 }
  0x6a   : > { %6328 = shalt.err (!%p6325_p5)
}
  0x6b   : > { %5710 = dma.hbm_to_vmem [thread:$0]  (!%p6630_p6), %s7320_s3, 32, %s277_s22, [#allocation7]  }
  0x6c   : > { %s6329_s26 = scalar_lea.hbm %s7322_s5, 256 }
  0x6d   : > { %p6330_p7 = scmp.ne.s32.totalorder %s7322_s5, %s6329_s26  ;;  %p6336_p1 = scmp.lt.u32.totalorder %s6329_s26, %s7322_s5 }
  0x6f   : > { %p6332_p9 = pnand %p6330_p7, %p6644_p8 }
  0x71   : > { %p6333_p3 = pneg %p6332_p9 }
  0x73   : > { %p6338_p4 = pnand %p6336_p1, %p6333_p3 }
  0x75   : > { %6341 = shalt.err (!%p6338_p4)
}
  0x76   : > { %s6342_s13 = scalar_lea.vmem %s301_s24, 256  ;;  %p6350_p13 = scmp.lt.s32.totalorder %s301_s24, %s301_s24 }
  0x77   : > { %p6343_p10 = scmp.ne.s32.totalorder %s301_s24, %s6342_s13  ;;  %p6351_p0 = scmp.lt.s32.totalorder %s6342_s13, %s6342_s13 }
  0x79   : > { %p6345_p11 = pnand %p6343_p10, %p6644_p8  ;;  %p6352_p2 = por %p6351_p0, %p6350_p13 }
  0x7b   : > { %p6346_p12 = pneg %p6345_p11 }
  0x7d   : > { %p6353_p5 = pnand %p6352_p2, %p6346_p12 }
  0x7f   : > { %6356 = shalt.err (!%p6353_p5)
}
  0x80   : > { %5716 = dma.hbm_to_vmem [thread:$0]  (!%p6630_p6), %s7322_s5, 256, %s301_s24, [#allocation10]  }
  0x81   : > { %s6532_s17 = smov [#allocation14]   ;;  %s6357_s26 = scalar_lea.hbm %s7324_s7, 4096 }
  0x82   : > { %s321_s20 = sshll.u32 %s6532_s17, 4  ;;  %p6358_p7 = scmp.ne.s32.totalorder %s7324_s7, %s6357_s26  ;;  %s322_s20 = int_to_ptr.vmem [resolvable:$true] %s321_s20 }
  0x83   : > { %p6364_p1 = scmp.lt.u32.totalorder %s6357_s26, %s7324_s7 }
  0x84   : > { %p6360_p9 = pnand %p6358_p7, %p6644_p8 }
  0x86   : > { %p6361_p3 = pneg %p6360_p9 }
  0x88   : > { %p6366_p4 = pnand %p6364_p1, %p6361_p3 }
  0x8a   : > { %6369 = shalt.err (!%p6366_p4)
}
  0x8b   : > { %s6370_s24 = scalar_lea.vmem %s322_s20, 4096  ;;  %p6378_p13 = scmp.lt.s32.totalorder %s322_s20, %s322_s20 }
  0x8c   : > { %p6371_p10 = scmp.ne.s32.totalorder %s322_s20, %s6370_s24  ;;  %p6379_p0 = scmp.lt.s32.totalorder %s6370_s24, %s6370_s24 }
  0x8e   : > { %p6373_p11 = pnand %p6371_p10, %p6644_p8  ;;  %p6380_p2 = por %p6379_p0, %p6378_p13 }
  0x90   : > { %p6374_p12 = pneg %p6373_p11 }
  0x92   : > { %p6381_p5 = pnand %p6380_p2, %p6374_p12 }
  0x94   : > { %6384 = shalt.err (!%p6381_p5)
}
  0x95   : > { %s6533_s13 = smov 64   ;;  %s6534_s22 = smov 4  }
  0x96   : > { %5722 = dma.hbm_to_vmem [thread:$0]  (!%p6630_p6), %s7324_s7, 4096, %s322_s20, [#allocation13], %s6533_s13, %s6533_s13, %s6534_s22  }
  0x97   : > { %s6535_s23 = smov [#allocation15]   ;;  %s6385_s29 = scalar_lea.hbm %s7325_s8, 16 }
  0x98   : > { %s335_s25 = sshll.u32 %s6535_s23, 4  ;;  %p6386_p7 = scmp.ne.s32.totalorder %s7325_s8, %s6385_s29  ;;  %s336_s25 = int_to_ptr.vmem [resolvable:$true] %s335_s25 }
  0x99   : > { %p6392_p1 = scmp.lt.u32.totalorder %s6385_s29, %s7325_s8 }
  0x9a   : > { %p6388_p9 = pnand %p6386_p7, %p6644_p8 }
  0x9c   : > { %p6389_p3 = pneg %p6388_p9 }
  0x9e   : > { %p6394_p4 = pnand %p6392_p1, %p6389_p3 }
  0xa0   : > { %6397 = shalt.err (!%p6394_p4)
}
  0xa1   : > { %s6398_s20 = scalar_lea.vmem %s336_s25, 16  ;;  %s6405_s13 = scalar_lea.vmem %s336_s25, 32 }
  0xa2   : > { %p6399_p10 = scmp.ne.s32.totalorder %s336_s25, %s6398_s20  ;;  %p6406_p13 = scmp.lt.s32.totalorder %s336_s25, %s336_s25 }
  0xa3   : > { %p6407_p0 = scmp.lt.s32.totalorder %s6405_s13, %s6398_s20 }
  0xa4   : > { %p6401_p11 = pnand %p6399_p10, %p6644_p8 }
  0xa5   : > { %p6408_p2 = por %p6407_p0, %p6406_p13 }
  0xa6   : > { %p6402_p12 = pneg %p6401_p11 }
  0xa8   : > { %p6409_p5 = pnand %p6408_p2, %p6402_p12 }
  0xaa   : > { %6412 = shalt.err (!%p6409_p5)
}
  0xab   : > { %5725 = dma.hbm_to_vmem [thread:$0]  (!%p6630_p6), %s7325_s8, 16, %s336_s25, [#allocation16]  }
  0xac   : > { %s6779_s2 = sadd.s32 1, %s6523_s12   ;;  %s60_s27 = sadd.s32 1, %s6519_s11 }
  0xad   : > { %s57_s19 = ssub.s32 %s6523_s12, %s6779_s2  ;;  %p67_p7 = scmp.ne.s32.totalorder %s6519_s11, %s6515_s10 }
  0xae   : > { %p58_p8 = scmp.eq.s32.totalorder %s57_s19, 0  ;;  %p68_p9 = scmp.eq.s32.totalorder %s6523_s12, 0 }
  0xaf   : > { %p73_p3 = scmp.ne.s32.totalorder %s6515_s10, %s6511_s30  ;;  %p7334_p4 = scmp.eq.s32.totalorder %s6614_s15, 0 }
  0xb0   : > { %s6790_s17 = scalar_select %p58_p8, %s6519_s11, %s60_s27  }
  0xb1   : > { %p69_p1 = por %p68_p9, %p67_p7  ;;  %p6794_p10 = por %p7334_p4, %p73_p3 }
  0xb2   : > { %p5737_p11 = scmp.lt.s32.totalorder %s6523_s12, 2  ;;  %s355_s26 = sand.u32 1, %s6519_s11  }
  0xb3   : > { %s5034_s25 = sshll.u32 %s355_s26, 11  ;;  %s5609_s28 = sshll.u32 %s6523_s12, 15 }
  0xb4   : > { %s6804_s18 = scalar_lea.hbm %s7318_s1, %s5609_s28  ;;  %s359_s30 = scalar_lea.vmem [#allocation3], %s5034_s25 }
  0xb5   : > { %s367_s24 = sshll.u32 %s359_s30, 4  ;;  %p6808_p6 = pnand %p5737_p11, %p69_p1  ;;  %s6806_s24 = int_to_ptr.vmem [resolvable:$true] %s367_s24 }
  0xb6   : > { %s6812_s12 = scalar_lea.sflag [#allocation4], %s355_s26  ;;  %s6413_s13 = scalar_lea.hbm %s6804_s18, 32768 }
  0xb7   : > { %p6414_p12 = scmp.ne.s32.totalorder %s6804_s18, %s6413_s13  ;;  %p6415_p13 = pneg %p6808_p6 }
  0xb8   : > { %s6418_s19 = scalar_lea.hbm %s7318_s1, 65536  ;;  %p6419_p5 = scmp.lt.u32.totalorder %s6804_s18, %s7318_s1 }
  0xb9   : > { %p6416_p0 = pnand %p6415_p13, %p6414_p12  ;;  %p6420_p8 = scmp.lt.u32.totalorder %s6418_s19, %s6413_s13 }
  0xba   : > { %p6422_p9 = scmp.lt.u32.totalorder %s6413_s13, %s6804_s18 }
  0xbb   : > { %p6417_p2 = pneg %p6416_p0  ;;  %p6421_p7 = por %p6420_p8, %p6419_p5 }
  0xbd   : > { %p6423_p3 = por %p6422_p9, %p6421_p7 }
  0xbf   : > { %p6424_p1 = pnand %p6423_p3, %p6417_p2 }
  0xc1   : > { %6427 = shalt.err (!%p6424_p1)
}
  0xc2   : > { %s6428_s26 = scalar_lea.vmem %s6806_s24, 32768  ;;  %s6536_s28 = smov [#allocation3]  }
  0xc3   : > { %p6429_p4 = scmp.ne.s32.totalorder %s6806_s24, %s6428_s26  ;;  %s6433_s29 = sshll.u32 %s6536_s28, 4  ;;  %s6434_s29 = int_to_ptr.vmem [resolvable:$false] %s6433_s29 }
  0xc4   : > { %s6435_s14 = scalar_lea.vmem %s6434_s29, 65536  ;;  %p6436_p0 = scmp.lt.s32.totalorder %s6806_s24, %s6434_s29 }
  0xc5   : > { %p6431_p11 = pnand %p6429_p4, %p6415_p13  ;;  %p6437_p5 = scmp.lt.s32.totalorder %s6435_s14, %s6428_s26 }
  0xc7   : > { %p6432_p12 = pneg %p6431_p11  ;;  %p6438_p8 = por %p6437_p5, %p6436_p0 }
  0xc9   : > { %p6439_p7 = pnand %p6438_p8, %p6432_p12 }
  0xcb   : > { %6442 = shalt.err (!%p6439_p7)
}
  0xcc   : > { %s6537_s30 = smov 512   ;;  %s6538_s13 = smov 32  }
  0xcd   : > { %5729 = dma.hbm_to_vmem [thread:$0]  (!%p6808_p6), %s6804_s18, 32768, %s6806_s24, %s6812_s12, %s6537_s30, %s6537_s30, %s6538_s13  }
  0xce   : > { %p7337_p13 = scmp.ne.s32.totalorder %s7330_s16, 0 }
  0xcf   : > { %s381_s22 = sand.u32 (!%p7337_p13), 1, %s6515_s10  }
  0xd0   : > { %379 = sbr.rel (%p7337_p13) target bundleno = 1398 (0x576), region = 56  ;;  %s5039_s21 = sshll.u32 (!%p7337_p13), %s381_s22, 11 }
  0xd1   : > { %s382_s19 = scalar_lea.sflag (!%p7337_p13), [#allocation4], %s381_s22  ;;  %s6843_s27 = scalar_lea.vmem (!%p7337_p13), [#allocation3], %s5039_s21 }
  0xd7   : > { %6486 = dma.done.wait (%p6794_p10), %s382_s19, 32768  }
  0xd8   : > { %6488 = vsyncadd (%p6794_p10), %s382_s19, 4294934528  ;;  %p7338_p2 = scmp.eq.s32.totalorder %s6614_s15, 0 }
  0xda   : > { %6490 = dma.done.wait (%p7338_p2), [#allocation7], 160   ;;  %p7339_p6 = pmov %p7338_p2 }
  0xdb   : > { %p7340_p9 = pmov %p7338_p2 }
  0xdc   : > { %6492 = vsyncadd (%p7339_p6), [#allocation7], 4294967136 }
  0xdd   : > { %6494 = dma.done.wait (%p7340_p9), [#allocation10], 33024   ;;  %p7341_p3 = pmov %p7338_p2 }
  0xde   : > { %p7342_p1 = pmov %p7338_p2 }
  0xdf   : > { %6496 = vsyncadd (%p7341_p3), [#allocation10], 4294934272 }
  0xe0   : > { %6498 = dma.done.wait (%p7342_p1), [#allocation13], 4160   ;;  %p7343_p4 = pmov %p7342_p1 }
  0xe1   : > { %p7344_p10 = pmov %p7342_p1 }
  0xe2   : > { %6500 = vsyncadd (%p7343_p4), [#allocation13], 4294963136 }
  0xe3   : > { %6502 = dma.done.wait (%p7344_p10), [#allocation16], 16   ;;  %p7345_p11 = pmov %p7342_p1 }
  0xe4   : > { %s5047_s16 = sshll.u32 %s6614_s15, 2  ;;  %p7346_p0 = scmp.ne.s32.totalorder %s6614_s15, 0 }
  0xe5   : > { %6504 = vsyncadd (%p7345_p11), [#allocation16], 4294967280  ;;  %p449_p12 = scmp.lt.s32.totalorder %s5047_s16, 7  ;;  %v6539_v0 = vmov (!%p7346_p0), 0.0  }
  0xe6   : > { %459 = sbr.rel (%p7346_p0) target bundleno = 237 (0xed), region = 92  ;;  %460 = vst [vmem:[#allocation2] sm:$0xff] (!%p7346_p0), %v6539_v0  ;;  %461 = vst [vmem:[#allocation2 + $0x8] sm:$0xff] (!%p7346_p0), %v6539_v0 }
  0xe7   : > { %s7352_s16 = smov (!%p449_p12, %s5047_s16), 7 }
  0xe8   : > { %s5048_s23 = sshll.u32 %s7352_s16, 1 }
  0xe9   : > { %s6869_s20 = scalar_lea.vmem %s7317_s0, %s5048_s23 }
  0xed PF: > { %v491_v1 = vld [vmem:[%s6843_s27] sm:$0xff]  ;;  %v492_v3 = vld [vmem:[%s6843_s27 + $0x8] sm:$0xff]  ;;  %v6540_v33 = vmov 1983009808   ;;  %v470_v35 = vlaneseq  ;;  %v6907_v60 = vld [vmem:[%s6869_s20] sm:$0xff]  ;;  %p5306_p5 = scmp.ne.s32.totalorder %s6614_s15, 1 }
  0xee   : > { %v495_v2 = vld [vmem:[%s6843_s27 + $0x20] sm:$0xff]  ;;  %v496_v5 = vld [vmem:[%s6843_s27 + $0x28] sm:$0xff]  ;;  %v468_v34 = vunpack.c.l.s4 %v6540_v33  ;;  %vm2807_vm0 = vcmask (!%p5306_p5), 1043456   ;;  %vm2803_vm1 = vcmask (!%p5306_p5), 64512  }
  0xef   : > { %v5051_v4 = vcombine.high %v491_v1, %v495_v2  ;;  %v5050_v6 = vcombine.low %v491_v1, %v495_v2  ;;  %v499_v7 = vld [vmem:[%s6843_s27 + $0x40] sm:$0xff]  ;;  %v5053_v9 = vcombine.high %v492_v3, %v496_v5  ;;  %v5052_v10 = vcombine.low %v492_v3, %v496_v5  ;;  %v500_v12 = vld [vmem:[%s6843_s27 + $0x48] sm:$0xff] }
  0xf0   : > { %v503_v8 = vld [vmem:[%s6843_s27 + $0x60] sm:$0xff]  ;;  %v504_v13 = vld [vmem:[%s6843_s27 + $0x68] sm:$0xff]  ;;  %v469_v44 = vunpack.c.0.s8 %v468_v34  ;;  %v6895_v45 = vshrl.u32 %v470_v35, 7 }
  0xf1   : > { %v5059_v11 = vcombine.high %v499_v7, %v503_v8  ;;  %v507_v14 = vld [vmem:[%s6843_s27 + $0x80] sm:$0xff]  ;;  %2027 = vmatprep.subr.bf16.mxu0 %v5051_v4  ;;  %v5061_v15 = vcombine.high %v500_v12, %v504_v13  ;;  %v508_v17 = vld [vmem:[%s6843_s27 + $0x88] sm:$0xff]  ;;  %2109 = vmatprep.subr.bf16.mxu1 %v5053_v9  ;;  %v5058_v19 = vcombine.low %v499_v7, %v503_v8 }
  0xf2   : > { %v511_v16 = vld [vmem:[%s6843_s27 + $0xa0] sm:$0xff]  ;;  %v512_v18 = vld [vmem:[%s6843_s27 + $0xa8] sm:$0xff]  ;;  %2028 = vmatpush1.bf16.msra.mxu0 %v5050_v6  ;;  %2110 = vmatpush1.bf16.msra.mxu1 %v5052_v10  ;;  %v5060_v20 = vcombine.low %v500_v12, %v504_v13  ;;  %v6902_v54 = vsub.s32 %v469_v44, %v6895_v45 }
  0xf3   : > { %2029 = vmatprep.subr.bf16.mxu0 %v5059_v11  ;;  %v5067_v21 = vcombine.high %v507_v14, %v511_v16  ;;  %2111 = vmatprep.subr.bf16.mxu1 %v5061_v15  ;;  %v5069_v22 = vcombine.high %v508_v17, %v512_v18  ;;  %v515_v23 = vld [vmem:[%s6843_s27 + $0xc0] sm:$0xff]  ;;  %v516_v25 = vld [vmem:[%s6843_s27 + $0xc8] sm:$0xff]  ;;  %v5066_v27 = vcombine.low %v507_v14, %v511_v16 }
  0xf4   : > { %v519_v24 = vld [vmem:[%s6843_s27 + $0xe0] sm:$0xff]  ;;  %v520_v26 = vld [vmem:[%s6843_s27 + $0xe8] sm:$0xff]  ;;  %v5068_v28 = vcombine.low %v508_v17, %v512_v18  ;;  %v6913_v0 = vrot.slane %v6907_v60, %v6902_v54 }
  0xf5   : > { %v5075_v29 = vcombine.high %v515_v23, %v519_v24  ;;  %v5077_v30 = vcombine.high %v516_v25, %v520_v26  ;;  %v523_v31 = vld [vmem:[%s6843_s27 + $0x100] sm:$0xff]  ;;  %v524_v36 = vld [vmem:[%s6843_s27 + $0x108] sm:$0xff]  ;;  %v5074_v38 = vcombine.low %v515_v23, %v519_v24  ;;  %v5076_v39 = vcombine.low %v516_v25, %v520_v26 }
  0xf6   : > { %2030 = vmatpush1.bf16.msra.mxu0 %v5058_v19  ;;  %2112 = vmatpush1.bf16.msra.mxu1 %v5060_v20  ;;  %v527_v32 = vld [vmem:[%s6843_s27 + $0x120] sm:$0xff]  ;;  %v528_v37 = vld [vmem:[%s6843_s27 + $0x128] sm:$0xff]  ;;  %v481_v4 = vcombine.high %v6913_v0, %v6913_v0 }
  0xf7   : > { %2031 = vmatprep.subr.bf16.mxu0 %v5067_v21  ;;  %2113 = vmatprep.subr.bf16.mxu1 %v5069_v22  ;;  %v5083_v40 = vcombine.high %v523_v31, %v527_v32  ;;  %v5085_v41 = vcombine.high %v524_v36, %v528_v37  ;;  %v531_v42 = vld [vmem:[%s6843_s27 + $0x140] sm:$0xff]  ;;  %v532_v46 = vld [vmem:[%s6843_s27 + $0x148] sm:$0xff]  ;;  %v5082_v48 = vcombine.low %v523_v31, %v527_v32 }
  0xf8   : > { %v535_v43 = vld [vmem:[%s6843_s27 + $0x160] sm:$0xff]  ;;  %v536_v47 = vld [vmem:[%s6843_s27 + $0x168] sm:$0xff]  ;;  %v5084_v49 = vcombine.low %v524_v36, %v528_v37  ;;  %v6921_v10 = vpack.c.bf16 %v481_v4, %v481_v4 }
  0xf9   : > { %v5091_v50 = vcombine.high %v531_v42, %v535_v43  ;;  %v5093_v51 = vcombine.high %v532_v46, %v536_v47  ;;  %v539_v52 = vld [vmem:[%s6843_s27 + $0x180] sm:$0xff]  ;;  %v540_v55 = vld [vmem:[%s6843_s27 + $0x188] sm:$0xff]  ;;  %v5090_v57 = vcombine.low %v531_v42, %v535_v43  ;;  %v5092_v58 = vcombine.low %v532_v46, %v536_v47 }
  0xfa   : > { %2032 = vmatpush1.bf16.msra.mxu0 %v5066_v27  ;;  %2114 = vmatpush1.bf16.msra.mxu1 %v5068_v28  ;;  %v543_v53 = vld [vmem:[%s6843_s27 + $0x1a0] sm:$0xff]  ;;  %v544_v56 = vld [vmem:[%s6843_s27 + $0x1a8] sm:$0xff] }
  0xfb   : > { %2033 = vmatprep.subr.bf16.mxu0 %v5075_v29  ;;  %2115 = vmatprep.subr.bf16.mxu1 %v5077_v30  ;;  %v5099_v59 = vcombine.high %v539_v52, %v543_v53  ;;  %v5101_v61 = vcombine.high %v540_v55, %v544_v56  ;;  %v547_v62 = vld [vmem:[%s6843_s27 + $0x1c0] sm:$0xff]  ;;  %v548_v1 = vld [vmem:[%s6843_s27 + $0x1c8] sm:$0xff]  ;;  %v5098_v3 = vcombine.low %v539_v52, %v543_v53 }
  0xfc   : > { %v551_v63 = vld [vmem:[%s6843_s27 + $0x1e0] sm:$0xff]  ;;  %v552_v2 = vld [vmem:[%s6843_s27 + $0x1e8] sm:$0xff]  ;;  %v5100_v5 = vcombine.low %v540_v55, %v544_v56  ;;  %2059 = vmatprep.mubr.bf16.mxu0 %v6921_v10  ;;  %2141 = vmatprep.mubr.bf16.mxu1 %v6921_v10 }
  0xfd   : > { %v5107_v6 = vcombine.high %v547_v62, %v551_v63  ;;  %v5109_v7 = vcombine.high %v548_v1, %v552_v2  ;;  %v555_v8 = vld [vmem:[%s6843_s27 + $0x200] sm:$0xff]  ;;  %v556_v11 = vld [vmem:[%s6843_s27 + $0x208] sm:$0xff]  ;;  %v5106_v13 = vcombine.low %v547_v62, %v551_v63  ;;  %v5108_v14 = vcombine.low %v548_v1, %v552_v2 }
  0xfe   : > { %2034 = vmatpush1.bf16.msra.mxu0 %v5074_v38  ;;  %2116 = vmatpush1.bf16.msra.mxu1 %v5076_v39  ;;  %v559_v9 = vld [vmem:[%s6843_s27 + $0x220] sm:$0xff]  ;;  %v560_v12 = vld [vmem:[%s6843_s27 + $0x228] sm:$0xff] }
  0xff   : > { %2035 = vmatprep.subr.bf16.mxu0 %v5083_v40  ;;  %2117 = vmatprep.subr.bf16.mxu1 %v5085_v41  ;;  %v5115_v15 = vcombine.high %v555_v8, %v559_v9  ;;  %v5117_v16 = vcombine.high %v556_v11, %v560_v12  ;;  %v563_v17 = vld [vmem:[%s6843_s27 + $0x240] sm:$0xff]  ;;  %v564_v19 = vld [vmem:[%s6843_s27 + $0x248] sm:$0xff]  ;;  %v5114_v21 = vcombine.low %v555_v8, %v559_v9 }
 0x100   : > { %v567_v18 = vld [vmem:[%s6843_s27 + $0x260] sm:$0xff]  ;;  %v568_v20 = vld [vmem:[%s6843_s27 + $0x268] sm:$0xff]  ;;  %v5116_v22 = vcombine.low %v556_v11, %v560_v12 }
 0x101   : > { %v5123_v23 = vcombine.high %v563_v17, %v567_v18  ;;  %v5125_v24 = vcombine.high %v564_v19, %v568_v20  ;;  %v571_v25 = vld [vmem:[%s6843_s27 + $0x280] sm:$0xff]  ;;  %v572_v27 = vld [vmem:[%s6843_s27 + $0x288] sm:$0xff]  ;;  %v5122_v29 = vcombine.low %v563_v17, %v567_v18  ;;  %v5124_v30 = vcombine.low %v564_v19, %v568_v20 }
 0x102   : > { %2036 = vmatpush1.bf16.msra.mxu0 %v5082_v48  ;;  %2118 = vmatpush1.bf16.msra.mxu1 %v5084_v49  ;;  %v575_v26 = vld [vmem:[%s6843_s27 + $0x2a0] sm:$0xff]  ;;  %v576_v28 = vld [vmem:[%s6843_s27 + $0x2a8] sm:$0xff] }
 0x103   : > { %2037 = vmatprep.subr.bf16.mxu0 %v5091_v50  ;;  %2119 = vmatprep.subr.bf16.mxu1 %v5093_v51  ;;  %v5131_v31 = vcombine.high %v571_v25, %v575_v26  ;;  %v5133_v32 = vcombine.high %v572_v27, %v576_v28  ;;  %v579_v33 = vld [vmem:[%s6843_s27 + $0x2c0] sm:$0xff]  ;;  %v580_v35 = vld [vmem:[%s6843_s27 + $0x2c8] sm:$0xff]  ;;  %v5130_v37 = vcombine.low %v571_v25, %v575_v26 }
 0x104   : > { %v583_v34 = vld [vmem:[%s6843_s27 + $0x2e0] sm:$0xff]  ;;  %v584_v36 = vld [vmem:[%s6843_s27 + $0x2e8] sm:$0xff]  ;;  %v5132_v38 = vcombine.low %v572_v27, %v576_v28  ;;  %v6970_v26 = vpack.c.bf16 %v6913_v0, %v6913_v0 }
 0x105   : > { %v5139_v39 = vcombine.high %v579_v33, %v583_v34  ;;  %v5141_v40 = vcombine.high %v580_v35, %v584_v36  ;;  %v587_v41 = vld [vmem:[%s6843_s27 + $0x300] sm:$0xff]  ;;  %v588_v43 = vld [vmem:[%s6843_s27 + $0x308] sm:$0xff]  ;;  %v5138_v46 = vcombine.low %v579_v33, %v583_v34  ;;  %v5140_v47 = vcombine.low %v580_v35, %v584_v36 }
 0x106   : > { %2038 = vmatpush1.bf16.msra.mxu0 %v5090_v57  ;;  %2120 = vmatpush1.bf16.msra.mxu1 %v5092_v58  ;;  %v591_v42 = vld [vmem:[%s6843_s27 + $0x320] sm:$0xff]  ;;  %v592_v44 = vld [vmem:[%s6843_s27 + $0x328] sm:$0xff] }
 0x107   : > { %2039 = vmatprep.subr.bf16.mxu0 %v5099_v59  ;;  %2121 = vmatprep.subr.bf16.mxu1 %v5101_v61  ;;  %v5147_v48 = vcombine.high %v587_v41, %v591_v42  ;;  %v5149_v49 = vcombine.high %v588_v43, %v592_v44  ;;  %v595_v50 = vld [vmem:[%s6843_s27 + $0x340] sm:$0xff]  ;;  %v596_v52 = vld [vmem:[%s6843_s27 + $0x348] sm:$0xff]  ;;  %v5146_v55 = vcombine.low %v587_v41, %v591_v42 }
 0x108   : > { %v599_v51 = vld [vmem:[%s6843_s27 + $0x360] sm:$0xff]  ;;  %v600_v53 = vld [vmem:[%s6843_s27 + $0x368] sm:$0xff]  ;;  %v5148_v56 = vcombine.low %v588_v43, %v592_v44 }
 0x109   : > { %v5155_v57 = vcombine.high %v595_v50, %v599_v51  ;;  %v5157_v58 = vcombine.high %v596_v52, %v600_v53  ;;  %v603_v59 = vld [vmem:[%s6843_s27 + $0x380] sm:$0xff]  ;;  %v604_v62 = vld [vmem:[%s6843_s27 + $0x388] sm:$0xff]  ;;  %v5154_v1 = vcombine.low %v595_v50, %v599_v51  ;;  %v5156_v2 = vcombine.low %v596_v52, %v600_v53 }
 0x10a   : > { %2040 = vmatpush1.bf16.msra.mxu0 %v5098_v3  ;;  %2122 = vmatpush1.bf16.msra.mxu1 %v5100_v5  ;;  %v607_v61 = vld [vmem:[%s6843_s27 + $0x3a0] sm:$0xff]  ;;  %v608_v63 = vld [vmem:[%s6843_s27 + $0x3a8] sm:$0xff] }
 0x10b   : > { %2041 = vmatprep.subr.bf16.mxu0 %v5107_v6  ;;  %2123 = vmatprep.subr.bf16.mxu1 %v5109_v7  ;;  %v5163_v3 = vcombine.high %v603_v59, %v607_v61  ;;  %v5165_v4 = vcombine.high %v604_v62, %v608_v63  ;;  %v611_v5 = vld [vmem:[%s6843_s27 + $0x3c0] sm:$0xff]  ;;  %v466_v7 = vcombine.high %v6907_v60, %v6907_v60  ;;  %v612_v8 = vld [vmem:[%s6843_s27 + $0x3c8] sm:$0xff] }
 0x10c   : > { %v615_v6 = vld [vmem:[%s6843_s27 + $0x3e0] sm:$0xff]  ;;  %v616_v9 = vld [vmem:[%s6843_s27 + $0x3e8] sm:$0xff]  ;;  %v5162_v11 = vcombine.low %v603_v59, %v607_v61  ;;  %v5164_v12 = vcombine.low %v604_v62, %v608_v63 }
 0x10d   : > { %v6960_v17 = vrot.slane %v466_v7, %v6902_v54  ;;  %v620_v60 = vld [vmem:[%s6843_s27 + $0x408] sm:$0xff]  ;;  %v5170_v19 = vcombine.low %v611_v5, %v615_v6  ;;  %v5172_v20 = vcombine.low %v612_v8, %v616_v9  ;;  %v635_v33 = vld [vmem:[%s6843_s27 + $0x480] sm:$0xff] }
 0x10e   : > { %2042 = vmatpush1.bf16.msra.mxu0 %v5106_v13  ;;  %2124 = vmatpush1.bf16.msra.mxu1 %v5108_v14  ;;  %v5171_v13 = vcombine.high %v611_v5, %v615_v6  ;;  %v5173_v14 = vcombine.high %v612_v8, %v616_v9  ;;  %v624_v18 = vld [vmem:[%s6843_s27 + $0x428] sm:$0xff]  ;;  %v639_v34 = vld [vmem:[%s6843_s27 + $0x4a0] sm:$0xff] }
 0x10f   : > { %2043 = vmatprep.subr.bf16.mxu0 %v5115_v15  ;;  %2125 = vmatprep.subr.bf16.mxu1 %v5117_v16  ;;  %v619_v15 = vld [vmem:[%s6843_s27 + $0x400] sm:$0xff]  ;;  %v482_v25 = vcombine.high %v6960_v17, %v6960_v17  ;;  %v628_v27 = vld [vmem:[%s6843_s27 + $0x448] sm:$0xff] }
 0x110   : > { %v623_v16 = vld [vmem:[%s6843_s27 + $0x420] sm:$0xff]  ;;  %v632_v28 = vld [vmem:[%s6843_s27 + $0x468] sm:$0xff] }
 0x111   : > { %v6976_v35 = vpack.c.bf16 %v482_v25, %v482_v25  ;;  %v636_v0 = vld [vmem:[%s6843_s27 + $0x488] sm:$0xff]  ;;  %v643_v41 = vld [vmem:[%s6843_s27 + $0x4c0] sm:$0xff] }
 0x112   : > { %2044 = vmatpush1.bf16.msra.mxu0 %v5114_v21  ;;  %2126 = vmatpush1.bf16.msra.mxu1 %v5116_v22  ;;  %v5179_v21 = vcombine.high %v619_v15, %v623_v16  ;;  %v5181_v22 = vcombine.high %v620_v60, %v624_v18  ;;  %v640_v36 = vld [vmem:[%s6843_s27 + $0x4a8] sm:$0xff]  ;;  %v647_v42 = vld [vmem:[%s6843_s27 + $0x4e0] sm:$0xff] }
 0x113   : > { %2045 = vmatprep.subr.bf16.mxu0 %v5123_v23  ;;  %2127 = vmatprep.subr.bf16.mxu1 %v5125_v24  ;;  %v627_v23 = vld [vmem:[%s6843_s27 + $0x440] sm:$0xff]  ;;  %v644_v43 = vld [vmem:[%s6843_s27 + $0x4c8] sm:$0xff] }
 0x114   : > { %v631_v24 = vld [vmem:[%s6843_s27 + $0x460] sm:$0xff]  ;;  %v648_v44 = vld [vmem:[%s6843_s27 + $0x4e8] sm:$0xff] }
 0x115   : > { %v651_v50 = vld [vmem:[%s6843_s27 + $0x500] sm:$0xff]  ;;  %v652_v52 = vld [vmem:[%s6843_s27 + $0x508] sm:$0xff] }
 0x116   : > { %2046 = vmatpush1.bf16.msra.mxu0 %v5122_v29  ;;  %2128 = vmatpush1.bf16.msra.mxu1 %v5124_v30  ;;  %v5178_v29 = vcombine.low %v619_v15, %v623_v16  ;;  %v5180_v30 = vcombine.low %v620_v60, %v624_v18  ;;  %v655_v51 = vld [vmem:[%s6843_s27 + $0x520] sm:$0xff]  ;;  %v656_v53 = vld [vmem:[%s6843_s27 + $0x528] sm:$0xff] }
 0x117   : > { %2047 = vmatprep.subr.bf16.mxu0 %v5131_v31  ;;  %2129 = vmatprep.subr.bf16.mxu1 %v5133_v32  ;;  %v5187_v31 = vcombine.high %v627_v23, %v631_v24  ;;  %v5189_v32 = vcombine.high %v628_v27, %v632_v28  ;;  %v659_v59 = vld [vmem:[%s6843_s27 + $0x540] sm:$0xff]  ;;  %v660_v62 = vld [vmem:[%s6843_s27 + $0x548] sm:$0xff] }
 0x118   : > { %v663_v61 = vld [vmem:[%s6843_s27 + $0x560] sm:$0xff]  ;;  %v664_v63 = vld [vmem:[%s6843_s27 + $0x568] sm:$0xff] }
 0x119   : > { %v667_v5 = vld [vmem:[%s6843_s27 + $0x580] sm:$0xff]  ;;  %v668_v7 = vld [vmem:[%s6843_s27 + $0x588] sm:$0xff]  ;;  %v5218_v9 = vcombine.low %v659_v59, %v663_v61 }
 0x11a   : > { %2048 = vmatpush1.bf16.msra.mxu0 %v5130_v37  ;;  %2130 = vmatpush1.bf16.msra.mxu1 %v5132_v38  ;;  %v5186_v37 = vcombine.low %v627_v23, %v631_v24  ;;  %v5188_v38 = vcombine.low %v628_v27, %v632_v28  ;;  %v671_v6 = vld [vmem:[%s6843_s27 + $0x5a0] sm:$0xff]  ;;  %v672_v8 = vld [vmem:[%s6843_s27 + $0x5a8] sm:$0xff] }
 0x11b   : > { %2049 = vmatprep.subr.bf16.mxu0 %v5139_v39  ;;  %2131 = vmatprep.subr.bf16.mxu1 %v5141_v40  ;;  %v5195_v39 = vcombine.high %v635_v33, %v639_v34  ;;  %v5197_v40 = vcombine.high %v636_v0, %v640_v36  ;;  %v679_v15 = vld [vmem:[%s6843_s27 + $0x5e0] sm:$0xff]  ;;  %v676_v16 = vld [vmem:[%s6843_s27 + $0x5c8] sm:$0xff]  ;;  %v5226_v18 = vcombine.low %v667_v5, %v671_v6 }
 0x11c   : > { %v680_v60 = vld [vmem:[%s6843_s27 + $0x5e8] sm:$0xff]  ;;  %v687_v23 = vld [vmem:[%s6843_s27 + $0x620] sm:$0xff] }
 0x11d   : > { %v684_v24 = vld [vmem:[%s6843_s27 + $0x608] sm:$0xff]  ;;  %v5236_v28 = vcombine.low %v676_v16, %v680_v60 }
 0x11e   : > { %2050 = vmatpush1.bf16.msra.mxu0 %v5138_v46  ;;  %2132 = vmatpush1.bf16.msra.mxu1 %v5140_v47  ;;  %v5194_v46 = vcombine.low %v635_v33, %v639_v34  ;;  %v5196_v47 = vcombine.low %v636_v0, %v640_v36  ;;  %v688_v25 = vld [vmem:[%s6843_s27 + $0x628] sm:$0xff] }
 0x11f   : > { %2051 = vmatprep.subr.bf16.mxu0 %v5147_v48  ;;  %2133 = vmatprep.subr.bf16.mxu1 %v5149_v49  ;;  %v5203_v48 = vcombine.high %v643_v41, %v647_v42  ;;  %v5205_v49 = vcombine.high %v644_v43, %v648_v44  ;;  %v692_v33 = vld [vmem:[%s6843_s27 + $0x648] sm:$0xff]  ;;  %v5244_v36 = vcombine.low %v684_v24, %v688_v25 }
 0x120   : > { %v696_v34 = vld [vmem:[%s6843_s27 + $0x668] sm:$0xff] }
 0x122   : > { %2052 = vmatpush1.bf16.msra.mxu0 %v5146_v55  ;;  %2134 = vmatpush1.bf16.msra.mxu1 %v5148_v56  ;;  %v5202_v55 = vcombine.low %v643_v41, %v647_v42  ;;  %v5204_v56 = vcombine.low %v644_v43, %v648_v44  ;;  %v700_v41 = vld [vmem:[%s6843_s27 + $0x688] sm:$0xff]  ;;  %v5252_v44 = vcombine.low %v692_v33, %v696_v34 }
 0x123   : > { %2053 = vmatprep.subr.bf16.mxu0 %v5155_v57  ;;  %2135 = vmatprep.subr.bf16.mxu1 %v5157_v58  ;;  %v5211_v57 = vcombine.high %v651_v50, %v655_v51  ;;  %v5213_v58 = vcombine.high %v652_v52, %v656_v53  ;;  %v704_v42 = vld [vmem:[%s6843_s27 + $0x6a8] sm:$0xff] }
 0x126   : > { %2054 = vmatpush1.bf16.msra.mxu0 %v5154_v1  ;;  %2136 = vmatpush1.bf16.msra.mxu1 %v5156_v2  ;;  %v5210_v1 = vcombine.low %v651_v50, %v655_v51  ;;  %v5212_v2 = vcombine.low %v652_v52, %v656_v53  ;;  %v708_v50 = vld [vmem:[%s6843_s27 + $0x6c8] sm:$0xff]  ;;  %v5260_v53 = vcombine.low %v700_v41, %v704_v42 }
 0x127   : > { %2055 = vmatprep.subr.bf16.mxu0 %v5163_v3  ;;  %2137 = vmatprep.subr.bf16.mxu1 %v5165_v4  ;;  %v5219_v3 = vcombine.high %v659_v59, %v663_v61  ;;  %v5221_v4 = vcombine.high %v660_v62, %v664_v63  ;;  %v712_v51 = vld [vmem:[%s6843_s27 + $0x6e8] sm:$0xff] }
 0x128   : > { %v716_v59 = vld [vmem:[%s6843_s27 + $0x708] sm:$0xff] }
 0x129   : > { %v720_v61 = vld [vmem:[%s6843_s27 + $0x728] sm:$0xff] }
 0x12a   : > { %2056 = vmatpush1.bf16.msra.mxu0 %v5162_v11  ;;  %2138 = vmatpush1.bf16.msra.mxu1 %v5164_v12  ;;  %v5220_v11 = vcombine.low %v660_v62, %v664_v63  ;;  %v5227_v12 = vcombine.high %v667_v5, %v671_v6  ;;  %v5268_v63 = vcombine.low %v708_v50, %v712_v51  ;;  %v724_v5 = vld [vmem:[%s6843_s27 + $0x748] sm:$0xff] }
 0x12b   : > { %2057 = vmatprep.subr.bf16.mxu0 %v5171_v13  ;;  %2139 = vmatprep.subr.bf16.mxu1 %v5173_v14  ;;  %v5229_v13 = vcombine.high %v668_v7, %v672_v8  ;;  %v675_v14 = vld [vmem:[%s6843_s27 + $0x5c0] sm:$0xff]  ;;  %v728_v6 = vld [vmem:[%s6843_s27 + $0x768] sm:$0xff] }
 0x12c   : > { %v5234_v27 = vcombine.low %v675_v14, %v679_v15 }
 0x12e   : > { %2058 = vmatpush1.bf16.msra.mxu0 %v5170_v19  ;;  %2140 = vmatpush1.bf16.msra.mxu1 %v5172_v20  ;;  %v5228_v19 = vcombine.low %v668_v7, %v672_v8  ;;  %v5235_v20 = vcombine.high %v675_v14, %v679_v15  ;;  %v5276_v8 = vcombine.low %v716_v59, %v720_v61  ;;  %v732_v14 = vld [vmem:[%s6843_s27 + $0x788] sm:$0xff] }
 0x12f   : > { %2068 = vmatprep.subr.bf16.mxu0 %v5179_v21  ;;  %2150 = vmatprep.subr.bf16.mxu1 %v5181_v22  ;;  %v5237_v21 = vcombine.high %v676_v16, %v680_v60  ;;  %v683_v22 = vld [vmem:[%s6843_s27 + $0x600] sm:$0xff]  ;;  %v736_v15 = vld [vmem:[%s6843_s27 + $0x7a8] sm:$0xff]  ;;  %v5284_v60 = vcombine.low %v724_v5, %v728_v6 }
 0x130   : > { %v5242_v0 = vcombine.low %v683_v22, %v687_v23 }
 0x131   : > { %2060 = vmatmul.mubr.bf16.vlgmr.msra.gmra.mrb[0].mxu0 %v6970_v26  ;;  %2142 = vmatmul.mubr.bf16.vlgmr.msra.gmra.mrb[0].mxu1 %v6970_v26 }
 0x132   : > { %2069 = vmatpush1.bf16.msra.mxu0 %v5178_v29  ;;  %2151 = vmatpush1.bf16.msra.mxu1 %v5180_v30  ;;  %v5243_v29 = vcombine.high %v683_v22, %v687_v23  ;;  %v5245_v30 = vcombine.high %v684_v24, %v688_v25  ;;  %v740_v22 = vld [vmem:[%s6843_s27 + $0x7c8] sm:$0xff]  ;;  %v5292_v25 = vcombine.low %v732_v14, %v736_v15 }
 0x133   : > { %2070 = vmatprep.subr.bf16.mxu0 %v5187_v31  ;;  %2152 = vmatprep.subr.bf16.mxu1 %v5189_v32  ;;  %v691_v31 = vld [vmem:[%s6843_s27 + $0x640] sm:$0xff]  ;;  %v744_v23 = vld [vmem:[%s6843_s27 + $0x7e8] sm:$0xff] }
 0x134   : > { %2100 = vmatprep.mubr.bf16.mxu0 %v6976_v35  ;;  %2182 = vmatprep.mubr.bf16.mxu1 %v6976_v35  ;;  %v695_v32 = vld [vmem:[%s6843_s27 + $0x660] sm:$0xff] }
 0x135   : > { %v5250_v43 = vcombine.low %v691_v31, %v695_v32 }
 0x136   : > { %2071 = vmatpush1.bf16.msra.mxu0 %v5186_v37  ;;  %2153 = vmatpush1.bf16.msra.mxu1 %v5188_v38  ;;  %v5251_v37 = vcombine.high %v691_v31, %v695_v32  ;;  %v5253_v38 = vcombine.high %v692_v33, %v696_v34  ;;  %v494_v31 = vld [vmem:[%s6843_s27 + $0x18] sm:$0xff]  ;;  %v5300_v34 = vcombine.low %v740_v22, %v744_v23 }
 0x137   : > { %2072 = vmatprep.subr.bf16.mxu0 %v5195_v39  ;;  %2154 = vmatprep.subr.bf16.mxu1 %v5197_v40  ;;  %v699_v39 = vld [vmem:[%s6843_s27 + $0x680] sm:$0xff]  ;;  %v498_v32 = vld [vmem:[%s6843_s27 + $0x38] sm:$0xff] }
 0x138   : > { %v703_v40 = vld [vmem:[%s6843_s27 + $0x6a0] sm:$0xff] }
 0x139   : > { %v5258_v52 = vcombine.low %v699_v39, %v703_v40 }
 0x13a   : > { %2073 = vmatpush1.bf16.msra.mxu0 %v5194_v46  ;;  %2155 = vmatpush1.bf16.msra.mxu1 %v5196_v47  ;;  %v5259_v46 = vcombine.high %v699_v39, %v703_v40  ;;  %v5261_v47 = vcombine.high %v700_v41, %v704_v42  ;;  %v7044_v39 = vpack.c.bf16 %v6960_v17, %v6960_v17  ;;  %v502_v40 = vld [vmem:[%s6843_s27 + $0x58] sm:$0xff] }
 0x13b   : > { %2074 = vmatprep.subr.bf16.mxu0 %v5203_v48  ;;  %2156 = vmatprep.subr.bf16.mxu1 %v5205_v49  ;;  %v707_v48 = vld [vmem:[%s6843_s27 + $0x6c0] sm:$0xff]  ;;  %v506_v41 = vld [vmem:[%s6843_s27 + $0x78] sm:$0xff] }
 0x13c   : > { %v711_v49 = vld [vmem:[%s6843_s27 + $0x6e0] sm:$0xff]  ;;  %v510_v17 = vld [vmem:[%s6843_s27 + $0x98] sm:$0xff] }
 0x13d   : > { %v5266_v62 = vcombine.low %v707_v48, %v711_v49 }
 0x13e   : > { %2075 = vmatpush1.bf16.msra.mxu0 %v5202_v55  ;;  %2157 = vmatpush1.bf16.msra.mxu1 %v5204_v56  ;;  %v5267_v55 = vcombine.high %v707_v48, %v711_v49  ;;  %v5269_v56 = vcombine.high %v708_v50, %v712_v51  ;;  %v513_v48 = vld [vmem:[%s6843_s27 + $0xb0] sm:$0xff]  ;;  %v514_v49 = vld [vmem:[%s6843_s27 + $0xb8] sm:$0xff]  ;;  %v5064_v51 = vcombine.low %v502_v40, %v506_v41 }
 0x13f   : > { %2076 = vmatprep.subr.bf16.mxu0 %v5211_v57  ;;  %2158 = vmatprep.subr.bf16.mxu1 %v5213_v58  ;;  %v715_v57 = vld [vmem:[%s6843_s27 + $0x700] sm:$0xff] }
 0x140   : > { %v719_v58 = vld [vmem:[%s6843_s27 + $0x720] sm:$0xff] }
 0x141   : > { %v5274_v7 = vcombine.low %v715_v57, %v719_v58 }
 0x142   : > { %2077 = vmatpush1.bf16.msra.mxu0 %v5210_v1  ;;  %2159 = vmatpush1.bf16.msra.mxu1 %v5212_v2  ;;  %v5275_v1 = vcombine.high %v715_v57, %v719_v58  ;;  %v5277_v2 = vcombine.high %v716_v59, %v720_v61  ;;  %v518_v57 = vld [vmem:[%s6843_s27 + $0xd8] sm:$0xff]  ;;  %v5072_v61 = vcombine.low %v510_v17, %v514_v49 }
 0x143   : > { %2078 = vmatprep.subr.bf16.mxu0 %v5219_v3  ;;  %2160 = vmatprep.subr.bf16.mxu1 %v5221_v4  ;;  %v723_v3 = vld [vmem:[%s6843_s27 + $0x740] sm:$0xff]  ;;  %v522_v58 = vld [vmem:[%s6843_s27 + $0xf8] sm:$0xff] }
 0x144   : > { %v727_v4 = vld [vmem:[%s6843_s27 + $0x760] sm:$0xff] }
 0x145   : > { %v5282_v16 = vcombine.low %v723_v3, %v727_v4 }
 0x146   : > { %2079 = vmatpush1.bf16.msra.mxu0 %v5218_v9  ;;  %2161 = vmatpush1.bf16.msra.mxu1 %v5220_v11  ;;  %v5283_v9 = vcombine.high %v723_v3, %v727_v4  ;;  %v5285_v11 = vcombine.high %v724_v5, %v728_v6  ;;  %v526_v3 = vld [vmem:[%s6843_s27 + $0x118] sm:$0xff] }
 0x147   : > { %2080 = vmatprep.subr.bf16.mxu0 %v5227_v12  ;;  %2162 = vmatprep.subr.bf16.mxu1 %v5229_v13  ;;  %v731_v12 = vld [vmem:[%s6843_s27 + $0x780] sm:$0xff]  ;;  %v530_v4 = vld [vmem:[%s6843_s27 + $0x138] sm:$0xff] }
 0x148   : > { %v735_v13 = vld [vmem:[%s6843_s27 + $0x7a0] sm:$0xff] }
 0x149   : > { %v5290_v24 = vcombine.low %v731_v12, %v735_v13 }
 0x14a   : > { %2081 = vmatpush1.bf16.msra.mxu0 %v5226_v18  ;;  %2163 = vmatpush1.bf16.msra.mxu1 %v5228_v19  ;;  %v5291_v18 = vcombine.high %v731_v12, %v735_v13  ;;  %v5293_v19 = vcombine.high %v732_v14, %v736_v15  ;;  %v538_v12 = vld [vmem:[%s6843_s27 + $0x178] sm:$0xff]  ;;  %v5088_v14 = vcombine.low %v526_v3, %v530_v4 }
 0x14b   : > { %2082 = vmatprep.subr.bf16.mxu0 %v5235_v20  ;;  %2164 = vmatprep.subr.bf16.mxu1 %v5237_v21  ;;  %v739_v20 = vld [vmem:[%s6843_s27 + $0x7c0] sm:$0xff] }
 0x14c   : > { %v743_v21 = vld [vmem:[%s6843_s27 + $0x7e0] sm:$0xff] }
 0x14d   : > { %v5298_v33 = vcombine.low %v739_v20, %v743_v21 }
 0x14e   : > { %2083 = vmatpush1.bf16.msra.mxu0 %v5234_v27  ;;  %2165 = vmatpush1.bf16.msra.mxu1 %v5236_v28  ;;  %v5299_v27 = vcombine.high %v739_v20, %v743_v21  ;;  %v5301_v28 = vcombine.high %v740_v22, %v744_v23  ;;  %v546_v20 = vld [vmem:[%s6843_s27 + $0x1b8] sm:$0xff] }
 0x14f   : > { %2084 = vmatprep.subr.bf16.mxu0 %v5243_v29  ;;  %2166 = vmatprep.subr.bf16.mxu1 %v5245_v30  ;;  %v493_v29 = vld [vmem:[%s6843_s27 + $0x10] sm:$0xff] }
 0x150   : > { %v497_v30 = vld [vmem:[%s6843_s27 + $0x30] sm:$0xff] }
 0x151   : > { %v5054_v42 = vcombine.low %v493_v29, %v497_v30 }
 0x152   : > { %2085 = vmatpush1.bf16.msra.mxu0 %v5242_v0  ;;  %2167 = vmatpush1.bf16.msra.mxu1 %v5244_v36  ;;  %v5055_v0 = vcombine.high %v493_v29, %v497_v30  ;;  %v5057_v36 = vcombine.high %v494_v31, %v498_v32  ;;  %v554_v29 = vld [vmem:[%s6843_s27 + $0x1f8] sm:$0xff] }
 0x153   : > { %2086 = vmatprep.subr.bf16.mxu0 %v5251_v37  ;;  %2168 = vmatprep.subr.bf16.mxu1 %v5253_v38  ;;  %v501_v37 = vld [vmem:[%s6843_s27 + $0x50] sm:$0xff] }
 0x154   : > { %v505_v38 = vld [vmem:[%s6843_s27 + $0x70] sm:$0xff] }
 0x155   : > { %v5062_v50 = vcombine.low %v501_v37, %v505_v38 }
 0x156   : > { %2087 = vmatpush1.bf16.msra.mxu0 %v5250_v43  ;;  %2169 = vmatpush1.bf16.msra.mxu1 %v5252_v44  ;;  %v5056_v43 = vcombine.low %v494_v31, %v498_v32  ;;  %v5063_v44 = vcombine.high %v501_v37, %v505_v38  ;;  %v562_v37 = vld [vmem:[%s6843_s27 + $0x238] sm:$0xff] }
 0x157   : > { %2088 = vmatprep.subr.bf16.mxu0 %v5259_v46  ;;  %2170 = vmatprep.subr.bf16.mxu1 %v5261_v47  ;;  %v5065_v46 = vcombine.high %v502_v40, %v506_v41  ;;  %v509_v47 = vld [vmem:[%s6843_s27 + $0x90] sm:$0xff] }
 0x158   : > { %v5070_v59 = vcombine.low %v509_v47, %v513_v48 }
 0x15a   : > { %2089 = vmatpush1.bf16.msra.mxu0 %v5258_v52  ;;  %2171 = vmatpush1.bf16.msra.mxu1 %v5260_v53  ;;  %v5071_v52 = vcombine.high %v509_v47, %v513_v48  ;;  %v5073_v53 = vcombine.high %v510_v17, %v514_v49  ;;  %v570_v47 = vld [vmem:[%s6843_s27 + $0x278] sm:$0xff] }
 0x15b   : > { %2090 = vmatprep.subr.bf16.mxu0 %v5267_v55  ;;  %2172 = vmatprep.subr.bf16.mxu1 %v5269_v56  ;;  %v517_v55 = vld [vmem:[%s6843_s27 + $0xd0] sm:$0xff] }
 0x15c   : > { %v521_v56 = vld [vmem:[%s6843_s27 + $0xf0] sm:$0xff] }
 0x15d   : > { %v5078_v5 = vcombine.low %v517_v55, %v521_v56 }
 0x15e   : > { %2091 = vmatpush1.bf16.msra.mxu0 %v5266_v62  ;;  %2173 = vmatpush1.bf16.msra.mxu1 %v5268_v63  ;;  %v5079_v62 = vcombine.high %v517_v55, %v521_v56  ;;  %v5081_v63 = vcombine.high %v518_v57, %v522_v58  ;;  %v578_v55 = vld [vmem:[%s6843_s27 + $0x2b8] sm:$0xff] }
 0x15f   : > { %2092 = vmatprep.subr.bf16.mxu0 %v5275_v1  ;;  %2174 = vmatprep.subr.bf16.mxu1 %v5277_v2  ;;  %v525_v1 = vld [vmem:[%s6843_s27 + $0x110] sm:$0xff] }
 0x160   : > { %v529_v2 = vld [vmem:[%s6843_s27 + $0x130] sm:$0xff] }
 0x161   : > { %v5087_v6 = vcombine.high %v525_v1, %v529_v2  ;;  %v5086_v13 = vcombine.low %v525_v1, %v529_v2  ;;  %v586_v1 = vld [vmem:[%s6843_s27 + $0x2f8] sm:$0xff] }
 0x162   : > { %2093 = vmatpush1.bf16.msra.mxu0 %v5274_v7  ;;  %2175 = vmatpush1.bf16.msra.mxu1 %v5276_v8  ;;  %v5089_v7 = vcombine.high %v526_v3, %v530_v4  ;;  %v533_v8 = vld [vmem:[%s6843_s27 + $0x150] sm:$0xff] }
 0x163   : > { %2094 = vmatprep.subr.bf16.mxu0 %v5283_v9  ;;  %2176 = vmatprep.subr.bf16.mxu1 %v5285_v11  ;;  %v537_v9 = vld [vmem:[%s6843_s27 + $0x170] sm:$0xff]  ;;  %v534_v11 = vld [vmem:[%s6843_s27 + $0x158] sm:$0xff] }
 0x164   : > { %v5095_v15 = vcombine.high %v533_v8, %v537_v9  ;;  %v5094_v21 = vcombine.low %v533_v8, %v537_v9  ;;  %v5096_v22 = vcombine.low %v534_v11, %v538_v12  ;;  %v594_v8 = vld [vmem:[%s6843_s27 + $0x338] sm:$0xff] }
 0x166   : > { %2095 = vmatpush1.bf16.msra.mxu0 %v5282_v16  ;;  %2177 = vmatpush1.bf16.msra.mxu1 %v5284_v60  ;;  %v5097_v16 = vcombine.high %v534_v11, %v538_v12  ;;  %v541_v60 = vld [vmem:[%s6843_s27 + $0x190] sm:$0xff] }
 0x167   : > { %2096 = vmatprep.subr.bf16.mxu0 %v5291_v18  ;;  %2178 = vmatprep.subr.bf16.mxu1 %v5293_v19  ;;  %v545_v18 = vld [vmem:[%s6843_s27 + $0x1b0] sm:$0xff]  ;;  %v542_v19 = vld [vmem:[%s6843_s27 + $0x198] sm:$0xff] }
 0x168   : > { %v5103_v23 = vcombine.high %v541_v60, %v545_v18  ;;  %v5102_v30 = vcombine.low %v541_v60, %v545_v18  ;;  %v5104_v31 = vcombine.low %v542_v19, %v546_v20  ;;  %v602_v60 = vld [vmem:[%s6843_s27 + $0x378] sm:$0xff] }
 0x16a   : > { %2097 = vmatpush1.bf16.msra.mxu0 %v5290_v24  ;;  %2179 = vmatpush1.bf16.msra.mxu1 %v5292_v25  ;;  %v5105_v24 = vcombine.high %v542_v19, %v546_v20  ;;  %v549_v25 = vld [vmem:[%s6843_s27 + $0x1d0] sm:$0xff] }
 0x16b   : > { %2098 = vmatprep.subr.bf16.mxu0 %v5299_v27  ;;  %2180 = vmatprep.subr.bf16.mxu1 %v5301_v28  ;;  %v553_v27 = vld [vmem:[%s6843_s27 + $0x1f0] sm:$0xff]  ;;  %v550_v28 = vld [vmem:[%s6843_s27 + $0x1d8] sm:$0xff] }
 0x16c   : > { %v5111_v32 = vcombine.high %v549_v25, %v553_v27  ;;  %v5110_v38 = vcombine.low %v549_v25, %v553_v27  ;;  %v5112_v40 = vcombine.low %v550_v28, %v554_v29  ;;  %v610_v25 = vld [vmem:[%s6843_s27 + $0x3b8] sm:$0xff] }
 0x16e   : > { %2099 = vmatpush1.bf16.msra.mxu0 %v5298_v33  ;;  %2181 = vmatpush1.bf16.msra.mxu1 %v5300_v34  ;;  %v5113_v33 = vcombine.high %v550_v28, %v554_v29  ;;  %v557_v34 = vld [vmem:[%s6843_s27 + $0x210] sm:$0xff] }
 0x16f   : > { %2191 = vmatprep.subr.bf16.mxu0 %v5055_v0  ;;  %2273 = vmatprep.subr.bf16.mxu1 %v5057_v36  ;;  %v561_v0 = vld [vmem:[%s6843_s27 + $0x230] sm:$0xff]  ;;  %v558_v36 = vld [vmem:[%s6843_s27 + $0x218] sm:$0xff] }
 0x170   : > { %v5119_v41 = vcombine.high %v557_v34, %v561_v0  ;;  %v5118_v48 = vcombine.low %v557_v34, %v561_v0  ;;  %v5120_v17 = vcombine.low %v558_v36, %v562_v37  ;;  %v618_v34 = vld [vmem:[%s6843_s27 + $0x3f8] sm:$0xff] }
 0x171   : > { %2101 = vmatmul.mubr.bf16.vlgmr.msra.gmra.mrb[0].mxu0 %v7044_v39  ;;  %2183 = vmatmul.mubr.bf16.vlgmr.msra.gmra.mrb[0].mxu1 %v7044_v39 }
 0x172   : > { %2192 = vmatpush1.bf16.msra.mxu0 %v5054_v42  ;;  %2274 = vmatpush1.bf16.msra.mxu1 %v5056_v43  ;;  %v5121_v42 = vcombine.high %v558_v36, %v562_v37  ;;  %v565_v43 = vld [vmem:[%s6843_s27 + $0x250] sm:$0xff] }
 0x173   : > { %2193 = vmatprep.subr.bf16.mxu0 %v5063_v44  ;;  %2275 = vmatprep.subr.bf16.mxu1 %v5065_v46  ;;  %v569_v44 = vld [vmem:[%s6843_s27 + $0x270] sm:$0xff]  ;;  %v566_v46 = vld [vmem:[%s6843_s27 + $0x258] sm:$0xff] }
 0x174   : > { %2223 = vmatprep.mubr.bf16.mxu0 %v6921_v10  ;;  %2305 = vmatprep.mubr.bf16.mxu1 %v6921_v10  ;;  %v5080_v10 = vcombine.low %v518_v57, %v522_v58  ;;  %v5127_v49 = vcombine.high %v565_v43, %v569_v44  ;;  %v5126_v56 = vcombine.low %v565_v43, %v569_v44  ;;  %v626_v43 = vld [vmem:[%s6843_s27 + $0x438] sm:$0xff] }
 0x175   : > { %v5128_v57 = vcombine.low %v566_v46, %v570_v47 }
 0x176   : > { %2194 = vmatpush1.bf16.msra.mxu0 %v5062_v50  ;;  %2276 = vmatpush1.bf16.msra.mxu1 %v5064_v51  ;;  %v5129_v50 = vcombine.high %v566_v46, %v570_v47  ;;  %v573_v51 = vld [vmem:[%s6843_s27 + $0x290] sm:$0xff] }
 0x177   : > { %2195 = vmatprep.subr.bf16.mxu0 %v5071_v52  ;;  %2277 = vmatprep.subr.bf16.mxu1 %v5073_v53  ;;  %v577_v52 = vld [vmem:[%s6843_s27 + $0x2b0] sm:$0xff]  ;;  %v574_v53 = vld [vmem:[%s6843_s27 + $0x298] sm:$0xff] }
 0x178   : > { %v5135_v58 = vcombine.high %v573_v51, %v577_v52  ;;  %v5134_v2 = vcombine.low %v573_v51, %v577_v52  ;;  %v5136_v3 = vcombine.low %v574_v53, %v578_v55  ;;  %v634_v51 = vld [vmem:[%s6843_s27 + $0x478] sm:$0xff] }
 0x17a   : > { %2196 = vmatpush1.bf16.msra.mxu0 %v5070_v59  ;;  %2278 = vmatpush1.bf16.msra.mxu1 %v5072_v61  ;;  %v5137_v59 = vcombine.high %v574_v53, %v578_v55  ;;  %v581_v61 = vld [vmem:[%s6843_s27 + $0x2d0] sm:$0xff] }
 0x17b   : > { %2197 = vmatprep.subr.bf16.mxu0 %v5079_v62  ;;  %2279 = vmatprep.subr.bf16.mxu1 %v5081_v63  ;;  %v585_v62 = vld [vmem:[%s6843_s27 + $0x2f0] sm:$0xff]  ;;  %v582_v63 = vld [vmem:[%s6843_s27 + $0x2d8] sm:$0xff] }
 0x17c   : > { %v5143_v4 = vcombine.high %v581_v61, %v585_v62  ;;  %v5142_v9 = vcombine.low %v581_v61, %v585_v62  ;;  %v5144_v11 = vcombine.low %v582_v63, %v586_v1  ;;  %v642_v61 = vld [vmem:[%s6843_s27 + $0x4b8] sm:$0xff] }
 0x17e   : > { %2198 = vmatpush1.bf16.msra.mxu0 %v5078_v5  ;;  %2280 = vmatpush1.bf16.msra.mxu1 %v5080_v10  ;;  %v5145_v5 = vcombine.high %v582_v63, %v586_v1  ;;  %v589_v10 = vld [vmem:[%s6843_s27 + $0x310] sm:$0xff] }
 0x17f   : > { %2199 = vmatprep.subr.bf16.mxu0 %v5087_v6  ;;  %2281 = vmatprep.subr.bf16.mxu1 %v5089_v7  ;;  %v593_v6 = vld [vmem:[%s6843_s27 + $0x330] sm:$0xff]  ;;  %v590_v7 = vld [vmem:[%s6843_s27 + $0x318] sm:$0xff] }
 0x180   : > { %v5151_v12 = vcombine.high %v589_v10, %v593_v6  ;;  %v5150_v18 = vcombine.low %v589_v10, %v593_v6  ;;  %v5152_v19 = vcombine.low %v590_v7, %v594_v8  ;;  %v650_v10 = vld [vmem:[%s6843_s27 + $0x4f8] sm:$0xff] }
 0x182   : > { %2200 = vmatpush1.bf16.msra.mxu0 %v5086_v13  ;;  %2282 = vmatpush1.bf16.msra.mxu1 %v5088_v14  ;;  %v5153_v13 = vcombine.high %v590_v7, %v594_v8  ;;  %v597_v14 = vld [vmem:[%s6843_s27 + $0x350] sm:$0xff] }
 0x183   : > { %2201 = vmatprep.subr.bf16.mxu0 %v5095_v15  ;;  %2283 = vmatprep.subr.bf16.mxu1 %v5097_v16  ;;  %v601_v15 = vld [vmem:[%s6843_s27 + $0x370] sm:$0xff]  ;;  %v598_v16 = vld [vmem:[%s6843_s27 + $0x358] sm:$0xff] }
 0x184   : > { %v5159_v20 = vcombine.high %v597_v14, %v601_v15  ;;  %v5158_v27 = vcombine.low %v597_v14, %v601_v15  ;;  %v5160_v28 = vcombine.low %v598_v16, %v602_v60 }
 0x186   : > { %2202 = vmatpush1.bf16.msra.mxu0 %v5094_v21  ;;  %2284 = vmatpush1.bf16.msra.mxu1 %v5096_v22  ;;  %v5161_v21 = vcombine.high %v598_v16, %v602_v60  ;;  %v605_v22 = vld [vmem:[%s6843_s27 + $0x390] sm:$0xff] }
 0x187   : > { %2203 = vmatprep.subr.bf16.mxu0 %v5103_v23  ;;  %2285 = vmatprep.subr.bf16.mxu1 %v5105_v24  ;;  %v609_v23 = vld [vmem:[%s6843_s27 + $0x3b0] sm:$0xff]  ;;  %v606_v24 = vld [vmem:[%s6843_s27 + $0x398] sm:$0xff] }
 0x188   : > { %v5167_v29 = vcombine.high %v605_v22, %v609_v23  ;;  %v5166_v0 = vcombine.low %v605_v22, %v609_v23  ;;  %v5168_v36 = vcombine.low %v606_v24, %v610_v25  ;;  %v661_v60 = vld [vmem:[%s6843_s27 + $0x550] sm:$0xff] }
 0x18a   : > { %2204 = vmatpush1.bf16.msra.mxu0 %v5102_v30  ;;  %2286 = vmatpush1.bf16.msra.mxu1 %v5104_v31  ;;  %v5169_v30 = vcombine.high %v606_v24, %v610_v25  ;;  %v613_v31 = vld [vmem:[%s6843_s27 + $0x3d0] sm:$0xff] }
 0x18b   : > { %2205 = vmatprep.subr.bf16.mxu0 %v5111_v32  ;;  %2287 = vmatprep.subr.bf16.mxu1 %v5113_v33  ;;  %v617_v32 = vld [vmem:[%s6843_s27 + $0x3f0] sm:$0xff]  ;;  %v614_v33 = vld [vmem:[%s6843_s27 + $0x3d8] sm:$0xff] }
 0x18c   : > { %v5175_v37 = vcombine.high %v613_v31, %v617_v32  ;;  %v5174_v44 = vcombine.low %v613_v31, %v617_v32  ;;  %v5176_v46 = vcombine.low %v614_v33, %v618_v34  ;;  %v669_v25 = vld [vmem:[%s6843_s27 + $0x590] sm:$0xff] }
 0x18e   : > { %2206 = vmatpush1.bf16.msra.mxu0 %v5110_v38  ;;  %2288 = vmatpush1.bf16.msra.mxu1 %v5112_v40  ;;  %v5177_v38 = vcombine.high %v614_v33, %v618_v34  ;;  %v621_v40 = vld [vmem:[%s6843_s27 + $0x410] sm:$0xff] }
 0x18f   : > { %2207 = vmatprep.subr.bf16.mxu0 %v5119_v41  ;;  %2289 = vmatprep.subr.bf16.mxu1 %v5121_v42  ;;  %v625_v41 = vld [vmem:[%s6843_s27 + $0x430] sm:$0xff]  ;;  %v622_v42 = vld [vmem:[%s6843_s27 + $0x418] sm:$0xff] }
 0x190   : > { %v5183_v47 = vcombine.high %v621_v40, %v625_v41  ;;  %v5182_v52 = vcombine.low %v621_v40, %v625_v41  ;;  %v5184_v53 = vcombine.low %v622_v42, %v626_v43  ;;  %v677_v34 = vld [vmem:[%s6843_s27 + $0x5d0] sm:$0xff] }
 0x192   : > { %2208 = vmatpush1.bf16.msra.mxu0 %v5118_v48  ;;  %2290 = vmatpush1.bf16.msra.mxu1 %v5120_v17  ;;  %v5185_v48 = vcombine.high %v622_v42, %v626_v43  ;;  %v629_v17 = vld [vmem:[%s6843_s27 + $0x450] sm:$0xff] }
 0x193   : > { %2209 = vmatprep.subr.bf16.mxu0 %v5127_v49  ;;  %2291 = vmatprep.subr.bf16.mxu1 %v5129_v50  ;;  %v633_v49 = vld [vmem:[%s6843_s27 + $0x470] sm:$0xff]  ;;  %v630_v50 = vld [vmem:[%s6843_s27 + $0x458] sm:$0xff] }
 0x194   : > { %v5191_v55 = vcombine.high %v629_v17, %v633_v49  ;;  %v5190_v62 = vcombine.low %v629_v17, %v633_v49  ;;  %v5192_v63 = vcombine.low %v630_v50, %v634_v51  ;;  %v685_v43 = vld [vmem:[%s6843_s27 + $0x610] sm:$0xff] }
 0x196   : > { %2210 = vmatpush1.bf16.msra.mxu0 %v5126_v56  ;;  %2292 = vmatpush1.bf16.msra.mxu1 %v5128_v57  ;;  %v5193_v56 = vcombine.high %v630_v50, %v634_v51  ;;  %v637_v57 = vld [vmem:[%s6843_s27 + $0x490] sm:$0xff] }
 0x197   : > { %2211 = vmatprep.subr.bf16.mxu0 %v5135_v58  ;;  %2293 = vmatprep.subr.bf16.mxu1 %v5137_v59  ;;  %v641_v58 = vld [vmem:[%s6843_s27 + $0x4b0] sm:$0xff]  ;;  %v638_v59 = vld [vmem:[%s6843_s27 + $0x498] sm:$0xff] }
 0x198   : > { %v5199_v1 = vcombine.high %v637_v57, %v641_v58  ;;  %v5200_v6 = vcombine.low %v638_v59, %v642_v61  ;;  %v693_v51 = vld [vmem:[%s6843_s27 + $0x650] sm:$0xff] }
 0x19a   : > { %2212 = vmatpush1.bf16.msra.mxu0 %v5134_v2  ;;  %2294 = vmatpush1.bf16.msra.mxu1 %v5136_v3  ;;  %v5201_v2 = vcombine.high %v638_v59, %v642_v61  ;;  %v645_v3 = vld [vmem:[%s6843_s27 + $0x4d0] sm:$0xff] }
 0x19b   : > { %2213 = vmatprep.subr.bf16.mxu0 %v5143_v4  ;;  %2295 = vmatprep.subr.bf16.mxu1 %v5145_v5  ;;  %v649_v4 = vld [vmem:[%s6843_s27 + $0x4f0] sm:$0xff]  ;;  %v646_v5 = vld [vmem:[%s6843_s27 + $0x4d8] sm:$0xff] }
 0x19c   : > { %v5207_v7 = vcombine.high %v645_v3, %v649_v4  ;;  %v5209_v8 = vcombine.high %v646_v5, %v650_v10  ;;  %v5206_v14 = vcombine.low %v645_v3, %v649_v4  ;;  %v701_v61 = vld [vmem:[%s6843_s27 + $0x690] sm:$0xff] }
 0x19e   : > { %2214 = vmatpush1.bf16.msra.mxu0 %v5142_v9  ;;  %2296 = vmatpush1.bf16.msra.mxu1 %v5144_v11  ;;  %v653_v9 = vld [vmem:[%s6843_s27 + $0x510] sm:$0xff] }
 0x19f   : > { %2215 = vmatprep.subr.bf16.mxu0 %v5151_v12  ;;  %2297 = vmatprep.subr.bf16.mxu1 %v5153_v13  ;;  %v657_v11 = vld [vmem:[%s6843_s27 + $0x530] sm:$0xff]  ;;  %v654_v12 = vld [vmem:[%s6843_s27 + $0x518] sm:$0xff] }
 0x1a0   : > { %v658_v13 = vld [vmem:[%s6843_s27 + $0x538] sm:$0xff]  ;;  %v5215_v15 = vcombine.high %v653_v9, %v657_v11 }
 0x1a1   : > { %v5217_v16 = vcombine.high %v654_v12, %v658_v13  ;;  %v5216_v22 = vcombine.low %v654_v12, %v658_v13  ;;  %v717_v13 = vld [vmem:[%s6843_s27 + $0x710] sm:$0xff] }
 0x1a2   : > { %2216 = vmatpush1.bf16.msra.mxu0 %v5150_v18  ;;  %2298 = vmatpush1.bf16.msra.mxu1 %v5152_v19  ;;  %v665_v18 = vld [vmem:[%s6843_s27 + $0x570] sm:$0xff]  ;;  %v662_v19 = vld [vmem:[%s6843_s27 + $0x558] sm:$0xff] }
 0x1a3   : > { %2217 = vmatprep.subr.bf16.mxu0 %v5159_v20  ;;  %2299 = vmatprep.subr.bf16.mxu1 %v5161_v21  ;;  %v666_v20 = vld [vmem:[%s6843_s27 + $0x578] sm:$0xff]  ;;  %v5214_v21 = vcombine.low %v653_v9, %v657_v11  ;;  %v5223_v23 = vcombine.high %v661_v60, %v665_v18 }
 0x1a4   : > { %v5225_v24 = vcombine.high %v662_v19, %v666_v20  ;;  %v5224_v31 = vcombine.low %v662_v19, %v666_v20  ;;  %v725_v20 = vld [vmem:[%s6843_s27 + $0x750] sm:$0xff] }
 0x1a6   : > { %2218 = vmatpush1.bf16.msra.mxu0 %v5158_v27  ;;  %2300 = vmatpush1.bf16.msra.mxu1 %v5160_v28  ;;  %v673_v27 = vld [vmem:[%s6843_s27 + $0x5b0] sm:$0xff]  ;;  %v670_v28 = vld [vmem:[%s6843_s27 + $0x598] sm:$0xff] }
 0x1a7   : > { %2219 = vmatprep.subr.bf16.mxu0 %v5167_v29  ;;  %2301 = vmatprep.subr.bf16.mxu1 %v5169_v30  ;;  %v674_v29 = vld [vmem:[%s6843_s27 + $0x5b8] sm:$0xff]  ;;  %v5222_v30 = vcombine.low %v661_v60, %v665_v18  ;;  %v5231_v32 = vcombine.high %v669_v25, %v673_v27 }
 0x1a8   : > { %v5233_v33 = vcombine.high %v670_v28, %v674_v29  ;;  %v5232_v40 = vcombine.low %v670_v28, %v674_v29  ;;  %v733_v29 = vld [vmem:[%s6843_s27 + $0x790] sm:$0xff] }
 0x1aa   : > { %2220 = vmatpush1.bf16.msra.mxu0 %v5166_v0  ;;  %2302 = vmatpush1.bf16.msra.mxu1 %v5168_v36  ;;  %v681_v0 = vld [vmem:[%s6843_s27 + $0x5f0] sm:$0xff]  ;;  %v678_v36 = vld [vmem:[%s6843_s27 + $0x5d8] sm:$0xff] }
 0x1ab   : > { %2221 = vmatprep.subr.bf16.mxu0 %v5175_v37  ;;  %2303 = vmatprep.subr.bf16.mxu1 %v5177_v38  ;;  %v682_v37 = vld [vmem:[%s6843_s27 + $0x5f8] sm:$0xff]  ;;  %v5230_v38 = vcombine.low %v669_v25, %v673_v27  ;;  %v5239_v41 = vcombine.high %v677_v34, %v681_v0 }
 0x1ac   : > { %v5241_v42 = vcombine.high %v678_v36, %v682_v37  ;;  %v5240_v17 = vcombine.low %v678_v36, %v682_v37  ;;  %v741_v37 = vld [vmem:[%s6843_s27 + $0x7d0] sm:$0xff] }
 0x1ae   : > { %2222 = vmatpush1.bf16.msra.mxu0 %v5174_v44  ;;  %2304 = vmatpush1.bf16.msra.mxu1 %v5176_v46  ;;  %v689_v44 = vld [vmem:[%s6843_s27 + $0x630] sm:$0xff]  ;;  %v686_v46 = vld [vmem:[%s6843_s27 + $0x618] sm:$0xff] }
 0x1af   : > { %2232 = vmatprep.subr.bf16.mxu0 %v5183_v47  ;;  %2314 = vmatprep.subr.bf16.mxu1 %v5185_v48  ;;  %v690_v47 = vld [vmem:[%s6843_s27 + $0x638] sm:$0xff]  ;;  %v5238_v48 = vcombine.low %v677_v34, %v681_v0  ;;  %v5247_v49 = vcombine.high %v685_v43, %v689_v44 }
 0x1b0   : > { %v5249_v50 = vcombine.high %v686_v46, %v690_v47 }
 0x1b1   : > { %2224 = vmatmul.mubr.bf16.vlgmr.msra.gmra.mrb[4].mxu0 %v6970_v26  ;;  %2306 = vmatmul.mubr.bf16.vlgmr.msra.gmra.mrb[4].mxu1 %v6970_v26  ;;  %v5198_v26 = vcombine.low %v637_v57, %v641_v58  ;;  %v5248_v57 = vcombine.low %v686_v46, %v690_v47 }
 0x1b2   : > { %2233 = vmatpush1.bf16.msra.mxu0 %v5182_v52  ;;  %2315 = vmatpush1.bf16.msra.mxu1 %v5184_v53  ;;  %v697_v52 = vld [vmem:[%s6843_s27 + $0x670] sm:$0xff]  ;;  %v694_v53 = vld [vmem:[%s6843_s27 + $0x658] sm:$0xff] }
 0x1b3   : > { %2234 = vmatprep.subr.bf16.mxu0 %v5191_v55  ;;  %2316 = vmatprep.subr.bf16.mxu1 %v5193_v56  ;;  %v698_v55 = vld [vmem:[%s6843_s27 + $0x678] sm:$0xff]  ;;  %v5246_v56 = vcombine.low %v685_v43, %v689_v44  ;;  %v5255_v58 = vcombine.high %v693_v51, %v697_v52 }
 0x1b4   : > { %2264 = vmatprep.mubr.bf16.mxu0 %v6976_v35  ;;  %2346 = vmatprep.mubr.bf16.mxu1 %v6976_v35  ;;  %v5208_v35 = vcombine.low %v646_v5, %v650_v10  ;;  %v5257_v59 = vcombine.high %v694_v53, %v698_v55  ;;  %v5256_v3 = vcombine.low %v694_v53, %v698_v55  ;;  %v709_v10 = vld [vmem:[%s6843_s27 + $0x6d0] sm:$0xff] }
 0x1b6   : > { %2235 = vmatpush1.bf16.msra.mxu0 %v5190_v62  ;;  %2317 = vmatpush1.bf16.msra.mxu1 %v5192_v63  ;;  %v705_v62 = vld [vmem:[%s6843_s27 + $0x6b0] sm:$0xff]  ;;  %v702_v63 = vld [vmem:[%s6843_s27 + $0x698] sm:$0xff] }
 0x1b7   : > { %2236 = vmatprep.subr.bf16.mxu0 %v5199_v1  ;;  %2318 = vmatprep.subr.bf16.mxu1 %v5201_v2  ;;  %v706_v1 = vld [vmem:[%s6843_s27 + $0x6b8] sm:$0xff]  ;;  %v5254_v2 = vcombine.low %v693_v51, %v697_v52  ;;  %v5263_v4 = vcombine.high %v701_v61, %v705_v62 }
 0x1b8   : > { %v5265_v5 = vcombine.high %v702_v63, %v706_v1  ;;  %v5264_v9 = vcombine.low %v702_v63, %v706_v1 }
 0x1ba   : > { %2237 = vmatpush1.bf16.msra.mxu0 %v5198_v26  ;;  %2319 = vmatpush1.bf16.msra.mxu1 %v5200_v6  ;;  %v713_v26 = vld [vmem:[%s6843_s27 + $0x6f0] sm:$0xff]  ;;  %v710_v6 = vld [vmem:[%s6843_s27 + $0x6d8] sm:$0xff] }
 0x1bb   : > { %2238 = vmatprep.subr.bf16.mxu0 %v5207_v7  ;;  %2320 = vmatprep.subr.bf16.mxu1 %v5209_v8  ;;  %v714_v7 = vld [vmem:[%s6843_s27 + $0x6f8] sm:$0xff]  ;;  %v5262_v8 = vcombine.low %v701_v61, %v705_v62  ;;  %v5271_v11 = vcombine.high %v709_v10, %v713_v26  ;;  %v462_v62 = vld [vmem:[#allocation2] sm:$0xff] }
 0x1bc   : > { %v5273_v12 = vcombine.high %v710_v6, %v714_v7  ;;  %v5272_v60 = vcombine.low %v710_v6, %v714_v7 }
 0x1be   : > { %2239 = vmatpush1.bf16.msra.mxu0 %v5206_v14  ;;  %2321 = vmatpush1.bf16.msra.mxu1 %v5208_v35  ;;  %v721_v14 = vld [vmem:[%s6843_s27 + $0x730] sm:$0xff]  ;;  %v718_v35 = vld [vmem:[%s6843_s27 + $0x718] sm:$0xff] }
 0x1bf   : > { %2240 = vmatprep.subr.bf16.mxu0 %v5215_v15  ;;  %2322 = vmatprep.subr.bf16.mxu1 %v5217_v16  ;;  %v722_v15 = vld [vmem:[%s6843_s27 + $0x738] sm:$0xff]  ;;  %v5270_v16 = vcombine.low %v709_v10, %v713_v26  ;;  %v5279_v18 = vcombine.high %v717_v13, %v721_v14 }
 0x1c0   : > { %v5281_v19 = vcombine.high %v718_v35, %v722_v15  ;;  %v5280_v25 = vcombine.low %v718_v35, %v722_v15  ;;  %v2791_v35 = vld [vmem:[#allocation11] sm:$0xff] (!%p5306_p5)  ;;  %v2792_v15 = vld [vmem:[#allocation11 + $0x8] sm:$0xff] (!%p5306_p5) }
 0x1c2   : > { %2241 = vmatpush1.bf16.msra.mxu0 %v5214_v21  ;;  %2323 = vmatpush1.bf16.msra.mxu1 %v5216_v22  ;;  %v729_v21 = vld [vmem:[%s6843_s27 + $0x770] sm:$0xff]  ;;  %v726_v22 = vld [vmem:[%s6843_s27 + $0x758] sm:$0xff] }
 0x1c3   : > { %2242 = vmatprep.subr.bf16.mxu0 %v5223_v23  ;;  %2324 = vmatprep.subr.bf16.mxu1 %v5225_v24  ;;  %v730_v23 = vld [vmem:[%s6843_s27 + $0x778] sm:$0xff]  ;;  %v5278_v24 = vcombine.low %v717_v13, %v721_v14  ;;  %v5287_v27 = vcombine.high %v725_v20, %v729_v21 }
 0x1c4   : > { %v5289_v28 = vcombine.high %v726_v22, %v730_v23  ;;  %v5288_v34 = vcombine.low %v726_v22, %v730_v23  ;;  %v5803_v22 = vld [vmem:[#allocation9 + $0x4] ss:$16 sps:$4 sm:$0xff] (!%p5306_p5)  }
 0x1c6   : > { %2243 = vmatpush1.bf16.msra.mxu0 %v5222_v30  ;;  %2325 = vmatpush1.bf16.msra.mxu1 %v5224_v31  ;;  %v737_v30 = vld [vmem:[%s6843_s27 + $0x7b0] sm:$0xff]  ;;  %v734_v31 = vld [vmem:[%s6843_s27 + $0x798] sm:$0xff] }
 0x1c7   : > { %2244 = vmatprep.subr.bf16.mxu0 %v5231_v32  ;;  %2326 = vmatprep.subr.bf16.mxu1 %v5233_v33  ;;  %v738_v32 = vld [vmem:[%s6843_s27 + $0x7b8] sm:$0xff]  ;;  %v5286_v33 = vcombine.low %v725_v20, %v729_v21  ;;  %v5295_v0 = vcombine.high %v733_v29, %v737_v30  ;;  %v5309_v20 = vcombine.low (!%p5306_p5), %v2792_v15, %v2792_v15  ;;  %v6541_v21 = vmov (!%p5306_p5), 0  }
 0x1c8   : > { %v5297_v36 = vcombine.high %v734_v31, %v738_v32  ;;  %v5296_v43 = vcombine.low %v734_v31, %v738_v32  ;;  %v5812_v31 = vld [vmem:[#allocation9 + $0x224] ss:$16 sps:$4 sm:$0xff] (!%p5306_p5)   ;;  %v5807_v32 = vld [vmem:[#allocation9 + $0x20] ss:$16 sps:$4 sm:$0xff] (!%p5306_p5)  }
 0x1ca   : > { %2245 = vmatpush1.bf16.msra.mxu0 %v5230_v38  ;;  %2327 = vmatpush1.bf16.msra.mxu1 %v5232_v40  ;;  %v745_v38 = vld [vmem:[%s6843_s27 + $0x7f0] sm:$0xff]  ;;  %v742_v40 = vld [vmem:[%s6843_s27 + $0x7d8] sm:$0xff] }
 0x1cb   : > { %2246 = vmatprep.subr.bf16.mxu0 %v5239_v41  ;;  %2328 = vmatprep.subr.bf16.mxu1 %v5241_v42  ;;  %v746_v41 = vld [vmem:[%s6843_s27 + $0x7f8] sm:$0xff]  ;;  %v5294_v42 = vcombine.low %v733_v29, %v737_v30  ;;  %v5303_v44 = vcombine.high %v741_v37, %v745_v38  ;;  %v5302_v47 = vcombine.low %v741_v37, %v745_v38 }
 0x1cc   : > { %v5305_v46 = vcombine.high %v742_v40, %v746_v41  ;;  %v5804_v29 = vld [vmem:[#allocation9 + $0x200] ss:$16 sps:$4 sm:$0xff] (!%p5306_p5)   ;;  %v5809_v30 = vld [vmem:[#allocation9 + $0x24] ss:$16 sps:$4 sm:$0xff] (!%p5306_p5)  }
 0x1cd   : > { %v5816_v37 = vld [vmem:[#allocation9 + $0x240] ss:$16 sps:$4 sm:$0xff] (!%p5306_p5)   ;;  %v5821_v38 = vld [vmem:[#allocation9 + $0x64] ss:$16 sps:$4 sm:$0xff] (!%p5306_p5)  }
 0x1ce   : > { %2247 = vmatpush1.bf16.msra.mxu0 %v5238_v48  ;;  %2329 = vmatpush1.bf16.msra.mxu1 %v5240_v17  ;;  %v5304_v48 = vcombine.low %v742_v40, %v746_v41  ;;  %v5824_v40 = vld [vmem:[#allocation9 + $0x264] ss:$16 sps:$4 sm:$0xff] (!%p5306_p5)   ;;  %v5819_v41 = vld [vmem:[#allocation9 + $0x60] ss:$16 sps:$4 sm:$0xff] (!%p5306_p5)  }
 0x1cf   : > { %2248 = vmatprep.subr.bf16.mxu0 %v5247_v49  ;;  %2330 = vmatprep.subr.bf16.mxu1 %v5249_v50 }
 0x1d2   : > { %2249 = vmatpush1.bf16.msra.mxu0 %v5246_v56  ;;  %2331 = vmatpush1.bf16.msra.mxu1 %v5248_v57 }
 0x1d3   : > { %2250 = vmatprep.subr.bf16.mxu0 %v5255_v58  ;;  %2332 = vmatprep.subr.bf16.mxu1 %v5257_v59 }
 0x1d6   : > { %2251 = vmatpush1.bf16.msra.mxu0 %v5254_v2  ;;  %2333 = vmatpush1.bf16.msra.mxu1 %v5256_v3 }
 0x1d7   : > { %2252 = vmatprep.subr.bf16.mxu0 %v5263_v4  ;;  %2334 = vmatprep.subr.bf16.mxu1 %v5265_v5 }
 0x1da   : > { %2253 = vmatpush1.bf16.msra.mxu0 %v5262_v8  ;;  %2335 = vmatpush1.bf16.msra.mxu1 %v5264_v9 }
 0x1db   : > { %2254 = vmatprep.subr.bf16.mxu0 %v5271_v11  ;;  %2336 = vmatprep.subr.bf16.mxu1 %v5273_v12  ;;  %v463_v12 = vld [vmem:[#allocation2 + $0x8] sm:$0xff] }
 0x1de   : > { %2255 = vmatpush1.bf16.msra.mxu0 %v5270_v16  ;;  %2337 = vmatpush1.bf16.msra.mxu1 %v5272_v60  ;;  %v2789_v16 = vld [vmem:[#allocation8] sm:$0x3] (!%p5306_p5)  ;;  %v5308_v60 = vcombine.high (!%p5306_p5), %v2791_v35, %v2791_v35 }
 0x1df   : > { %2256 = vmatprep.subr.bf16.mxu0 %v5279_v18  ;;  %2338 = vmatprep.subr.bf16.mxu1 %v5281_v19  ;;  %v5310_v18 = vcombine.high (!%p5306_p5), %v2792_v15, %v2792_v15  ;;  %v5307_v19 = vcombine.low (!%p5306_p5), %v2791_v35, %v2791_v35 }
 0x1e1   : > { %v2809_v23 = vsel (!%p5306_p5), %vm2807_vm0, %v5307_v19, 0  ;;  %v5867_v19 = vld [vmem:[#allocation9 + $0x160] ss:$16 sps:$4 sm:$0xff] (!%p5306_p5)  }
 0x1e2   : > { %2257 = vmatpush1.bf16.msra.mxu0 %v5278_v24  ;;  %2339 = vmatpush1.bf16.msra.mxu1 %v5280_v25  ;;  %v2815_v24 = vsel (!%p5306_p5), %vm2807_vm0, %v5309_v20, 0  ;;  %v2790_v25 = vpack.c.bf16 (!%p5306_p5), %v2789_v16, %v2789_v16  ;;  %v5870_v20 = vld [vmem:[#allocation9 + $0x360] ss:$16 sps:$4 sm:$0xff] (!%p5306_p5)  }
 0x1e3   : > { %2258 = vmatprep.subr.bf16.mxu0 %v5287_v27  ;;  %2340 = vmatprep.subr.bf16.mxu1 %v5289_v28  ;;  %v5801_v27 = vld [vmem:[#allocation9] ss:$16 sps:$4 sm:$0xff] (!%p5306_p5)   ;;  %v5806_v28 = vld [vmem:[#allocation9 + $0x204] ss:$16 sps:$4 sm:$0xff] (!%p5306_p5)  }
 0x1e6   : > { %2259 = vmatpush1.bf16.msra.mxu0 %v5286_v33  ;;  %2341 = vmatpush1.bf16.msra.mxu1 %v5288_v34  ;;  %v5810_v33 = vld [vmem:[#allocation9 + $0x220] ss:$16 sps:$4 sm:$0xff] (!%p5306_p5)   ;;  %v5815_v34 = vld [vmem:[#allocation9 + $0x44] ss:$16 sps:$4 sm:$0xff] (!%p5306_p5)  }
 0x1e7   : > { %2260 = vmatprep.subr.bf16.mxu0 %v5295_v0  ;;  %2342 = vmatprep.subr.bf16.mxu1 %v5297_v36  ;;  %v5818_v0 = vld [vmem:[#allocation9 + $0x244] ss:$16 sps:$4 sm:$0xff] (!%p5306_p5)   ;;  %v5813_v36 = vld [vmem:[#allocation9 + $0x40] ss:$16 sps:$4 sm:$0xff] (!%p5306_p5)  }
 0x1ea   : > { %2261 = vmatpush1.bf16.msra.mxu0 %v5294_v42  ;;  %2343 = vmatpush1.bf16.msra.mxu1 %v5296_v43  ;;  %v5822_v42 = vld [vmem:[#allocation9 + $0x260] ss:$16 sps:$4 sm:$0xff] (!%p5306_p5)   ;;  %v5827_v43 = vld [vmem:[#allocation9 + $0x84] ss:$16 sps:$4 sm:$0xff] (!%p5306_p5)  }
 0x1eb   : > { %2262 = vmatprep.subr.bf16.mxu0 %v5303_v44  ;;  %2344 = vmatprep.subr.bf16.mxu1 %v5305_v46  ;;  %v5830_v44 = vld [vmem:[#allocation9 + $0x284] ss:$16 sps:$4 sm:$0xff] (!%p5306_p5)   ;;  %v5825_v46 = vld [vmem:[#allocation9 + $0x80] ss:$16 sps:$4 sm:$0xff] (!%p5306_p5)  }
 0x1ee   : > { %2263 = vmatpush1.bf16.msra.mxu0 %v5302_v47  ;;  %2345 = vmatpush1.bf16.msra.mxu1 %v5304_v48  ;;  %v5828_v47 = vld [vmem:[#allocation9 + $0x280] ss:$16 sps:$4 sm:$0xff] (!%p5306_p5)   ;;  %v5833_v48 = vld [vmem:[#allocation9 + $0xa4] ss:$16 sps:$4 sm:$0xff] (!%p5306_p5)  }
 0x1ef   : > { %5311 = vmatprep.subr.msk.bf16.mxu0 (!%p5306_p5), %vm2807_vm0, %v5308_v60  ;;  %5313 = vmatprep.subr.msk.bf16.mxu1 (!%p5306_p5), %vm2807_vm0, %v5310_v18 }
 0x1f1   : > { %2265 = vmatmul.mubr.bf16.vlgmr.msra.gmra.mrb[4].mxu0 %v7044_v39  ;;  %2347 = vmatmul.mubr.bf16.vlgmr.msra.gmra.mrb[4].mxu1 %v7044_v39 }
 0x1f2   : > { %2852 = vmatprep.mubr.bf16.mxu0 (!%p5306_p5), %v6541_v21  ;;  %2893 = vmatprep.mubr.bf16.mxu1 (!%p5306_p5), %v6541_v21 }
 0x1f3   : > { %2821 = vmatpush1.bf16.msra.mxu0 (!%p5306_p5), %v2809_v23  ;;  %2862 = vmatpush1.bf16.msra.mxu1 (!%p5306_p5), %v2815_v24  ;;  %v5878_v23 = vld [vmem:[#allocation9 + $0x384] ss:$16 sps:$4 sm:$0xff] (!%p5306_p5)  }
 0x1f4   : > { %4182 = vmatprep.subr.bf16.mxu0 (!%p5306_p5), %v5803_v22  ;;  %4223 = vmatprep.subr.bf16.mxu1 (!%p5306_p5), %v5806_v28  ;;  %v5875_v22 = vld [vmem:[#allocation9 + $0x184] ss:$16 sps:$4 sm:$0xff] (!%p5306_p5)   ;;  %v5873_v28 = vld [vmem:[#allocation9 + $0x180] ss:$16 sps:$4 sm:$0xff] (!%p5306_p5)  }
 0x244   : > { %v2102_v17 = vpop.f32.mrb[0].mxu0  ;;  %v2184_v49 = vpop.f32.mrb[0].mxu1 }
 0x245   : > { %v2104_v50 = vpop.f32.mrb[1].mxu0  ;;  %v2186_v52 = vpop.f32.mrb[1].mxu1 }
 0x246   : > { %v2363_v51 = vcombine.low %v2102_v17, %v2104_v50  ;;  %v2106_v53 = vpop.f32.mrb[2].mxu0  ;;  %v2364_v55 = vcombine.low %v2184_v49, %v2186_v52  ;;  %v2188_v56 = vpop.f32.mrb[2].mxu1  ;;  %v5836_v17 = vld [vmem:[#allocation9 + $0x2a4] ss:$16 sps:$4 sm:$0xff] (!%p5306_p5)   ;;  %v5831_v49 = vld [vmem:[#allocation9 + $0xa0] ss:$16 sps:$4 sm:$0xff] (!%p5306_p5)  }
 0x247   : > { %v2107_v57 = vpop.f32.mrb[3].mxu0  ;;  %v2189_v59 = vpop.f32.mrb[3].mxu1  ;;  %5312 = vmatmul.mubr.msk.bf16.vlgmr.msra.gmra.mrb[0].mxu0 (!%p5306_p5), %vm2803_vm1, %v2790_v25  ;;  %5314 = vmatmul.mubr.msk.bf16.vlgmr.msra.gmra.mrb[0].mxu1 (!%p5306_p5), %vm2803_vm1, %v2790_v25  ;;  %v5834_v50 = vld [vmem:[#allocation9 + $0x2a0] ss:$16 sps:$4 sm:$0xff] (!%p5306_p5)   ;;  %v5842_v52 = vld [vmem:[#allocation9 + $0x2c4] ss:$16 sps:$4 sm:$0xff] (!%p5306_p5)  }
 0x248   : > { %v2371_v58 = vrot.slane %v2363_v51, %v6902_v54  ;;  %v2378_v61 = vrot.slane %v2364_v55, %v6902_v54  ;;  %4183 = vmatpush1.bf16.msra.mxu0 (!%p5306_p5), %v5801_v27  ;;  %4224 = vmatpush1.bf16.msra.mxu1 (!%p5306_p5), %v5804_v29  ;;  %v5839_v51 = vld [vmem:[#allocation9 + $0xc4] ss:$16 sps:$4 sm:$0xff] (!%p5306_p5)   ;;  %v5837_v53 = vld [vmem:[#allocation9 + $0xc0] ss:$16 sps:$4 sm:$0xff] (!%p5306_p5)  }
 0x249   : > { %4184 = vmatprep.subr.bf16.mxu0 (!%p5306_p5), %v5809_v30  ;;  %4225 = vmatprep.subr.bf16.mxu1 (!%p5306_p5), %v5812_v31  ;;  %v5840_v55 = vld [vmem:[#allocation9 + $0x2c0] ss:$16 sps:$4 sm:$0xff] (!%p5306_p5)   ;;  %v5845_v56 = vld [vmem:[#allocation9 + $0xe4] ss:$16 sps:$4 sm:$0xff] (!%p5306_p5)  }
 0x24a   : > { %v2379_v63 = vcombine.low %v2371_v58, %v2378_v61  ;;  %v5848_v57 = vld [vmem:[#allocation9 + $0x2e4] ss:$16 sps:$4 sm:$0xff] (!%p5306_p5)   ;;  %v5843_v58 = vld [vmem:[#allocation9 + $0xe0] ss:$16 sps:$4 sm:$0xff] (!%p5306_p5)  }
 0x24b   : > { %v5846_v59 = vld [vmem:[#allocation9 + $0x2e0] ss:$16 sps:$4 sm:$0xff] (!%p5306_p5)   ;;  %v5851_v61 = vld [vmem:[#allocation9 + $0x104] ss:$16 sps:$4 sm:$0xff] (!%p5306_p5)  }
 0x24c   : > { %v2399_v1 = vadd.f32 %v2379_v63, %v462_v62  ;;  %4185 = vmatpush1.bf16.msra.mxu0 (!%p5306_p5), %v5807_v32  ;;  %4226 = vmatpush1.bf16.msra.mxu1 (!%p5306_p5), %v5810_v33  ;;  %v5854_v62 = vld [vmem:[#allocation9 + $0x304] ss:$16 sps:$4 sm:$0xff] (!%p5306_p5)   ;;  %v5849_v63 = vld [vmem:[#allocation9 + $0x100] ss:$16 sps:$4 sm:$0xff] (!%p5306_p5)  }
 0x24d   : > { %4186 = vmatprep.subr.bf16.mxu0 (!%p5306_p5), %v5815_v34  ;;  %4227 = vmatprep.subr.bf16.mxu1 (!%p5306_p5), %v5818_v0  ;;  %v5876_v29 = vld [vmem:[#allocation9 + $0x380] ss:$16 sps:$4 sm:$0xff] (!%p5306_p5)   ;;  %v5881_v31 = vld [vmem:[#allocation9 + $0x1a4] ss:$16 sps:$4 sm:$0xff] (!%p5306_p5)  }
 0x24e   : > { %2401 = vst [vmem:[#allocation2] sm:$0xff] %v2399_v1  ;;  %v5852_v1 = vld [vmem:[#allocation9 + $0x300] ss:$16 sps:$4 sm:$0xff] (!%p5306_p5)   ;;  %v5884_v32 = vld [vmem:[#allocation9 + $0x3a4] ss:$16 sps:$4 sm:$0xff] (!%p5306_p5)  }
 0x24f   : > { %v5879_v34 = vld [vmem:[#allocation9 + $0x1a0] ss:$16 sps:$4 sm:$0xff] (!%p5306_p5)  }
 0x250   : > { %4187 = vmatpush1.bf16.msra.mxu0 (!%p5306_p5), %v5813_v36  ;;  %4228 = vmatpush1.bf16.msra.mxu1 (!%p5306_p5), %v5816_v37  ;;  %v5882_v0 = vld [vmem:[#allocation9 + $0x3a0] ss:$16 sps:$4 sm:$0xff] (!%p5306_p5)  }
 0x251   : > { %4188 = vmatprep.subr.bf16.mxu0 (!%p5306_p5), %v5821_v38  ;;  %4229 = vmatprep.subr.bf16.mxu1 (!%p5306_p5), %v5824_v40  ;;  %v5887_v38 = vld [vmem:[#allocation9 + $0x1c4] ss:$16 sps:$4 sm:$0xff] (!%p5306_p5)  }
 0x252   : > { %v5890_v40 = vld [vmem:[#allocation9 + $0x3c4] ss:$16 sps:$4 sm:$0xff] (!%p5306_p5)  }
 0x254   : > { %4189 = vmatpush1.bf16.msra.mxu0 (!%p5306_p5), %v5819_v41  ;;  %4230 = vmatpush1.bf16.msra.mxu1 (!%p5306_p5), %v5822_v42 }
 0x255   : > { %4190 = vmatprep.subr.bf16.mxu0 (!%p5306_p5), %v5827_v43  ;;  %4231 = vmatprep.subr.bf16.mxu1 (!%p5306_p5), %v5830_v44  ;;  %v2407_v27 = vld [vmem:[#allocation2] sm:$0xff] (!%p5306_p5)  ;;  %v5885_v43 = vld [vmem:[#allocation9 + $0x1c0] ss:$16 sps:$4 sm:$0xff] (!%p5306_p5)  }
 0x256   : > { %v5888_v44 = vld [vmem:[#allocation9 + $0x3c0] ss:$16 sps:$4 sm:$0xff] (!%p5306_p5)  }
 0x258   : > { %4191 = vmatpush1.bf16.msra.mxu0 (!%p5306_p5), %v5825_v46  ;;  %4232 = vmatpush1.bf16.msra.mxu1 (!%p5306_p5), %v5828_v47 }
 0x259   : > { %4192 = vmatprep.subr.bf16.mxu0 (!%p5306_p5), %v5833_v48  ;;  %4233 = vmatprep.subr.bf16.mxu1 (!%p5306_p5), %v5836_v17  ;;  %v5893_v48 = vld [vmem:[#allocation9 + $0x1e4] ss:$16 sps:$4 sm:$0xff] (!%p5306_p5)  }
 0x25a   : > { %v5896_v17 = vld [vmem:[#allocation9 + $0x3e4] ss:$16 sps:$4 sm:$0xff] (!%p5306_p5)  }
 0x25c   : > { %4193 = vmatpush1.bf16.msra.mxu0 (!%p5306_p5), %v5831_v49  ;;  %4234 = vmatpush1.bf16.msra.mxu1 (!%p5306_p5), %v5834_v50  ;;  %v5891_v50 = vld [vmem:[#allocation9 + $0x1e0] ss:$16 sps:$4 sm:$0xff] (!%p5306_p5)  }
 0x25d   : > { %4194 = vmatprep.subr.bf16.mxu0 (!%p5306_p5), %v5839_v51  ;;  %4235 = vmatprep.subr.bf16.mxu1 (!%p5306_p5), %v5842_v52  ;;  %v5894_v51 = vld [vmem:[#allocation9 + $0x3e0] ss:$16 sps:$4 sm:$0xff] (!%p5306_p5)   ;;  %v5899_v52 = vld [vmem:[#allocation9 + $0x404] ss:$16 sps:$4 sm:$0xff] (!%p5306_p5)  }
 0x260   : > { %4195 = vmatpush1.bf16.msra.mxu0 (!%p5306_p5), %v5837_v53  ;;  %4236 = vmatpush1.bf16.msra.mxu1 (!%p5306_p5), %v5840_v55  ;;  %v5902_v53 = vld [vmem:[#allocation9 + $0x604] ss:$16 sps:$4 sm:$0xff] (!%p5306_p5)   ;;  %v2429_v55 = vsub.s32 (!%p5306_p5), 4, %v6895_v45 }
 0x261   : > { %4196 = vmatprep.subr.bf16.mxu0 (!%p5306_p5), %v5845_v56  ;;  %4237 = vmatprep.subr.bf16.mxu1 (!%p5306_p5), %v5848_v57 }
 0x264   : > { %4197 = vmatpush1.bf16.msra.mxu0 (!%p5306_p5), %v5843_v58  ;;  %4238 = vmatpush1.bf16.msra.mxu1 (!%p5306_p5), %v5846_v59  ;;  %v2433_v58 = vsub.s32 (!%p5306_p5), 5, %v6895_v45  ;;  %v2437_v59 = vsub.s32 (!%p5306_p5), 6, %v6895_v45 }
 0x265   : > { %4198 = vmatprep.subr.bf16.mxu0 (!%p5306_p5), %v5851_v61  ;;  %4239 = vmatprep.subr.bf16.mxu1 (!%p5306_p5), %v5854_v62  ;;  %v5897_v61 = vld [vmem:[#allocation9 + $0x400] ss:$16 sps:$4 sm:$0xff] (!%p5306_p5)  }
 0x266   : > { %v5900_v62 = vld [vmem:[#allocation9 + $0x600] ss:$16 sps:$4 sm:$0xff] (!%p5306_p5)  }
 0x268   : > { %4199 = vmatpush1.bf16.msra.mxu0 (!%p5306_p5), %v5849_v63  ;;  %4240 = vmatpush1.bf16.msra.mxu1 (!%p5306_p5), %v5852_v1  ;;  %v2441_v63 = vsub.s32 (!%p5306_p5), 7, %v6895_v45  ;;  %v5905_v1 = vld [vmem:[#allocation9 + $0x424] ss:$16 sps:$4 sm:$0xff] (!%p5306_p5)  }
 0x2c4   : > { %v2266_v2 = vpop.f32.mrb[4].mxu0  ;;  %v2348_v39 = vpop.f32.mrb[4].mxu1 }
 0x2c5   : > { %v2268_v3 = vpop.f32.mrb[5].mxu0  ;;  %v2350_v5 = vpop.f32.mrb[5].mxu1 }
 0x2c6   : > { %v2380_v4 = vcombine.low %v2266_v2, %v2268_v3  ;;  %v2270_v10 = vpop.f32.mrb[6].mxu0  ;;  %v2381_v26 = vcombine.low %v2348_v39, %v2350_v5  ;;  %v2352_v6 = vpop.f32.mrb[6].mxu1  ;;  %v5857_v2 = vld [vmem:[#allocation9 + $0x124] ss:$16 sps:$4 sm:$0xff] (!%p5306_p5)   ;;  %v5855_v3 = vld [vmem:[#allocation9 + $0x120] ss:$16 sps:$4 sm:$0xff] (!%p5306_p5)  }
 0x2c7   : > { %v2271_v7 = vpop.f32.mrb[7].mxu0  ;;  %v2353_v9 = vpop.f32.mrb[7].mxu1  ;;  %v5860_v39 = vld [vmem:[#allocation9 + $0x324] ss:$16 sps:$4 sm:$0xff] (!%p5306_p5)   ;;  %v2413_v10 = vsub.s32 (!%p5306_p5), 0, %v6895_v45  ;;  %4200 = vmatprep.subr.bf16.mxu0 (!%p5306_p5), %v5857_v2  ;;  %v2417_v6 = vsub.s32 (!%p5306_p5), 1, %v6895_v45 }
 0x2c8   : > { %v2388_v8 = vrot.slane %v2380_v4, %v6902_v54  ;;  %v2395_v11 = vrot.slane %v2381_v26, %v6902_v54  ;;  %2406 = sbr.rel (%p5306_p5) target bundleno = 1373 (0x55d), region = 96  ;;  %v5858_v4 = vld [vmem:[#allocation9 + $0x320] ss:$16 sps:$4 sm:$0xff] (!%p5306_p5)   ;;  %v5863_v5 = vld [vmem:[#allocation9 + $0x144] ss:$16 sps:$4 sm:$0xff] (!%p5306_p5)   ;;  %4241 = vmatprep.subr.bf16.mxu1 (!%p5306_p5), %v5860_v39  ;;  %v2421_v7 = vsub.s32 (!%p5306_p5), 2, %v6895_v45  ;;  %4201 = vmatpush1.bf16.msra.mxu0 (!%p5306_p5), %v5855_v3 }
 0x2c9   : > { %v5866_v26 = vld [vmem:[#allocation9 + $0x344] ss:$16 sps:$4 sm:$0xff] (!%p5306_p5)   ;;  %v5861_v9 = vld [vmem:[#allocation9 + $0x140] ss:$16 sps:$4 sm:$0xff] (!%p5306_p5)   ;;  %4242 = vmatpush1.bf16.msra.mxu1 (!%p5306_p5), %v5858_v4  ;;  %4202 = vmatprep.subr.bf16.mxu0 (!%p5306_p5), %v5863_v5 }
 0x2ca   : > { %v2396_v13 = vcombine.low %v2388_v8, %v2395_v11  ;;  %v2425_v8 = vsub.s32 (!%p5306_p5), 3, %v6895_v45  ;;  %v5864_v11 = vld [vmem:[#allocation9 + $0x340] ss:$16 sps:$4 sm:$0xff] (!%p5306_p5)   ;;  %4243 = vmatprep.subr.bf16.mxu1 (!%p5306_p5), %v5866_v26  ;;  %v5908_v2 = vld [vmem:[#allocation9 + $0x624] ss:$16 sps:$4 sm:$0xff] (!%p5306_p5)  }
 0x2cb   : > { %v5903_v3 = vld [vmem:[#allocation9 + $0x420] ss:$16 sps:$4 sm:$0xff] (!%p5306_p5)  }
 0x2cc   : > { %v2400_v14 = vadd.f32 %v2396_v13, %v463_v12  ;;  %v7187_v12 = vld [vmem:[#allocation6] sm:$0xff] (!%p5306_p5)  ;;  %4203 = vmatpush1.bf16.msra.mxu0 (!%p5306_p5), %v5861_v9  ;;  %v5906_v4 = vld [vmem:[#allocation9 + $0x620] ss:$16 sps:$4 sm:$0xff] (!%p5306_p5)  }
 0x2cd   : > { %v5869_v13 = vld [vmem:[#allocation9 + $0x164] ss:$16 sps:$4 sm:$0xff] (!%p5306_p5)   ;;  %v2414_v35 = vrot.slane (!%p5306_p5), %v7187_v12, %v2413_v10  ;;  %v2418_v15 = vrot.slane (!%p5306_p5), %v7187_v12, %v2417_v6  ;;  %v2422_v16 = vrot.slane (!%p5306_p5), %v7187_v12, %v2421_v7  ;;  %v2426_v60 = vrot.slane (!%p5306_p5), %v7187_v12, %v2425_v8  ;;  %4244 = vmatpush1.bf16.msra.mxu1 (!%p5306_p5), %v5864_v11 }
 0x2ce   : > { %2402 = vst [vmem:[#allocation2 + $0x8] sm:$0xff] %v2400_v14  ;;  %v5872_v14 = vld [vmem:[#allocation9 + $0x364] ss:$16 sps:$4 sm:$0xff] (!%p5306_p5)   ;;  %4204 = vmatprep.subr.bf16.mxu0 (!%p5306_p5), %v5869_v13  ;;  %v2430_v39 = vrot.slane (!%p5306_p5), %v7187_v12, %v2429_v55  ;;  %v2434_v5 = vrot.slane (!%p5306_p5), %v7187_v12, %v2433_v58  ;;  %v2438_v26 = vrot.slane (!%p5306_p5), %v7187_v12, %v2437_v59  ;;  %v5948_v55 = vld [vmem:[#allocation9 + $0x700] ss:$16 sps:$4 sm:$0xff] (!%p5306_p5)  }
 0x2cf   : > { %v2443_v18 = vcombine.low %v2414_v35, %v2418_v15  ;;  %v2444_v21 = vcombine.low %v2422_v16, %v2426_v60  ;;  %4245 = vmatprep.subr.bf16.mxu1 %v5872_v14  ;;  %v2442_v9 = vrot.slane %v7187_v12, %v2441_v63  ;;  %v5911_v11 = vld [vmem:[#allocation9 + $0x444] ss:$16 sps:$4 sm:$0xff]   ;;  %v5909_v14 = vld [vmem:[#allocation9 + $0x440] ss:$16 sps:$4 sm:$0xff]  }
 0x2d0   : > { %4205 = vmatpush1.bf16.msra.mxu0 %v5867_v19  ;;  %v5914_v13 = vld [vmem:[#allocation9 + $0x644] ss:$16 sps:$4 sm:$0xff]   ;;  %v5912_v35 = vld [vmem:[#allocation9 + $0x640] ss:$16 sps:$4 sm:$0xff]   ;;  %v2460_v15 = vcombine.low %v2430_v39, %v2434_v5 }
 0x2d1   : > { %v2451_v24 = vrot.slane %v2443_v18, %v6902_v54  ;;  %v2458_v25 = vrot.slane %v2444_v21, %v6902_v54  ;;  %4246 = vmatpush1.bf16.msra.mxu1 %v5870_v20  ;;  %4206 = vmatprep.subr.bf16.mxu0 %v5875_v22  ;;  %v2461_v16 = vcombine.low %v2438_v26, %v2442_v9  ;;  %v5917_v60 = vld [vmem:[#allocation9 + $0x464] ss:$16 sps:$4 sm:$0xff]   ;;  %v5915_v19 = vld [vmem:[#allocation9 + $0x460] ss:$16 sps:$4 sm:$0xff]  }
 0x2d2   : > { %4247 = vmatprep.subr.bf16.mxu1 %v5878_v23  ;;  %v5920_v18 = vld [vmem:[#allocation9 + $0x664] ss:$16 sps:$4 sm:$0xff]   ;;  %v5918_v20 = vld [vmem:[#allocation9 + $0x660] ss:$16 sps:$4 sm:$0xff]   ;;  %v2468_v12 = vrot.slane %v2460_v15, %v6902_v54 }
 0x2d3   : > { %v2459_v30 = vcombine.low %v2451_v24, %v2458_v25  ;;  %v2475_v21 = vrot.slane %v2461_v16, %v6902_v54  ;;  %v5923_v22 = vld [vmem:[#allocation9 + $0x484] ss:$16 sps:$4 sm:$0xff]   ;;  %v5921_v24 = vld [vmem:[#allocation9 + $0x480] ss:$16 sps:$4 sm:$0xff]  }
 0x2d4   : > { %4207 = vmatpush1.bf16.msra.mxu0 %v5873_v28  ;;  %v5926_v23 = vld [vmem:[#allocation9 + $0x684] ss:$16 sps:$4 sm:$0xff]   ;;  %v5924_v25 = vld [vmem:[#allocation9 + $0x680] ss:$16 sps:$4 sm:$0xff]  }
 0x2d5   : > { %v2479_v33 = vadd.f32 %v2459_v30, %v2407_v27  ;;  %4248 = vmatpush1.bf16.msra.mxu1 %v5876_v29  ;;  %4208 = vmatprep.subr.bf16.mxu0 %v5881_v31  ;;  %v2476_v27 = vcombine.low %v2468_v12, %v2475_v21  ;;  %v5929_v28 = vld [vmem:[#allocation9 + $0x4a4] ss:$16 sps:$4 sm:$0xff]   ;;  %v5927_v30 = vld [vmem:[#allocation9 + $0x4a0] ss:$16 sps:$4 sm:$0xff]  }
 0x2d6   : > { %4249 = vmatprep.subr.bf16.mxu1 %v5884_v32  ;;  %v5932_v29 = vld [vmem:[#allocation9 + $0x6a4] ss:$16 sps:$4 sm:$0xff]   ;;  %v5930_v32 = vld [vmem:[#allocation9 + $0x6a0] ss:$16 sps:$4 sm:$0xff]  }
 0x2d7   : > { %v2490_v36 = vrot.slane %v2479_v33, %v6902_v54  ;;  %v2483_v37 = vcombine.high %v2479_v33, %v2479_v33  ;;  %v2408_v31 = vld [vmem:[#allocation2 + $0x8] sm:$0xff] }
 0x2d8   : > { %4209 = vmatpush1.bf16.msra.mxu0 %v5879_v34  ;;  %v5935_v33 = vld [vmem:[#allocation9 + $0x4c4] ss:$16 sps:$4 sm:$0xff]   ;;  %v2480_v34 = vadd.f32 %v2476_v27, %v2408_v31  ;;  %v5960_v39 = vld [vmem:[#allocation9 + $0x740] ss:$16 sps:$4 sm:$0xff]   ;;  %v5998_v27 = vld [vmem:[#allocation9 + $0x20c] ss:$16 sps:$4 sm:$0xff]  }
 0x2d9   : > { %v2498_v41 = vcombine.high %v2490_v36, %v2490_v36  ;;  %v2497_v42 = vrot.slane %v2483_v37, %v6902_v54  ;;  %4250 = vmatpush1.bf16.msra.mxu1 %v5882_v0  ;;  %4210 = vmatprep.subr.bf16.mxu0 %v5887_v38  ;;  %v7212_v56 = vpack.c.bf16 %v2490_v36, %v2490_v36  ;;  %v5938_v0 = vld [vmem:[#allocation9 + $0x6c4] ss:$16 sps:$4 sm:$0xff]   ;;  %v5933_v38 = vld [vmem:[#allocation9 + $0x4c0] ss:$16 sps:$4 sm:$0xff]   ;;  %v5996_v31 = vld [vmem:[#allocation9 + $0x208] ss:$16 sps:$4 sm:$0xff]  }
 0x2da   : > { %4251 = vmatprep.subr.bf16.mxu1 %v5890_v40  ;;  %v7228_v36 = vrot.slane %v2480_v34, %v6902_v54  ;;  %v2500_v37 = vcombine.high %v2480_v34, %v2480_v34  ;;  %v5936_v40 = vld [vmem:[#allocation9 + $0x6c0] ss:$16 sps:$4 sm:$0xff]   ;;  %v5953_v58 = vld [vmem:[#allocation9 + $0x524] ss:$16 sps:$4 sm:$0xff]   ;;  %v5999_v34 = vld [vmem:[#allocation9 + $0x28] ss:$16 sps:$4 sm:$0xff]  }
 0x2db   : > { %v7205_v46 = vpack.c.bf16 %v2498_v41, %v2498_v41  ;;  %v2499_v47 = vcombine.high %v2497_v42, %v2497_v42  ;;  %v7214_v57 = vpack.c.bf16 %v2497_v42, %v2497_v42  ;;  %v5941_v41 = vld [vmem:[#allocation9 + $0x4e4] ss:$16 sps:$4 sm:$0xff]   ;;  %v5963_v5 = vld [vmem:[#allocation9 + $0x560] ss:$16 sps:$4 sm:$0xff]  }
 0x2dc   : > { %4211 = vmatpush1.bf16.msra.mxu0 %v5885_v43  ;;  %v2515_v42 = vcombine.high %v7228_v36, %v7228_v36  ;;  %v7233_v43 = vrot.slane %v2500_v37, %v6902_v54  ;;  %v5945_v54 = vld [vmem:[#allocation9 + $0x500] ss:$16 sps:$4 sm:$0xff]   ;;  %v5956_v59 = vld [vmem:[#allocation9 + $0x724] ss:$16 sps:$4 sm:$0xff]   ;;  %v6010_v37 = vld [vmem:[#allocation9 + $0x24c] ss:$16 sps:$4 sm:$0xff]  }
 0x2dd   : > { %4214 = vmatprep.mubr.bf16.mxu0 %v7205_v46  ;;  %v7208_v49 = vpack.c.bf16 %v2499_v47, %v2499_v47  ;;  %4252 = vmatpush1.bf16.msra.mxu1 %v5888_v44  ;;  %v5944_v44 = vld [vmem:[#allocation9 + $0x6e4] ss:$16 sps:$4 sm:$0xff]   ;;  %v5966_v26 = vld [vmem:[#allocation9 + $0x760] ss:$16 sps:$4 sm:$0xff]  }
 0x2de   : > { %4212 = vmatprep.subr.bf16.mxu0 %v5893_v48  ;;  %4253 = vmatprep.subr.bf16.mxu1 %v5896_v17  ;;  %v7235_v47 = vpack.c.bf16 %v2515_v42, %v2515_v42  ;;  %v2516_v48 = vcombine.high %v7233_v43, %v7233_v43  ;;  %v5939_v17 = vld [vmem:[#allocation9 + $0x4e0] ss:$16 sps:$4 sm:$0xff]   ;;  %v5959_v63 = vld [vmem:[#allocation9 + $0x544] ss:$16 sps:$4 sm:$0xff]   ;;  %v6016_v42 = vld [vmem:[#allocation9 + $0x26c] ss:$16 sps:$4 sm:$0xff]  }
 0x2df   : > { %4255 = vmatprep.mubr.bf16.mxu1 %v7208_v49  ;;  %v5971_v9 = vld [vmem:[#allocation9 + $0x584] ss:$16 sps:$4 sm:$0xff]   ;;  %v5975_v16 = vld [vmem:[#allocation9 + $0x5a0] ss:$16 sps:$4 sm:$0xff]  }
 0x2e0   : > { %4213 = vmatpush1.bf16.msra.mxu0 %v5891_v50  ;;  %v5942_v50 = vld [vmem:[#allocation9 + $0x6e0] ss:$16 sps:$4 sm:$0xff]   ;;  %v5980_v15 = vld [vmem:[#allocation9 + $0x7a4] ss:$16 sps:$4 sm:$0xff]  }
 0x2e1   : > { %4254 = vmatpush1.bf16.msra.mxu1 %v5894_v51  ;;  %4264 = vmatprep.subr.bf16.mxu0 %v5899_v52  ;;  %v5947_v51 = vld [vmem:[#allocation9 + $0x504] ss:$16 sps:$4 sm:$0xff]   ;;  %v7239_v52 = vpack.c.bf16 %v2516_v48, %v2516_v48  ;;  %v5984_v12 = vld [vmem:[#allocation9 + $0x7c0] ss:$16 sps:$4 sm:$0xff]   ;;  %v6019_v48 = vld [vmem:[#allocation9 + $0x8c] ss:$16 sps:$4 sm:$0xff]  }
 0x2e2   : > { %4305 = vmatprep.subr.bf16.mxu1 %v5902_v53  ;;  %v5950_v53 = vld [vmem:[#allocation9 + $0x704] ss:$16 sps:$4 sm:$0xff]  }
 0x2e3   : > { %4215 = vmatmul.mubr.bf16.vlgmr.msra.gmra.mrb[4].mxu0 %v7212_v56  ;;  %v5989_v21 = vld [vmem:[#allocation9 + $0x5e4] ss:$16 sps:$4 sm:$0xff]  }
 0x2e4   : > { %4256 = vmatmul.mubr.bf16.vlgmr.msra.gmra.mrb[4].mxu1 %v7214_v57  ;;  %4265 = vmatpush1.bf16.msra.mxu0 %v5897_v61  ;;  %v5951_v61 = vld [vmem:[#allocation9 + $0x520] ss:$16 sps:$4 sm:$0xff]  }
 0x2e5   : > { %4306 = vmatpush1.bf16.msra.mxu1 %v5900_v62  ;;  %4266 = vmatprep.subr.bf16.mxu0 %v5905_v1  ;;  %v5954_v62 = vld [vmem:[#allocation9 + $0x720] ss:$16 sps:$4 sm:$0xff]   ;;  %v5962_v1 = vld [vmem:[#allocation9 + $0x744] ss:$16 sps:$4 sm:$0xff]  }
 0x2e6   : > { %4307 = vmatprep.subr.bf16.mxu1 %v5908_v2  ;;  %4296 = vmatprep.mubr.bf16.mxu0 %v7235_v47  ;;  %v5957_v2 = vld [vmem:[#allocation9 + $0x540] ss:$16 sps:$4 sm:$0xff]  }
 0x2e7   : > { %4337 = vmatprep.mubr.bf16.mxu1 %v7239_v52 }
 0x2e8   : > { %4267 = vmatpush1.bf16.msra.mxu0 %v5903_v3  ;;  %v5965_v3 = vld [vmem:[#allocation9 + $0x564] ss:$16 sps:$4 sm:$0xff]  }
 0x2e9   : > { %4308 = vmatpush1.bf16.msra.mxu1 %v5906_v4  ;;  %4268 = vmatprep.subr.bf16.mxu0 %v5911_v11  ;;  %v5968_v4 = vld [vmem:[#allocation9 + $0x764] ss:$16 sps:$4 sm:$0xff]  }
 0x2ea   : > { %4309 = vmatprep.subr.bf16.mxu1 %v5914_v13  ;;  %v5974_v11 = vld [vmem:[#allocation9 + $0x784] ss:$16 sps:$4 sm:$0xff]   ;;  %v5969_v13 = vld [vmem:[#allocation9 + $0x580] ss:$16 sps:$4 sm:$0xff]  }
 0x2ec   : > { %4269 = vmatpush1.bf16.msra.mxu0 %v5909_v14  ;;  %v5972_v14 = vld [vmem:[#allocation9 + $0x780] ss:$16 sps:$4 sm:$0xff]  }
 0x2ed   : > { %4310 = vmatpush1.bf16.msra.mxu1 %v5912_v35  ;;  %4270 = vmatprep.subr.bf16.mxu0 %v5917_v60  ;;  %v5977_v35 = vld [vmem:[#allocation9 + $0x5a4] ss:$16 sps:$4 sm:$0xff]   ;;  %v5978_v60 = vld [vmem:[#allocation9 + $0x7a0] ss:$16 sps:$4 sm:$0xff]  }
 0x2ee   : > { %4311 = vmatprep.subr.bf16.mxu1 %v5920_v18  ;;  %v5983_v18 = vld [vmem:[#allocation9 + $0x5c4] ss:$16 sps:$4 sm:$0xff]  }
 0x2f0   : > { %4271 = vmatpush1.bf16.msra.mxu0 %v5915_v19  ;;  %v5986_v19 = vld [vmem:[#allocation9 + $0x7c4] ss:$16 sps:$4 sm:$0xff]  }
 0x2f1   : > { %4312 = vmatpush1.bf16.msra.mxu1 %v5918_v20  ;;  %4272 = vmatprep.subr.bf16.mxu0 %v5923_v22  ;;  %v5981_v20 = vld [vmem:[#allocation9 + $0x5c0] ss:$16 sps:$4 sm:$0xff]   ;;  %v5992_v22 = vld [vmem:[#allocation9 + $0x7e4] ss:$16 sps:$4 sm:$0xff]  }
 0x2f2   : > { %4313 = vmatprep.subr.bf16.mxu1 %v5926_v23  ;;  %v5987_v23 = vld [vmem:[#allocation9 + $0x5e0] ss:$16 sps:$4 sm:$0xff]  }
 0x2f4   : > { %4273 = vmatpush1.bf16.msra.mxu0 %v5921_v24  ;;  %v5990_v24 = vld [vmem:[#allocation9 + $0x7e0] ss:$16 sps:$4 sm:$0xff]  }
 0x2f5   : > { %4314 = vmatpush1.bf16.msra.mxu1 %v5924_v25  ;;  %4274 = vmatprep.subr.bf16.mxu0 %v5929_v28  ;;  %v5995_v25 = vld [vmem:[#allocation9 + $0xc] ss:$16 sps:$4 sm:$0xff]   ;;  %v7245_v28 = vpack.c.bf16 %v7228_v36, %v7228_v36 }
 0x2f6   : > { %4315 = vmatprep.subr.bf16.mxu1 %v5932_v29  ;;  %v7249_v29 = vpack.c.bf16 %v7233_v43, %v7233_v43  ;;  %v6007_v36 = vld [vmem:[#allocation9 + $0x4c] ss:$16 sps:$4 sm:$0xff]   ;;  %v6011_v43 = vld [vmem:[#allocation9 + $0x68] ss:$16 sps:$4 sm:$0xff]  }
 0x2f8   : > { %4275 = vmatpush1.bf16.msra.mxu0 %v5927_v30  ;;  %v5993_v30 = vld [vmem:[#allocation9 + $0x8] ss:$16 sps:$4 sm:$0xff]  }
 0x2f9   : > { %4316 = vmatpush1.bf16.msra.mxu1 %v5930_v32  ;;  %4276 = vmatprep.subr.bf16.mxu0 %v5935_v33  ;;  %v6001_v32 = vld [vmem:[#allocation9 + $0x2c] ss:$16 sps:$4 sm:$0xff]  }
 0x2fa   : > { %4317 = vmatprep.subr.bf16.mxu1 %v5938_v0  ;;  %v6004_v33 = vld [vmem:[#allocation9 + $0x22c] ss:$16 sps:$4 sm:$0xff]   ;;  %v6002_v0 = vld [vmem:[#allocation9 + $0x228] ss:$16 sps:$4 sm:$0xff]  }
 0x2fc   : > { %4277 = vmatpush1.bf16.msra.mxu0 %v5933_v38  ;;  %v6005_v38 = vld [vmem:[#allocation9 + $0x48] ss:$16 sps:$4 sm:$0xff]  }
 0x2fd   : > { %4318 = vmatpush1.bf16.msra.mxu1 %v5936_v40  ;;  %4278 = vmatprep.subr.bf16.mxu0 %v5941_v41  ;;  %v6008_v40 = vld [vmem:[#allocation9 + $0x248] ss:$16 sps:$4 sm:$0xff]   ;;  %v6013_v41 = vld [vmem:[#allocation9 + $0x6c] ss:$16 sps:$4 sm:$0xff]  }
 0x2fe   : > { %4319 = vmatprep.subr.bf16.mxu1 %v5944_v44  ;;  %v6014_v44 = vld [vmem:[#allocation9 + $0x268] ss:$16 sps:$4 sm:$0xff]  }
 0x300   : > { %4279 = vmatpush1.bf16.msra.mxu0 %v5939_v17  ;;  %v6022_v17 = vld [vmem:[#allocation9 + $0x28c] ss:$16 sps:$4 sm:$0xff]  }
 0x301   : > { %4320 = vmatpush1.bf16.msra.mxu1 %v5942_v50  ;;  %4280 = vmatprep.subr.bf16.mxu0 %v5947_v51  ;;  %v6017_v50 = vld [vmem:[#allocation9 + $0x88] ss:$16 sps:$4 sm:$0xff]   ;;  %v6028_v51 = vld [vmem:[#allocation9 + $0x2ac] ss:$16 sps:$4 sm:$0xff]  }
 0x302   : > { %4321 = vmatprep.subr.bf16.mxu1 %v5950_v53  ;;  %v6023_v53 = vld [vmem:[#allocation9 + $0xa8] ss:$16 sps:$4 sm:$0xff]  }
 0x304   : > { %4281 = vmatpush1.bf16.msra.mxu0 %v5945_v54  ;;  %v6026_v54 = vld [vmem:[#allocation9 + $0x2a8] ss:$16 sps:$4 sm:$0xff]  }
 0x305   : > { %4322 = vmatpush1.bf16.msra.mxu1 %v5948_v55  ;;  %4282 = vmatprep.subr.bf16.mxu0 %v5953_v58  ;;  %v6031_v55 = vld [vmem:[#allocation9 + $0xcc] ss:$16 sps:$4 sm:$0xff]  }
 0x306   : > { %4323 = vmatprep.subr.bf16.mxu1 %v5956_v59  ;;  %v6034_v58 = vld [vmem:[#allocation9 + $0x2cc] ss:$16 sps:$4 sm:$0xff]   ;;  %v6029_v59 = vld [vmem:[#allocation9 + $0xc8] ss:$16 sps:$4 sm:$0xff]  }
 0x308   : > { %4283 = vmatpush1.bf16.msra.mxu0 %v5951_v61  ;;  %v6032_v61 = vld [vmem:[#allocation9 + $0x2c8] ss:$16 sps:$4 sm:$0xff]  }
 0x309   : > { %4324 = vmatpush1.bf16.msra.mxu1 %v5954_v62  ;;  %4284 = vmatprep.subr.bf16.mxu0 %v5959_v63  ;;  %v6037_v62 = vld [vmem:[#allocation9 + $0xec] ss:$16 sps:$4 sm:$0xff]  }
 0x30a   : > { %4325 = vmatprep.subr.bf16.mxu1 %v5962_v1  ;;  %v6040_v63 = vld [vmem:[#allocation9 + $0x2ec] ss:$16 sps:$4 sm:$0xff]   ;;  %v6035_v1 = vld [vmem:[#allocation9 + $0xe8] ss:$16 sps:$4 sm:$0xff]  }
 0x30c   : > { %4285 = vmatpush1.bf16.msra.mxu0 %v5957_v2  ;;  %v6038_v2 = vld [vmem:[#allocation9 + $0x2e8] ss:$16 sps:$4 sm:$0xff]  }
 0x30d   : > { %4326 = vmatpush1.bf16.msra.mxu1 %v5960_v39  ;;  %4286 = vmatprep.subr.bf16.mxu0 %v5965_v3  ;;  %v6043_v39 = vld [vmem:[#allocation9 + $0x10c] ss:$16 sps:$4 sm:$0xff]  }
 0x30e   : > { %4327 = vmatprep.subr.bf16.mxu1 %v5968_v4  ;;  %v6046_v3 = vld [vmem:[#allocation9 + $0x30c] ss:$16 sps:$4 sm:$0xff]   ;;  %v6041_v4 = vld [vmem:[#allocation9 + $0x108] ss:$16 sps:$4 sm:$0xff]  }
 0x310   : > { %4287 = vmatpush1.bf16.msra.mxu0 %v5963_v5  ;;  %v6044_v5 = vld [vmem:[#allocation9 + $0x308] ss:$16 sps:$4 sm:$0xff]  }
 0x311   : > { %4328 = vmatpush1.bf16.msra.mxu1 %v5966_v26  ;;  %4288 = vmatprep.subr.bf16.mxu0 %v5971_v9  ;;  %v6049_v26 = vld [vmem:[#allocation9 + $0x12c] ss:$16 sps:$4 sm:$0xff]  }
 0x312   : > { %4329 = vmatprep.subr.bf16.mxu1 %v5974_v11  ;;  %v6052_v9 = vld [vmem:[#allocation9 + $0x32c] ss:$16 sps:$4 sm:$0xff]   ;;  %v6047_v11 = vld [vmem:[#allocation9 + $0x128] ss:$16 sps:$4 sm:$0xff]  }
 0x314   : > { %4289 = vmatpush1.bf16.msra.mxu0 %v5969_v13  ;;  %v6050_v13 = vld [vmem:[#allocation9 + $0x328] ss:$16 sps:$4 sm:$0xff]  }
 0x315   : > { %4330 = vmatpush1.bf16.msra.mxu1 %v5972_v14  ;;  %4290 = vmatprep.subr.bf16.mxu0 %v5977_v35  ;;  %v6055_v14 = vld [vmem:[#allocation9 + $0x14c] ss:$16 sps:$4 sm:$0xff]  }
 0x316   : > { %4331 = vmatprep.subr.bf16.mxu1 %v5980_v15  ;;  %v6058_v35 = vld [vmem:[#allocation9 + $0x34c] ss:$16 sps:$4 sm:$0xff]   ;;  %v6053_v15 = vld [vmem:[#allocation9 + $0x148] ss:$16 sps:$4 sm:$0xff]  }
 0x318   : > { %4291 = vmatpush1.bf16.msra.mxu0 %v5975_v16  ;;  %v6056_v16 = vld [vmem:[#allocation9 + $0x348] ss:$16 sps:$4 sm:$0xff]  }
 0x319   : > { %4332 = vmatpush1.bf16.msra.mxu1 %v5978_v60  ;;  %4292 = vmatprep.subr.bf16.mxu0 %v5983_v18  ;;  %v6061_v60 = vld [vmem:[#allocation9 + $0x16c] ss:$16 sps:$4 sm:$0xff]  }
 0x31a   : > { %4333 = vmatprep.subr.bf16.mxu1 %v5986_v19  ;;  %v6064_v18 = vld [vmem:[#allocation9 + $0x36c] ss:$16 sps:$4 sm:$0xff]   ;;  %v6059_v19 = vld [vmem:[#allocation9 + $0x168] ss:$16 sps:$4 sm:$0xff]  }
 0x31c   : > { %4293 = vmatpush1.bf16.msra.mxu0 %v5981_v20  ;;  %v6062_v20 = vld [vmem:[#allocation9 + $0x368] ss:$16 sps:$4 sm:$0xff]  }
 0x31d   : > { %4334 = vmatpush1.bf16.msra.mxu1 %v5984_v12  ;;  %4294 = vmatprep.subr.bf16.mxu0 %v5989_v21  ;;  %v6067_v12 = vld [vmem:[#allocation9 + $0x18c] ss:$16 sps:$4 sm:$0xff]  }
 0x31e   : > { %4335 = vmatprep.subr.bf16.mxu1 %v5992_v22  ;;  %v6070_v21 = vld [vmem:[#allocation9 + $0x38c] ss:$16 sps:$4 sm:$0xff]   ;;  %v6065_v22 = vld [vmem:[#allocation9 + $0x188] ss:$16 sps:$4 sm:$0xff]  }
 0x320   : > { %4295 = vmatpush1.bf16.msra.mxu0 %v5987_v23  ;;  %v6068_v23 = vld [vmem:[#allocation9 + $0x388] ss:$16 sps:$4 sm:$0xff]  }
 0x321   : > { %4336 = vmatpush1.bf16.msra.mxu1 %v5990_v24  ;;  %4346 = vmatprep.subr.bf16.mxu0 %v5995_v25  ;;  %v6073_v24 = vld [vmem:[#allocation9 + $0x1ac] ss:$16 sps:$4 sm:$0xff]  }
 0x322   : > { %4387 = vmatprep.subr.bf16.mxu1 %v5998_v27  ;;  %v6076_v25 = vld [vmem:[#allocation9 + $0x3ac] ss:$16 sps:$4 sm:$0xff]   ;;  %v6071_v27 = vld [vmem:[#allocation9 + $0x1a8] ss:$16 sps:$4 sm:$0xff]  }
 0x323   : > { %4297 = vmatmul.mubr.bf16.vlgmr.msra.gmra.mrb[8].mxu0 %v7245_v28 }
 0x324   : > { %4338 = vmatmul.mubr.bf16.vlgmr.msra.gmra.mrb[8].mxu1 %v7249_v29  ;;  %4347 = vmatpush1.bf16.msra.mxu0 %v5993_v30  ;;  %v6074_v30 = vld [vmem:[#allocation9 + $0x3a8] ss:$16 sps:$4 sm:$0xff]  }
 0x325   : > { %4388 = vmatpush1.bf16.msra.mxu1 %v5996_v31  ;;  %4348 = vmatprep.subr.bf16.mxu0 %v6001_v32  ;;  %v6079_v31 = vld [vmem:[#allocation9 + $0x1cc] ss:$16 sps:$4 sm:$0xff]  }
 0x326   : > { %4389 = vmatprep.subr.bf16.mxu1 %v6004_v33  ;;  %4378 = vmatprep.mubr.bf16.mxu0 %v7205_v46  ;;  %v6020_v46 = vld [vmem:[#allocation9 + $0x288] ss:$16 sps:$4 sm:$0xff]   ;;  %v6082_v32 = vld [vmem:[#allocation9 + $0x3cc] ss:$16 sps:$4 sm:$0xff]  }
 0x327   : > { %4419 = vmatprep.mubr.bf16.mxu1 %v7208_v49  ;;  %v6025_v49 = vld [vmem:[#allocation9 + $0xac] ss:$16 sps:$4 sm:$0xff]   ;;  %v6077_v33 = vld [vmem:[#allocation9 + $0x1c8] ss:$16 sps:$4 sm:$0xff]  }
 0x328   : > { %4349 = vmatpush1.bf16.msra.mxu0 %v5999_v34  ;;  %v6080_v34 = vld [vmem:[#allocation9 + $0x3c8] ss:$16 sps:$4 sm:$0xff]  }
 0x329   : > { %4390 = vmatpush1.bf16.msra.mxu1 %v6002_v0  ;;  %4350 = vmatprep.subr.bf16.mxu0 %v6007_v36  ;;  %v6085_v0 = vld [vmem:[#allocation9 + $0x1ec] ss:$16 sps:$4 sm:$0xff]  }
 0x32a   : > { %4391 = vmatprep.subr.bf16.mxu1 %v6010_v37  ;;  %v6088_v36 = vld [vmem:[#allocation9 + $0x3ec] ss:$16 sps:$4 sm:$0xff]   ;;  %v6083_v37 = vld [vmem:[#allocation9 + $0x1e8] ss:$16 sps:$4 sm:$0xff]  }
 0x32c   : > { %4351 = vmatpush1.bf16.msra.mxu0 %v6005_v38  ;;  %v6086_v38 = vld [vmem:[#allocation9 + $0x3e8] ss:$16 sps:$4 sm:$0xff]  }
 0x32d   : > { %4392 = vmatpush1.bf16.msra.mxu1 %v6008_v40  ;;  %4352 = vmatprep.subr.bf16.mxu0 %v6013_v41  ;;  %v6091_v40 = vld [vmem:[#allocation9 + $0x40c] ss:$16 sps:$4 sm:$0xff]  }
 0x32e   : > { %4393 = vmatprep.subr.bf16.mxu1 %v6016_v42  ;;  %v6094_v41 = vld [vmem:[#allocation9 + $0x60c] ss:$16 sps:$4 sm:$0xff]   ;;  %v6089_v42 = vld [vmem:[#allocation9 + $0x408] ss:$16 sps:$4 sm:$0xff]  }
 0x330   : > { %4353 = vmatpush1.bf16.msra.mxu0 %v6011_v43  ;;  %v6092_v43 = vld [vmem:[#allocation9 + $0x608] ss:$16 sps:$4 sm:$0xff]  }
 0x331   : > { %4394 = vmatpush1.bf16.msra.mxu1 %v6014_v44  ;;  %4354 = vmatprep.subr.bf16.mxu0 %v6019_v48  ;;  %v6097_v44 = vld [vmem:[#allocation9 + $0x42c] ss:$16 sps:$4 sm:$0xff]  }
 0x332   : > { %4395 = vmatprep.subr.bf16.mxu1 %v6022_v17  ;;  %v6100_v48 = vld [vmem:[#allocation9 + $0x62c] ss:$16 sps:$4 sm:$0xff]   ;;  %v6095_v17 = vld [vmem:[#allocation9 + $0x428] ss:$16 sps:$4 sm:$0xff]  }
 0x334   : > { %4355 = vmatpush1.bf16.msra.mxu0 %v6017_v50  ;;  %v6098_v50 = vld [vmem:[#allocation9 + $0x628] ss:$16 sps:$4 sm:$0xff]  }
 0x335   : > { %4396 = vmatpush1.bf16.msra.mxu1 %v6020_v46  ;;  %4356 = vmatprep.subr.bf16.mxu0 %v6025_v49  ;;  %v6103_v46 = vld [vmem:[#allocation9 + $0x44c] ss:$16 sps:$4 sm:$0xff]  }
 0x336   : > { %4397 = vmatprep.subr.bf16.mxu1 %v6028_v51  ;;  %v6106_v49 = vld [vmem:[#allocation9 + $0x64c] ss:$16 sps:$4 sm:$0xff]   ;;  %v6101_v51 = vld [vmem:[#allocation9 + $0x448] ss:$16 sps:$4 sm:$0xff]  }
 0x338   : > { %4357 = vmatpush1.bf16.msra.mxu0 %v6023_v53  ;;  %v6104_v53 = vld [vmem:[#allocation9 + $0x648] ss:$16 sps:$4 sm:$0xff]  }
 0x339   : > { %4398 = vmatpush1.bf16.msra.mxu1 %v6026_v54  ;;  %4358 = vmatprep.subr.bf16.mxu0 %v6031_v55  ;;  %v6107_v54 = vld [vmem:[#allocation9 + $0x468] ss:$16 sps:$4 sm:$0xff]  }
 0x33a   : > { %4399 = vmatprep.subr.bf16.mxu1 %v6034_v58  ;;  %v6110_v55 = vld [vmem:[#allocation9 + $0x668] ss:$16 sps:$4 sm:$0xff]   ;;  %v6115_v58 = vld [vmem:[#allocation9 + $0x48c] ss:$16 sps:$4 sm:$0xff]  }
 0x33c   : > { %4359 = vmatpush1.bf16.msra.mxu0 %v6029_v59  ;;  %v6118_v59 = vld [vmem:[#allocation9 + $0x68c] ss:$16 sps:$4 sm:$0xff]  }
 0x33d   : > { %4400 = vmatpush1.bf16.msra.mxu1 %v6032_v61  ;;  %4360 = vmatprep.subr.bf16.mxu0 %v6037_v62  ;;  %v6121_v61 = vld [vmem:[#allocation9 + $0x4ac] ss:$16 sps:$4 sm:$0xff]  }
 0x33e   : > { %4401 = vmatprep.subr.bf16.mxu1 %v6040_v63  ;;  %v6124_v62 = vld [vmem:[#allocation9 + $0x6ac] ss:$16 sps:$4 sm:$0xff]   ;;  %v6119_v63 = vld [vmem:[#allocation9 + $0x4a8] ss:$16 sps:$4 sm:$0xff]  }
 0x340   : > { %4361 = vmatpush1.bf16.msra.mxu0 %v6035_v1  ;;  %v6122_v1 = vld [vmem:[#allocation9 + $0x6a8] ss:$16 sps:$4 sm:$0xff]  }
 0x341   : > { %4402 = vmatpush1.bf16.msra.mxu1 %v6038_v2  ;;  %4362 = vmatprep.subr.bf16.mxu0 %v6043_v39  ;;  %v6127_v2 = vld [vmem:[#allocation9 + $0x4cc] ss:$16 sps:$4 sm:$0xff]  }
 0x342   : > { %4403 = vmatprep.subr.bf16.mxu1 %v6046_v3  ;;  %v6130_v39 = vld [vmem:[#allocation9 + $0x6cc] ss:$16 sps:$4 sm:$0xff]   ;;  %v7259_v3 = vpop.f32.mrb[0].mxu0 }
 0x344   : > { %4363 = vmatpush1.bf16.msra.mxu0 %v6041_v4  ;;  %v7261_v4 = vpop.f32.mrb[0].mxu1 }
 0x345   : > { %4404 = vmatpush1.bf16.msra.mxu1 %v6044_v5  ;;  %4364 = vmatprep.subr.bf16.mxu0 %v6049_v26  ;;  %v7263_v5 = vpop.f32.mrb[1].mxu0  ;;  %v7265_v26 = vpop.f32.mrb[1].mxu1 }
 0x346   : > { %4405 = vmatprep.subr.bf16.mxu1 %v6052_v9  ;;  %v2858_v9 = vpop.f32.mrb[2].mxu0 }
 0x348   : > { %4365 = vmatpush1.bf16.msra.mxu0 %v6047_v11  ;;  %v2899_v11 = vpop.f32.mrb[2].mxu1 }
 0x349   : > { %4406 = vmatpush1.bf16.msra.mxu1 %v6050_v13  ;;  %4366 = vmatprep.subr.bf16.mxu0 %v6055_v14  ;;  %v6125_v13 = vld [vmem:[#allocation9 + $0x4c8] ss:$16 sps:$4 sm:$0xff]  }
 0x34a   : > { %4407 = vmatprep.subr.bf16.mxu1 %v6058_v35  ;;  %v6128_v14 = vld [vmem:[#allocation9 + $0x6c8] ss:$16 sps:$4 sm:$0xff]   ;;  %v2859_v35 = vpop.f32.mrb[3].mxu0 }
 0x34c   : > { %4367 = vmatpush1.bf16.msra.mxu0 %v6053_v15  ;;  %v2900_v15 = vpop.f32.mrb[3].mxu1 }
 0x34d   : > { %4408 = vmatpush1.bf16.msra.mxu1 %v6056_v16  ;;  %4368 = vmatprep.subr.bf16.mxu0 %v6061_v60  ;;  %v6133_v16 = vld [vmem:[#allocation9 + $0x4ec] ss:$16 sps:$4 sm:$0xff]  }
 0x34e   : > { %4409 = vmatprep.subr.bf16.mxu1 %v6064_v18  ;;  %v6136_v60 = vld [vmem:[#allocation9 + $0x6ec] ss:$16 sps:$4 sm:$0xff]   ;;  %v6131_v18 = vld [vmem:[#allocation9 + $0x4e8] ss:$16 sps:$4 sm:$0xff]  }
 0x350   : > { %4369 = vmatpush1.bf16.msra.mxu0 %v6059_v19  ;;  %v6134_v19 = vld [vmem:[#allocation9 + $0x6e8] ss:$16 sps:$4 sm:$0xff]  }
 0x351   : > { %4410 = vmatpush1.bf16.msra.mxu1 %v6062_v20  ;;  %4370 = vmatprep.subr.bf16.mxu0 %v6067_v12  ;;  %v6139_v20 = vld [vmem:[#allocation9 + $0x50c] ss:$16 sps:$4 sm:$0xff]  }
 0x352   : > { %4411 = vmatprep.subr.bf16.mxu1 %v6070_v21  ;;  %v6142_v12 = vld [vmem:[#allocation9 + $0x70c] ss:$16 sps:$4 sm:$0xff]   ;;  %v6137_v21 = vld [vmem:[#allocation9 + $0x508] ss:$16 sps:$4 sm:$0xff]  }
 0x354   : > { %4371 = vmatpush1.bf16.msra.mxu0 %v6065_v22  ;;  %v6140_v22 = vld [vmem:[#allocation9 + $0x708] ss:$16 sps:$4 sm:$0xff]  }
 0x355   : > { %4412 = vmatpush1.bf16.msra.mxu1 %v6068_v23  ;;  %4372 = vmatprep.subr.bf16.mxu0 %v6073_v24  ;;  %v6145_v23 = vld [vmem:[#allocation9 + $0x52c] ss:$16 sps:$4 sm:$0xff]  }
 0x356   : > { %4413 = vmatprep.subr.bf16.mxu1 %v6076_v25  ;;  %v6148_v24 = vld [vmem:[#allocation9 + $0x72c] ss:$16 sps:$4 sm:$0xff]   ;;  %v6143_v25 = vld [vmem:[#allocation9 + $0x528] ss:$16 sps:$4 sm:$0xff]  }
 0x358   : > { %4373 = vmatpush1.bf16.msra.mxu0 %v6071_v27  ;;  %v6146_v27 = vld [vmem:[#allocation9 + $0x728] ss:$16 sps:$4 sm:$0xff]  }
 0x359   : > { %4414 = vmatpush1.bf16.msra.mxu1 %v6074_v30  ;;  %4374 = vmatprep.subr.bf16.mxu0 %v6079_v31  ;;  %v6151_v30 = vld [vmem:[#allocation9 + $0x54c] ss:$16 sps:$4 sm:$0xff]  }
 0x35a   : > { %4415 = vmatprep.subr.bf16.mxu1 %v6082_v32  ;;  %v6154_v31 = vld [vmem:[#allocation9 + $0x74c] ss:$16 sps:$4 sm:$0xff]   ;;  %v6149_v32 = vld [vmem:[#allocation9 + $0x548] ss:$16 sps:$4 sm:$0xff]  }
 0x35c   : > { %4375 = vmatpush1.bf16.msra.mxu0 %v6077_v33  ;;  %v6152_v33 = vld [vmem:[#allocation9 + $0x748] ss:$16 sps:$4 sm:$0xff]  }
 0x35d   : > { %4416 = vmatpush1.bf16.msra.mxu1 %v6080_v34  ;;  %4376 = vmatprep.subr.bf16.mxu0 %v6085_v0  ;;  %v6157_v34 = vld [vmem:[#allocation9 + $0x56c] ss:$16 sps:$4 sm:$0xff]  }
 0x35e   : > { %4417 = vmatprep.subr.bf16.mxu1 %v6088_v36  ;;  %v6160_v0 = vld [vmem:[#allocation9 + $0x76c] ss:$16 sps:$4 sm:$0xff]   ;;  %v6155_v36 = vld [vmem:[#allocation9 + $0x568] ss:$16 sps:$4 sm:$0xff]  }
 0x360   : > { %4377 = vmatpush1.bf16.msra.mxu0 %v6083_v37  ;;  %v6158_v37 = vld [vmem:[#allocation9 + $0x768] ss:$16 sps:$4 sm:$0xff]  }
 0x361   : > { %4418 = vmatpush1.bf16.msra.mxu1 %v6086_v38  ;;  %4428 = vmatprep.subr.bf16.mxu0 %v6091_v40  ;;  %v6163_v38 = vld [vmem:[#allocation9 + $0x58c] ss:$16 sps:$4 sm:$0xff]  }
 0x362   : > { %4469 = vmatprep.subr.bf16.mxu1 %v6094_v41  ;;  %v6166_v40 = vld [vmem:[#allocation9 + $0x78c] ss:$16 sps:$4 sm:$0xff]   ;;  %v6161_v41 = vld [vmem:[#allocation9 + $0x588] ss:$16 sps:$4 sm:$0xff]  }
 0x363   : > { %4379 = vmatmul.mubr.bf16.vlgmr.msra.gmra.mrb[12].mxu0 %v7212_v56  ;;  %v6109_v56 = vld [vmem:[#allocation9 + $0x46c] ss:$16 sps:$4 sm:$0xff]  }
 0x364   : > { %4420 = vmatmul.mubr.bf16.vlgmr.msra.gmra.mrb[12].mxu1 %v7214_v57  ;;  %4429 = vmatpush1.bf16.msra.mxu0 %v6089_v42  ;;  %v6112_v57 = vld [vmem:[#allocation9 + $0x66c] ss:$16 sps:$4 sm:$0xff]   ;;  %v6164_v42 = vld [vmem:[#allocation9 + $0x788] ss:$16 sps:$4 sm:$0xff]  }
 0x365   : > { %4470 = vmatpush1.bf16.msra.mxu1 %v6092_v43  ;;  %4430 = vmatprep.subr.bf16.mxu0 %v6097_v44  ;;  %v6169_v43 = vld [vmem:[#allocation9 + $0x5ac] ss:$16 sps:$4 sm:$0xff]  }
 0x366   : > { %4471 = vmatprep.subr.bf16.mxu1 %v6100_v48  ;;  %4460 = vmatprep.mubr.bf16.mxu0 %v7235_v47  ;;  %v6113_v47 = vld [vmem:[#allocation9 + $0x488] ss:$16 sps:$4 sm:$0xff]   ;;  %v6172_v44 = vld [vmem:[#allocation9 + $0x7ac] ss:$16 sps:$4 sm:$0xff]  }
 0x367   : > { %4501 = vmatprep.mubr.bf16.mxu1 %v7239_v52  ;;  %v6116_v52 = vld [vmem:[#allocation9 + $0x688] ss:$16 sps:$4 sm:$0xff]  }
 0x368   : > { %4431 = vmatpush1.bf16.msra.mxu0 %v6095_v17  ;;  %v6167_v48 = vld [vmem:[#allocation9 + $0x5a8] ss:$16 sps:$4 sm:$0xff]  }
 0x369   : > { %4472 = vmatpush1.bf16.msra.mxu1 %v6098_v50  ;;  %4432 = vmatprep.subr.bf16.mxu0 %v6103_v46  ;;  %v6170_v17 = vld [vmem:[#allocation9 + $0x7a8] ss:$16 sps:$4 sm:$0xff]   ;;  %v6175_v50 = vld [vmem:[#allocation9 + $0x5cc] ss:$16 sps:$4 sm:$0xff]  }
 0x36a   : > { %4473 = vmatprep.subr.bf16.mxu1 %v6106_v49  ;;  %v6178_v46 = vld [vmem:[#allocation9 + $0x7cc] ss:$16 sps:$4 sm:$0xff]   ;;  %v6173_v49 = vld [vmem:[#allocation9 + $0x5c8] ss:$16 sps:$4 sm:$0xff]  }
 0x36c   : > { %4433 = vmatpush1.bf16.msra.mxu0 %v6101_v51  ;;  %v6176_v51 = vld [vmem:[#allocation9 + $0x7c8] ss:$16 sps:$4 sm:$0xff]  }
 0x36d   : > { %4474 = vmatpush1.bf16.msra.mxu1 %v6104_v53  ;;  %4434 = vmatprep.subr.bf16.mxu0 %v6109_v56  ;;  %v6181_v53 = vld [vmem:[#allocation9 + $0x5ec] ss:$16 sps:$4 sm:$0xff]  }
 0x36e   : > { %4475 = vmatprep.subr.bf16.mxu1 %v6112_v57  ;;  %v6184_v56 = vld [vmem:[#allocation9 + $0x7ec] ss:$16 sps:$4 sm:$0xff]   ;;  %v6179_v57 = vld [vmem:[#allocation9 + $0x5e8] ss:$16 sps:$4 sm:$0xff]  }
 0x370   : > { %4435 = vmatpush1.bf16.msra.mxu0 %v6107_v54  ;;  %v6182_v54 = vld [vmem:[#allocation9 + $0x7e8] ss:$16 sps:$4 sm:$0xff]  }
 0x371   : > { %4476 = vmatpush1.bf16.msra.mxu1 %v6110_v55  ;;  %4436 = vmatprep.subr.bf16.mxu0 %v6115_v58  ;;  %v6185_v55 = vld [vmem:[#allocation14 + $0x40] sm:$0xff]  }
 0x372   : > { %4477 = vmatprep.subr.bf16.mxu1 %v6118_v59  ;;  %v6186_v58 = vld [vmem:[#allocation14] sm:$0xff]   ;;  %v6187_v59 = vld [vmem:[#allocation14 + $0x48] sm:$0xff]  }
 0x374   : > { %4437 = vmatpush1.bf16.msra.mxu0 %v6113_v47  ;;  %v6188_v47 = vld [vmem:[#allocation14 + $0x8] sm:$0xff]  }
 0x375   : > { %4478 = vmatpush1.bf16.msra.mxu1 %v6116_v52  ;;  %4438 = vmatprep.subr.bf16.mxu0 %v6121_v61  ;;  %v6189_v52 = vld [vmem:[#allocation14 + $0x50] sm:$0xff]  }
 0x376   : > { %4479 = vmatprep.subr.bf16.mxu1 %v6124_v62  ;;  %v6190_v61 = vld [vmem:[#allocation14 + $0x10] sm:$0xff]   ;;  %v6191_v62 = vld [vmem:[#allocation14 + $0x58] sm:$0xff]  }
 0x378   : > { %4439 = vmatpush1.bf16.msra.mxu0 %v6119_v63  ;;  %v6192_v63 = vld [vmem:[#allocation14 + $0x18] sm:$0xff]  }
 0x379   : > { %4480 = vmatpush1.bf16.msra.mxu1 %v6122_v1  ;;  %4440 = vmatprep.subr.bf16.mxu0 %v6127_v2  ;;  %v6193_v1 = vld [vmem:[#allocation14 + $0x60] sm:$0xff]  }
 0x37a   : > { %4481 = vmatprep.subr.bf16.mxu1 %v6130_v39  ;;  %v6194_v2 = vld [vmem:[#allocation14 + $0x20] sm:$0xff]   ;;  %v6195_v39 = vld [vmem:[#allocation14 + $0x68] sm:$0xff]  }
 0x37c   : > { %4441 = vmatpush1.bf16.msra.mxu0 %v6125_v13 }
 0x37d   : > { %4482 = vmatpush1.bf16.msra.mxu1 %v6128_v14  ;;  %4442 = vmatprep.subr.bf16.mxu0 %v6133_v16 }
 0x37e   : > { %4483 = vmatprep.subr.bf16.mxu1 %v6136_v60 }
 0x380   : > { %4443 = vmatpush1.bf16.msra.mxu0 %v6131_v18  ;;  %v6198_v18 = vld [vmem:[#allocation14 + $0x30] sm:$0xff]  }
 0x381   : > { %4484 = vmatpush1.bf16.msra.mxu1 %v6134_v19  ;;  %4444 = vmatprep.subr.bf16.mxu0 %v6139_v20 }
 0x382   : > { %4485 = vmatprep.subr.bf16.mxu1 %v6142_v12 }
 0x384   : > { %4445 = vmatpush1.bf16.msra.mxu0 %v6137_v21  ;;  %v6199_v21 = vld [vmem:[#allocation14 + $0x78] sm:$0xff]  }
 0x385   : > { %4486 = vmatpush1.bf16.msra.mxu1 %v6140_v22  ;;  %4446 = vmatprep.subr.bf16.mxu0 %v6145_v23  ;;  %v6201_v23 = vld [vmem:[#allocation14 + $0xc0] sm:$0xff]  }
 0x386   : > { %4487 = vmatprep.subr.bf16.mxu1 %v6148_v24  ;;  %v6202_v24 = vld [vmem:[#allocation14 + $0x80] sm:$0xff]  }
 0x388   : > { %4447 = vmatpush1.bf16.msra.mxu0 %v6143_v25  ;;  %v6203_v25 = vld [vmem:[#allocation14 + $0xc8] sm:$0xff]  }
 0x389   : > { %4488 = vmatpush1.bf16.msra.mxu1 %v6146_v27  ;;  %4448 = vmatprep.subr.bf16.mxu0 %v6151_v30  ;;  %v6200_v27 = vld [vmem:[#allocation14 + $0x38] sm:$0xff]   ;;  %v6206_v30 = vld [vmem:[#allocation14 + $0x90] sm:$0xff]  }
 0x38a   : > { %4489 = vmatprep.subr.bf16.mxu1 %v6154_v31  ;;  %v6207_v31 = vld [vmem:[#allocation14 + $0xd8] sm:$0xff]  }
 0x38c   : > { %4449 = vmatpush1.bf16.msra.mxu0 %v6149_v32  ;;  %v6208_v32 = vld [vmem:[#allocation14 + $0x98] sm:$0xff]  }
 0x38d   : > { %4490 = vmatpush1.bf16.msra.mxu1 %v6152_v33  ;;  %4450 = vmatprep.subr.bf16.mxu0 %v6157_v34  ;;  %v6209_v33 = vld [vmem:[#allocation14 + $0xe0] sm:$0xff]  }
 0x38e   : > { %4491 = vmatprep.subr.bf16.mxu1 %v6160_v0  ;;  %v6210_v34 = vld [vmem:[#allocation14 + $0xa0] sm:$0xff]   ;;  %v4510_v0 = vld [vmem:[#allocation12] sm:$0xf] }
 0x390   : > { %4451 = vmatpush1.bf16.msra.mxu0 %v6155_v36  ;;  %v6211_v36 = vld [vmem:[#allocation14 + $0xe8] sm:$0xff]  }
 0x391   : > { %4492 = vmatpush1.bf16.msra.mxu1 %v6158_v37  ;;  %4452 = vmatprep.subr.bf16.mxu0 %v6163_v38 }
 0x392   : > { %4493 = vmatprep.subr.bf16.mxu1 %v6166_v40  ;;  %v6212_v40 = vld [vmem:[#allocation14 + $0xa8] sm:$0xff]  }
 0x394   : > { %4453 = vmatpush1.bf16.msra.mxu0 %v6161_v41 }
 0x395   : > { %4494 = vmatpush1.bf16.msra.mxu1 %v6164_v42  ;;  %4454 = vmatprep.subr.bf16.mxu0 %v6169_v43  ;;  %v4515_v42 = vrot.slane %v4510_v0, %v2413_v10 }
 0x396   : > { %4495 = vmatprep.subr.bf16.mxu1 %v6172_v44 }
 0x398   : > { %4455 = vmatpush1.bf16.msra.mxu0 %v6167_v48 }
 0x399   : > { %4496 = vmatpush1.bf16.msra.mxu1 %v6170_v17  ;;  %4456 = vmatprep.subr.bf16.mxu0 %v6175_v50  ;;  %v4519_v17 = vrot.slane %v4510_v0, %v2417_v6 }
 0x39a   : > { %4497 = vmatprep.subr.bf16.mxu1 %v6178_v46 }
 0x39c   : > { %4457 = vmatpush1.bf16.msra.mxu0 %v6173_v49 }
 0x39d   : > { %4498 = vmatpush1.bf16.msra.mxu1 %v6176_v51  ;;  %4458 = vmatprep.subr.bf16.mxu0 %v6181_v53 }
 0x39e   : > { %4499 = vmatprep.subr.bf16.mxu1 %v6184_v56  ;;  %v6213_v56 = vld [vmem:[#allocation14 + $0xf0] sm:$0xff]  }
 0x3a0   : > { %4459 = vmatpush1.bf16.msra.mxu0 %v6179_v57 }
 0x3a1   : > { %4500 = vmatpush1.bf16.msra.mxu1 %v6182_v54  ;;  %5610 = vmatprep.subr.bf16.mxu0 %v6185_v55  ;;  %v6214_v54 = vld [vmem:[#allocation14 + $0xb0] sm:$0xff]  }
 0x3a2   : > { %5632 = vmatprep.subr.bf16.mxu1 %v6201_v23 }
 0x3a3   : > { %4461 = vmatmul.mubr.bf16.vlgmr.msra.gmra.mrb[16].mxu0 %v7245_v28  ;;  %v6196_v28 = vld [vmem:[#allocation14 + $0x28] sm:$0xff]  }
 0x3a4   : > { %4502 = vmatmul.mubr.bf16.vlgmr.msra.gmra.mrb[16].mxu1 %v7249_v29  ;;  %5611 = vmatpush3.bf16.msra.mxu0 %v6186_v58  ;;  %v6197_v29 = vld [vmem:[#allocation14 + $0x70] sm:$0xff]  }
 0x3a5   : > { %5612 = vmatprep.subr.bf16.mxu0 %v6187_v59  ;;  %5633 = vmatpush3.bf16.msra.mxu1 %v6202_v24  ;;  %v6215_v59 = vld [vmem:[#allocation14 + $0xf8] sm:$0xff]  }
 0x3a6   : > { %5634 = vmatprep.subr.bf16.mxu1 %v6203_v25 }
 0x3a8   : > { %5613 = vmatpush3.bf16.msra.mxu0 %v6188_v47 }
 0x3a9   : > { %5614 = vmatprep.subr.bf16.mxu0 %v6189_v52  ;;  %v6216_v52 = vld [vmem:[#allocation14 + $0xb8] sm:$0xff]  }
 0x3ac   : > { %5615 = vmatpush3.bf16.msra.mxu0 %v6190_v61 }
 0x3ad   : > { %5616 = vmatprep.subr.bf16.mxu0 %v6191_v62 }
 0x3b0   : > { %5617 = vmatpush3.bf16.msra.mxu0 %v6192_v63 }
 0x3b1   : > { %5618 = vmatprep.subr.bf16.mxu0 %v6193_v1 }
 0x3b4   : > { %5619 = vmatpush3.bf16.msra.mxu0 %v6194_v2 }
 0x3b5   : > { %5620 = vmatprep.subr.bf16.mxu0 %v6195_v39 }
 0x3b6   : > { %v4216_v9 = vpop.f32.mrb[4].mxu0 }
 0x3b7   : > { %v4257_v11 = vpop.f32.mrb[4].mxu1  ;;  %v4217_v13 = vadd.f32 %v4216_v9, %v7259_v3  ;;  %v4218_v14 = vpop.f32.mrb[5].mxu0  ;;  %v6204_v3 = vld [vmem:[#allocation14 + $0x88] sm:$0xff]  }
 0x3b8   : > { %v4259_v35 = vpop.f32.mrb[5].mxu1  ;;  %v4219_v15 = vadd.f32 %v4218_v14, %v7263_v5  ;;  %v4220_v16 = vpop.f32.mrb[6].mxu0  ;;  %5621 = vmatpush3.bf16.msra.mxu0 %v6196_v28  ;;  %v6205_v5 = vld [vmem:[#allocation14 + $0xd0] sm:$0xff]   ;;  %5635 = vmatpush3.bf16.msra.mxu1 %v6204_v3 }
 0x3b9   : > { %v4261_v60 = vpop.f32.mrb[6].mxu1  ;;  %v4258_v19 = vadd.f32 %v4257_v11, %v4217_v13  ;;  %v4221_v20 = vpop.f32.mrb[7].mxu0  ;;  %5622 = vmatprep.subr.bf16.mxu0 %v6197_v29  ;;  %5636 = vmatprep.subr.bf16.mxu1 %v6205_v5 }
 0x3ba   : > { %v4262_v12 = vpop.f32.mrb[7].mxu1  ;;  %v4260_v22 = vadd.f32 %v4259_v35, %v4219_v15 }
 0x3bc   : > { %5623 = vmatpush3.bf16.msra.mxu0 %v6198_v18  ;;  %5637 = vmatpush3.bf16.msra.mxu1 %v6206_v30  ;;  %v4523_v18 = vrot.slane %v4510_v0, %v2421_v7 }
 0x3bd   : > { %5624 = vmatprep.subr.bf16.mxu0 %v6199_v21  ;;  %5638 = vmatprep.subr.bf16.mxu1 %v6207_v31 }
 0x3c0   : > { %5625 = vmatpush3.bf16.msra.mxu0 %v6200_v27  ;;  %5639 = vmatpush3.bf16.msra.mxu1 %v6208_v32 }
 0x3c1   : > { %5640 = vmatprep.subr.bf16.mxu1 %v6209_v33 }
 0x3c4   : > { %5641 = vmatpush3.bf16.msra.mxu1 %v6210_v34 }
 0x3c5   : > { %5642 = vmatprep.subr.bf16.mxu1 %v6211_v36 }
 0x3c8   : > { %5643 = vmatpush3.bf16.msra.mxu1 %v6212_v40 }
 0x3c9   : > { %5644 = vmatprep.subr.bf16.mxu1 %v6213_v56 }
 0x3cc   : > { %5645 = vmatpush3.bf16.msra.mxu1 %v6214_v54 }
 0x3cd   : > { %5646 = vmatprep.subr.bf16.mxu1 %v6215_v59 }
 0x3d0   : > { %5647 = vmatpush3.bf16.msra.mxu1 %v6216_v52 }
 0x3f6   : > { %v4298_v37 = vpop.f32.mrb[8].mxu0 }
 0x3f7   : > { %v4339_v38 = vpop.f32.mrb[8].mxu1  ;;  %v4299_v41 = vadd.f32 %v4298_v37, %v4258_v19  ;;  %v4300_v43 = vpop.f32.mrb[9].mxu0 }
 0x3f8   : > { %v4341_v44 = vpop.f32.mrb[9].mxu1  ;;  %v4301_v48 = vadd.f32 %v4300_v43, %v4260_v22  ;;  %v4302_v50 = vpop.f32.mrb[10].mxu0 }
 0x3f9   : > { %v4343_v46 = vpop.f32.mrb[10].mxu1  ;;  %v4340_v49 = vadd.f32 %v4339_v38, %v4299_v41  ;;  %v4303_v51 = vpop.f32.mrb[11].mxu0 }
 0x3fa   : > { %v4344_v53 = vpop.f32.mrb[11].mxu1  ;;  %v4342_v57 = vadd.f32 %v4341_v44, %v4301_v48 }
 0x3fb   : > { %v4532_v55 = vadd.f32 %v4515_v42, %v4340_v49 }
 0x3fc   : > { %v4533_v58 = vadd.f32 %v4519_v17, %v4342_v57 }
 0x3fd   : > { %v4536_v10 = vmax.f32 %v4532_v55, 0.0 }
 0x3fe   : > { %v4537_v47 = vmax.f32 %v4533_v58, 0.0 }
 0x3ff   : > { %v4540_v6 = vpack.c.bf16 %v4536_v10, %v4536_v10 }
 0x400   : > { %v4541_v61 = vpack.c.bf16 %v4537_v47, %v4537_v47 }
 0x402   : > { %4839 = vmatprep.mubr.bf16.mxu0 %v4541_v61 }
 0x403   : > { %4840 = vmatmul.mubr.bf16.vlgmr.msra.gmra.mrb[20].mxu0 %v4540_v6 }
 0x436   : > { %v4380_v62 = vpop.f32.mrb[12].mxu0 }
 0x437   : > { %v4421_v63 = vpop.f32.mrb[12].mxu1  ;;  %v4381_v1 = vadd.f32 %v4380_v62, %v7261_v4  ;;  %v4382_v2 = vpop.f32.mrb[13].mxu0  ;;  %v4527_v4 = vrot.slane %v4510_v0, %v2425_v8  ;;  %v5571_v8 = vld [vmem:[#allocation15] ss:$0 sm:$0xff] }
 0x438   : > { %v4423_v39 = vpop.f32.mrb[13].mxu1  ;;  %v4383_v28 = vadd.f32 %v4382_v2, %v7265_v26  ;;  %v4384_v29 = vpop.f32.mrb[14].mxu0 }
 0x439   : > { %v4425_v9 = vpop.f32.mrb[14].mxu1  ;;  %v4422_v11 = vadd.f32 %v4421_v63, %v4381_v1  ;;  %v4385_v13 = vpop.f32.mrb[15].mxu0 }
 0x43a   : > { %v4426_v14 = vpop.f32.mrb[15].mxu1  ;;  %v4424_v35 = vadd.f32 %v4423_v39, %v4383_v28 }
 0x476   : > { %v4462_v15 = vpop.f32.mrb[16].mxu0 }
 0x477   : > { %v4503_v16 = vpop.f32.mrb[16].mxu1  ;;  %v4463_v60 = vadd.f32 %v4462_v15, %v4422_v11  ;;  %v4464_v19 = vpop.f32.mrb[17].mxu0 }
 0x478   : > { %v4505_v20 = vpop.f32.mrb[17].mxu1  ;;  %v4465_v12 = vadd.f32 %v4464_v19, %v4424_v35  ;;  %v4466_v21 = vpop.f32.mrb[18].mxu0 }
 0x479   : > { %v4507_v26 = vpop.f32.mrb[18].mxu1  ;;  %v4504_v22 = vadd.f32 %v4503_v16, %v4463_v60  ;;  %v4467_v23 = vpop.f32.mrb[19].mxu0 }
 0x47a   : > { %v4508_v24 = vpop.f32.mrb[19].mxu1  ;;  %v4506_v25 = vadd.f32 %v4505_v20, %v4465_v12 }
 0x47b   : > { %v4534_v27 = vadd.f32 %v4523_v18, %v4504_v22 }
 0x47c   : > { %v4535_v3 = vadd.f32 %v4527_v4, %v4506_v25 }
 0x47d   : > { %v4538_v5 = vmax.f32 %v4534_v27, 0.0 }
 0x47e   : > { %v4539_v30 = vmax.f32 %v4535_v3, 0.0 }
 0x47f   : > { %v4542_v32 = vpack.c.bf16 %v4538_v5, %v4538_v5 }
 0x480   : > { %v4543_v31 = vpack.c.bf16 %v4539_v30, %v4539_v30 }
 0x482   : > { %4879 = vmatprep.mubr.bf16.mxu1 %v4543_v31 }
 0x483   : > { %4880 = vmatmul.mubr.bf16.vlgmr.msra.gmra.mrb[20].mxu1 %v4542_v32 }
 0x4d6   : > { %v5626_v7 = vpop.f32.mrb[20].mxu0 }
 0x4d7   : > { %v5627_v33 = vpop.f32.mrb[21].mxu0 }
 0x4d8   : > { %v5628_v34 = vadd.f32 %v5627_v33, %v5626_v7  ;;  %v5629_v36 = vpop.f32.mrb[22].mxu0 }
 0x4d9   : > { %v5630_v45 = vpop.f32.mrb[23].mxu0 }
 0x4da   : > { %v4842_v38 = vadd.f32 %v5628_v34, %v5571_v8 }
 0x556   : > { %v5648_v0 = vpop.f32.mrb[20].mxu1 }
 0x557   : > { %v5649_v37 = vpop.f32.mrb[21].mxu1 }
 0x558   : > { %v5650_v40 = vadd.f32 %v5649_v37, %v5648_v0  ;;  %v5651_v41 = vpop.f32.mrb[22].mxu1 }
 0x559   : > { %v5652_v42 = vpop.f32.mrb[23].mxu1 }
 0x55a   : > { %v4882_v43 = vadd.f32 %v5650_v40, %v4842_v38 }
 0x55c   : > { %4887 = vst [vmem:[#allocation17] sm:$0x3] %v4882_v43 }
 0x55d PF: > { %p5745_p8 = scmp.eq.s32.totalorder %s6614_s15, 1  ;;  %s6542_s12 = smov [#allocation17]  }
 0x55e   : > { %s4895_s25 = sshll.u32 %s6542_s12, 4  ;;  %s4896_s25 = int_to_ptr.vmem [resolvable:$true] %s4895_s25 }
 0x55f   : > { %s6443_s26 = scalar_lea.vmem %s4896_s25, 32  ;;  %p6450_p6 = scmp.lt.s32.totalorder %s4896_s25, %s4896_s25 }
 0x560   : > { %p6444_p7 = scmp.ne.s32.totalorder %s4896_s25, %s6443_s26  ;;  %p6451_p9 = scmp.lt.s32.totalorder %s6443_s26, %s6443_s26 }
 0x562   : > { %p6445_p13 = pnand %p6444_p7, %p5745_p8  ;;  %p6452_p3 = por %p6451_p9, %p6450_p6 }
 0x564   : > { %p6446_p2 = pneg %p6445_p13 }
 0x566   : > { %p6453_p1 = pnand %p6452_p3, %p6446_p2 }
 0x568   : > { %6456 = shalt.err (!%p6453_p1)
}
 0x569   : > { %s6457_s14 = scalar_lea.hbm %s7326_s9, 32 }
 0x56a   : > { %p6458_p4 = scmp.ne.s32.totalorder %s7326_s9, %s6457_s14  ;;  %p6463_p12 = scmp.lt.u32.totalorder %s6457_s14, %s7326_s9 }
 0x56c   : > { %p6459_p10 = pnand %p6458_p4, %p5745_p8 }
 0x56e   : > { %p6460_p11 = pneg %p6459_p10 }
 0x570   : > { %p6465_p0 = pnand %p6463_p12, %p6460_p11 }
 0x572   : > { %6468 = shalt.err (!%p6465_p0)
}
 0x573   : > { %5701 = dma.vmem_to_hbm [thread:$0]  (%p5745_p8), %s4896_s25, 32, %s7326_s9, [#allocation5]  }
 0x574   : > { %6506 = dma.done.wait (%p5745_p8), [#allocation5], 32  }
 0x575   : > { %6508 = vsyncadd (%p5745_p8), [#allocation5], 4294967264 }
 0x576 PF: > { %p24_p5 = scmp.ge.s32.totalorder %s6779_s2, 4   ;;  %s7347_s30 = smov %s6515_s10 }
 0x577   : > { %s7348_s10 = smov %s6519_s11  ;;  %s7349_s11 = smov %s6790_s17 }
 0x578   : > { %s7350_s12 = smov %s6779_s2  ;;  %26 = sbr.rel (!%p24_p5) target bundleno = 10 (0xa), region = 132 }
 0x57f   :  { %4908 = vsyncpa [#allocation4], 1 }
 0x580   :  { %4910 = vsyncpa [#allocation4 + $0x1], 1 }
 0x581   :  { %4911 = vsyncpa [#allocation7], 1 }
 0x582   :  { %4912 = vsyncpa [#allocation10], 1 }
 0x583   :  { %4913 = vsyncpa [#allocation13], 1 }
 0x584   :  { %4914 = vsyncpa [#allocation16], 1 }
 0x585   :  { %4915 = vsyncpa [#allocation5], 1 }
 0x586   :  { %4917 = vsyncpa [#allocation5 + $0x1], 1 }

</bundles_post_ra>
